<compile_context>
chip_gen: v7x
topology: tpu7x:2x2x1
jax: 0.10.0
libtpu: 0.0.40
codegen_flags: <defaults>
</compile_context>

<pallas_src>
import jax
import jax.numpy as jnp
from jax.experimental import pallas as pl
from jax.experimental.pallas import tpu as pltpu


def aurora_kernel(x_ref,
                  w1_ref, b1_ref, w2_ref, b2_ref, w34_ref, b34_ref,
                  w5_ref, b5_ref, w6_ref, b6_ref,
                  out_ref):
    """Fused encoder+decoder MLP chain on one (tb, pack*D) activation tile."""
    h = x_ref[...]  # f32 tile

    def dense(h, w_ref, b_ref):
        # bf16 operands -> single-pass MXU matmul; accumulate in f32.
        return jnp.dot(h.astype(jnp.bfloat16), w_ref[...],
                       preferred_element_type=jnp.float32) + b_ref[...]

    # ---- encoder ----
    h = jnp.maximum(dense(h, w1_ref, b1_ref), 0.0)
    h = jnp.maximum(dense(h, w2_ref, b2_ref), 0.0)
    # ---- fused encoder-L3 / decoder-L1 (no activation in between), then ReLU
    h = jnp.maximum(dense(h, w34_ref, b34_ref), 0.0)
    # ---- decoder ----
    h = jnp.maximum(dense(h, w5_ref, b5_ref), 0.0)
    h = dense(h, w6_ref, b6_ref)
    # Sigmoid: exp and approximate reciprocal both use the EUP slot.
    h = pl.reciprocal(1.0 + jnp.exp(-h), approx=True)

    out_ref[...] = h.astype(out_ref.dtype)


def _default_pack():
    """4 samples/row on 256-wide-MXU parts (v6e/v7x), 2 otherwise (v5e etc.)."""
    try:
        kind = jax.devices()[0].device_kind.lower()
    except Exception:
        return 2
    return 4 if ("v6" in kind or "v7" in kind) else 2


def _pack_layer(w, b, pack):
    """Block-diagonal weight / tiled bias for `pack` samples per vector row."""
    fi, fo = w.shape
    w_p = jnp.kron(jnp.eye(pack, dtype=w.dtype), w).astype(jnp.bfloat16)
    b_p = jnp.tile(b.reshape(1, fo), (1, pack)).astype(jnp.float32)
    return w_p, b_p


def _fuse_and_pack(params, pack):
    """Fuse encoder-L3 with decoder-L1 (exact, no nonlinearity), then pack."""
    (w1, b1), (w2, b2), (w3, b3), (w4, b4), (w5, b5), (w6, b6) = params
    w34 = w3 @ w4                       # (D/4, O) @ (O, D/4) -> (D/4, D/4)
    b34 = b3 @ w4 + b4
    layers = [(w1, b1), (w2, b2), (w34, b34), (w5, b5), (w6, b6)]
    return [_pack_layer(w, b, pack) for (w, b) in layers]


def aurora_forward(x, params, *, block_rows=512, pack=None):
    """x: (B, input_dim) f32. params: list of 6 (W, b), W stored as (in, out).

    block_rows = packed rows per grid tile (each packed row holds `pack`
    samples). Weights/biases use constant index maps so they stay resident in
    VMEM across the whole grid.
    """
    B, D = x.shape
    if pack is None:
        pack = _default_pack()

    # --- choose tiling: multiple-of-8 tile rows, grid >= 2 when enough work ---
    rows = pl.cdiv(B, pack)
    rows8 = max(8, pl.cdiv(rows, 8) * 8)
    tb = max(8, (min(block_rows, rows8) // 8) * 8)
    while tb > 8 and pl.cdiv(rows8, tb) < 2 and rows8 > 8:
        tb = max(8, ((tb // 2) // 8) * 8)     # keep both v7x TCs busy
    rows_pad = pl.cdiv(rows8, tb) * tb
    b_pad = rows_pad * pack

    if b_pad != B:
        # TODO(synk): an in-kernel tail-tile mask would avoid this extra HBM
        # pass for unaligned batch sizes; aligned batches skip it entirely.
        x = jnp.pad(x, ((0, b_pad - B), (0, 0)))
    xp = x.reshape(rows_pad, pack * D)        # row r = samples [pack*r, pack*r+pack)

    packed = _fuse_and_pack(params, pack)

    flat = []
    in_specs = [pl.BlockSpec((tb, pack * D), lambda i: (i, 0))]
    for (w, b) in packed:
        flat.extend([w, b])
        # Full-array blocks with constant index maps -> resident in VMEM.
        in_specs.append(pl.BlockSpec(w.shape, lambda i: (0, 0)))
        in_specs.append(pl.BlockSpec(b.shape, lambda i: (0, 0)))

    out = pl.pallas_call(
        aurora_kernel,
        out_shape=jax.ShapeDtypeStruct((rows_pad, pack * D), jnp.float32),
        grid=(rows_pad // tb,),
        in_specs=in_specs,
        out_specs=pl.BlockSpec((tb, pack * D), lambda i: (i, 0)),
        compiler_params=pltpu.CompilerParams(
            dimension_semantics=("parallel",),   # shard batch tiles across TCs
            vmem_limit_bytes=32 * 1024 * 1024,   # safe on v5e/v6e/v7x
        ),
    )(xp, *flat)

    out = out.reshape(b_pad, D)
    return out if b_pad == B else out[:B]


def init_aurora_params(key, input_dim, output_dim):
    """Deterministic init matching the PyTorch module's layer shapes.

    PyTorch Linear stores weight as (out, in); we create (in, out) directly
    (i.e. the transpose) so the forward computes x @ W + b.
    """
    hidden = input_dim // 2
    half = hidden // 2
    dims = [
        (input_dim, hidden),   # encoder L1
        (hidden, half),        # encoder L2
        (half, output_dim),    # encoder L3
        (output_dim, half),    # decoder L1
        (half, hidden),        # decoder L2
        (hidden, input_dim),   # decoder L3
    ]
    params = []
    for (fan_in, fan_out) in dims:
        key, kw, kb = jax.random.split(key, 3)
        bound = 1.0 / jnp.sqrt(fan_in)
        w = jax.random.uniform(kw, (fan_in, fan_out), jnp.float32, -bound, bound)
        b = jax.random.uniform(kb, (1, fan_out), jnp.float32, -bound, bound)
        params.append((w, b))
    return params


def aurora_reference(x, params):
    """Pure-JAX f32 reference (unfused, unpacked weights) for correctness."""
    h = x
    # encoder
    h = jnp.maximum(h @ params[0][0] + params[0][1], 0.0)
    h = jnp.maximum(h @ params[1][0] + params[1][1], 0.0)
    h = h @ params[2][0] + params[2][1]
    # decoder
    h = jnp.maximum(h @ params[3][0] + params[3][1], 0.0)
    h = jnp.maximum(h @ params[4][0] + params[4][1], 0.0)
    h = h @ params[5][0] + params[5][1]
    return 1.0 / (1.0 + jnp.exp(-h))


if __name__ == "__main__":
    # Shapes consistent with the module's topology:
    # input_dim=64 -> hidden=32 -> hidden//2=16 -> output_dim=16
    INPUT_DIM = 64
    OUTPUT_DIM = 16
    BATCH = 2048   # tile-aligned for both pack=2 and pack=4 (grid >= 2, no pad)

    key = jax.random.PRNGKey(0)
    key, kx = jax.random.split(key)
    x = jax.random.normal(kx, (BATCH, INPUT_DIM), dtype=jnp.float32)

    params = init_aurora_params(key, INPUT_DIM, OUTPUT_DIM)

    out = aurora_forward(x, params)
    out = jax.block_until_ready(out)

    ref = aurora_reference(x, params)
    assert out.shape == (BATCH, INPUT_DIM)
    # bf16 matmul operands + approx reciprocal -> loosen tolerance vs f32 ref.
    assert jnp.allclose(out, ref, atol=3e-2, rtol=3e-2), "mismatch vs reference"

    # TODO(synk): training utilities (MSELoss/Adam/DataLoader in `inject`) are
    # host-side and intentionally not part of the Pallas forward kernel.
    print("KERNEL_OK")
</pallas_src>

<mosaic_0001>
module attributes {stable_mosaic.version = 11 : i64} {
  func.func @aurora_kernel(%arg0: i32, %arg1: memref<512x128xf32, #tpu.memory_space<vmem>>, %arg2: memref<128x64xbf16, #tpu.memory_space<vmem>>, %arg3: memref<1x64xf32, #tpu.memory_space<vmem>>, %arg4: memref<64x32xbf16, #tpu.memory_space<vmem>>, %arg5: memref<1x32xf32, #tpu.memory_space<vmem>>, %arg6: memref<32x32xbf16, #tpu.memory_space<vmem>>, %arg7: memref<1x32xf32, #tpu.memory_space<vmem>>, %arg8: memref<32x64xbf16, #tpu.memory_space<vmem>>, %arg9: memref<1x64xf32, #tpu.memory_space<vmem>>, %arg10: memref<64x128xbf16, #tpu.memory_space<vmem>>, %arg11: memref<1x128xf32, #tpu.memory_space<vmem>>, %arg12: memref<512x128xf32, #tpu.memory_space<vmem>>) attributes {dimension_semantics = [#tpu.dimension_semantics<parallel>], iteration_bounds = array<i64: 2>, scalar_prefetch = 0 : i64, scratch_operands = 0 : i64, tpu.core_type = #tpu.core_type<tc>, window_params = [{transform_indices = @transform_0, window_bounds = array<i64: 512, 128>}, {pipeline_mode = #tpu.pipeline_mode<synchronous>, transform_indices = @transform_1, window_bounds = array<i64: 128, 64>}, {pipeline_mode = #tpu.pipeline_mode<synchronous>, transform_indices = @transform_2, window_bounds = array<i64: 1, 64>}, {pipeline_mode = #tpu.pipeline_mode<synchronous>, transform_indices = @transform_3, window_bounds = array<i64: 64, 32>}, {pipeline_mode = #tpu.pipeline_mode<synchronous>, transform_indices = @transform_4, window_bounds = array<i64: 1, 32>}, {pipeline_mode = #tpu.pipeline_mode<synchronous>, transform_indices = @transform_5, window_bounds = array<i64: 32, 32>}, {pipeline_mode = #tpu.pipeline_mode<synchronous>, transform_indices = @transform_6, window_bounds = array<i64: 1, 32>}, {pipeline_mode = #tpu.pipeline_mode<synchronous>, transform_indices = @transform_7, window_bounds = array<i64: 32, 64>}, {pipeline_mode = #tpu.pipeline_mode<synchronous>, transform_indices = @transform_8, window_bounds = array<i64: 1, 64>}, {pipeline_mode = #tpu.pipeline_mode<synchronous>, transform_indices = @transform_9, window_bounds = array<i64: 64, 128>}, {pipeline_mode = #tpu.pipeline_mode<synchronous>, transform_indices = @transform_10, window_bounds = array<i64: 1, 128>}, {transform_indices = @transform_11, window_bounds = array<i64: 512, 128>}]} {
    %c0 = arith.constant 0 : index
    %c0_0 = arith.constant 0 : index
    %0 = vector.load %arg1[%c0, %c0_0] : memref<512x128xf32, #tpu.memory_space<vmem>>, vector<512x128xf32>
    %1 = arith.truncf %0 : vector<512x128xf32> to vector<512x128xbf16>
    %c0_1 = arith.constant 0 : index
    %c0_2 = arith.constant 0 : index
    %2 = vector.load %arg2[%c0_1, %c0_2] : memref<128x64xbf16, #tpu.memory_space<vmem>>, vector<128x64xbf16>
    %cst = arith.constant dense<0.000000e+00> : vector<512x64xf32>
    %3 = tpu.matmul %1, %2, %cst {dimension_numbers = #tpu.dot_dimension_numbers<[1], [0], [0], [1], [0, 0, 1, 1], [], []>} : vector<512x128xbf16>, vector<128x64xbf16>, vector<512x64xf32> -> vector<512x64xf32>
    %c0_3 = arith.constant 0 : index
    %c0_4 = arith.constant 0 : index
    %4 = vector.load %arg3[%c0_3, %c0_4] : memref<1x64xf32, #tpu.memory_space<vmem>>, vector<1x64xf32>
    %5 = vector.broadcast %4 : vector<1x64xf32> to vector<512x64xf32>
    %6 = arith.addf %3, %5 : vector<512x64xf32>
    %cst_5 = arith.constant 0.000000e+00 : f32
    %7 = vector.broadcast %cst_5 : f32 to vector<512x64xf32>
    %8 = arith.maximumf %6, %7 : vector<512x64xf32>
    %9 = arith.truncf %8 : vector<512x64xf32> to vector<512x64xbf16>
    %c0_6 = arith.constant 0 : index
    %c0_7 = arith.constant 0 : index
    %10 = vector.load %arg4[%c0_6, %c0_7] : memref<64x32xbf16, #tpu.memory_space<vmem>>, vector<64x32xbf16>
    %cst_8 = arith.constant dense<0.000000e+00> : vector<512x32xf32>
    %11 = tpu.matmul %9, %10, %cst_8 {dimension_numbers = #tpu.dot_dimension_numbers<[1], [0], [0], [1], [0, 0, 1, 1], [], []>} : vector<512x64xbf16>, vector<64x32xbf16>, vector<512x32xf32> -> vector<512x32xf32>
    %c0_9 = arith.constant 0 : index
    %c0_10 = arith.constant 0 : index
    %12 = vector.load %arg5[%c0_9, %c0_10] : memref<1x32xf32, #tpu.memory_space<vmem>>, vector<1x32xf32>
    %13 = vector.broadcast %12 : vector<1x32xf32> to vector<512x32xf32>
    %14 = arith.addf %11, %13 : vector<512x32xf32>
    %cst_11 = arith.constant 0.000000e+00 : f32
    %15 = vector.broadcast %cst_11 : f32 to vector<512x32xf32>
    %16 = arith.maximumf %14, %15 : vector<512x32xf32>
    %17 = arith.truncf %16 : vector<512x32xf32> to vector<512x32xbf16>
    %c0_12 = arith.constant 0 : index
    %c0_13 = arith.constant 0 : index
    %18 = vector.load %arg6[%c0_12, %c0_13] : memref<32x32xbf16, #tpu.memory_space<vmem>>, vector<32x32xbf16>
    %cst_14 = arith.constant dense<0.000000e+00> : vector<512x32xf32>
    %19 = tpu.matmul %17, %18, %cst_14 {dimension_numbers = #tpu.dot_dimension_numbers<[1], [0], [0], [1], [0, 0, 1, 1], [], []>} : vector<512x32xbf16>, vector<32x32xbf16>, vector<512x32xf32> -> vector<512x32xf32>
    %c0_15 = arith.constant 0 : index
    %c0_16 = arith.constant 0 : index
    %20 = vector.load %arg7[%c0_15, %c0_16] : memref<1x32xf32, #tpu.memory_space<vmem>>, vector<1x32xf32>
    %21 = vector.broadcast %20 : vector<1x32xf32> to vector<512x32xf32>
    %22 = arith.addf %19, %21 : vector<512x32xf32>
    %cst_17 = arith.constant 0.000000e+00 : f32
    %23 = vector.broadcast %cst_17 : f32 to vector<512x32xf32>
    %24 = arith.maximumf %22, %23 : vector<512x32xf32>
    %25 = arith.truncf %24 : vector<512x32xf32> to vector<512x32xbf16>
    %c0_18 = arith.constant 0 : index
    %c0_19 = arith.constant 0 : index
    %26 = vector.load %arg8[%c0_18, %c0_19] : memref<32x64xbf16, #tpu.memory_space<vmem>>, vector<32x64xbf16>
    %cst_20 = arith.constant dense<0.000000e+00> : vector<512x64xf32>
    %27 = tpu.matmul %25, %26, %cst_20 {dimension_numbers = #tpu.dot_dimension_numbers<[1], [0], [0], [1], [0, 0, 1, 1], [], []>} : vector<512x32xbf16>, vector<32x64xbf16>, vector<512x64xf32> -> vector<512x64xf32>
    %c0_21 = arith.constant 0 : index
    %c0_22 = arith.constant 0 : index
    %28 = vector.load %arg9[%c0_21, %c0_22] : memref<1x64xf32, #tpu.memory_space<vmem>>, vector<1x64xf32>
    %29 = vector.broadcast %28 : vector<1x64xf32> to vector<512x64xf32>
    %30 = arith.addf %27, %29 : vector<512x64xf32>
    %cst_23 = arith.constant 0.000000e+00 : f32
    %31 = vector.broadcast %cst_23 : f32 to vector<512x64xf32>
    %32 = arith.maximumf %30, %31 : vector<512x64xf32>
    %33 = arith.truncf %32 : vector<512x64xf32> to vector<512x64xbf16>
    %c0_24 = arith.constant 0 : index
    %c0_25 = arith.constant 0 : index
    %34 = vector.load %arg10[%c0_24, %c0_25] : memref<64x128xbf16, #tpu.memory_space<vmem>>, vector<64x128xbf16>
    %cst_26 = arith.constant dense<0.000000e+00> : vector<512x128xf32>
    %35 = tpu.matmul %33, %34, %cst_26 {dimension_numbers = #tpu.dot_dimension_numbers<[1], [0], [0], [1], [0, 0, 1, 1], [], []>} : vector<512x64xbf16>, vector<64x128xbf16>, vector<512x128xf32> -> vector<512x128xf32>
    %c0_27 = arith.constant 0 : index
    %c0_28 = arith.constant 0 : index
    %36 = vector.load %arg11[%c0_27, %c0_28] : memref<1x128xf32, #tpu.memory_space<vmem>>, vector<1x128xf32>
    %37 = vector.broadcast %36 : vector<1x128xf32> to vector<512x128xf32>
    %38 = arith.addf %35, %37 : vector<512x128xf32>
    %cst_29 = arith.constant 0.000000e+00 : f32
    %39 = vector.broadcast %cst_29 : f32 to vector<512x128xf32>
    %40 = arith.subf %39, %38 : vector<512x128xf32>
    %41 = math.exp %40 : vector<512x128xf32>
    %cst_30 = arith.constant 1.000000e+00 : f32
    %42 = vector.broadcast %cst_30 : f32 to vector<512x128xf32>
    %43 = arith.addf %42, %41 : vector<512x128xf32>
    %44 = tpu.reciprocal %43 {approx = true} : vector<512x128xf32> -> vector<512x128xf32>
    %c0_31 = arith.constant 0 : index
    %c0_32 = arith.constant 0 : index
    %45 = vector.load %arg12[%c0_31, %c0_32] : memref<512x128xf32, #tpu.memory_space<vmem>>, vector<512x128xf32>
    tpu.vector_store %arg12[%c0_31, %c0_32], %44 {strides = array<i32>} : memref<512x128xf32, #tpu.memory_space<vmem>>, vector<512x128xf32>,
    return
  }
  func.func @transform_0(%arg0: i32) -> (i32, i32) {
    %c0_i32 = arith.constant 0 : i32
    %c0_i32_0 = arith.constant 0 : i32
    return %arg0, %c0_i32 : i32, i32
  }
  func.func @transform_1(%arg0: i32) -> (i32, i32) {
    %c0_i32 = arith.constant 0 : i32
    %c0_i32_0 = arith.constant 0 : i32
    %c0_i32_1 = arith.constant 0 : i32
    return %c0_i32, %c0_i32_0 : i32, i32
  }
  func.func @transform_2(%arg0: i32) -> (i32, i32) {
    %c0_i32 = arith.constant 0 : i32
    %c0_i32_0 = arith.constant 0 : i32
    %c0_i32_1 = arith.constant 0 : i32
    return %c0_i32, %c0_i32_0 : i32, i32
  }
  func.func @transform_3(%arg0: i32) -> (i32, i32) {
    %c0_i32 = arith.constant 0 : i32
    %c0_i32_0 = arith.constant 0 : i32
    %c0_i32_1 = arith.constant 0 : i32
    return %c0_i32, %c0_i32_0 : i32, i32
  }
  func.func @transform_4(%arg0: i32) -> (i32, i32) {
    %c0_i32 = arith.constant 0 : i32
    %c0_i32_0 = arith.constant 0 : i32
    %c0_i32_1 = arith.constant 0 : i32
    return %c0_i32, %c0_i32_0 : i32, i32
  }
  func.func @transform_5(%arg0: i32) -> (i32, i32) {
    %c0_i32 = arith.constant 0 : i32
    %c0_i32_0 = arith.constant 0 : i32
    %c0_i32_1 = arith.constant 0 : i32
    return %c0_i32, %c0_i32_0 : i32, i32
  }
  func.func @transform_6(%arg0: i32) -> (i32, i32) {
    %c0_i32 = arith.constant 0 : i32
    %c0_i32_0 = arith.constant 0 : i32
    %c0_i32_1 = arith.constant 0 : i32
    return %c0_i32, %c0_i32_0 : i32, i32
  }
  func.func @transform_7(%arg0: i32) -> (i32, i32) {
    %c0_i32 = arith.constant 0 : i32
    %c0_i32_0 = arith.constant 0 : i32
    %c0_i32_1 = arith.constant 0 : i32
    return %c0_i32, %c0_i32_0 : i32, i32
  }
  func.func @transform_8(%arg0: i32) -> (i32, i32) {
    %c0_i32 = arith.constant 0 : i32
    %c0_i32_0 = arith.constant 0 : i32
    %c0_i32_1 = arith.constant 0 : i32
    return %c0_i32, %c0_i32_0 : i32, i32
  }
  func.func @transform_9(%arg0: i32) -> (i32, i32) {
    %c0_i32 = arith.constant 0 : i32
    %c0_i32_0 = arith.constant 0 : i32
    %c0_i32_1 = arith.constant 0 : i32
    return %c0_i32, %c0_i32_0 : i32, i32
  }
  func.func @transform_10(%arg0: i32) -> (i32, i32) {
    %c0_i32 = arith.constant 0 : i32
    %c0_i32_0 = arith.constant 0 : i32
    %c0_i32_1 = arith.constant 0 : i32
    return %c0_i32, %c0_i32_0 : i32, i32
  }
  func.func @transform_11(%arg0: i32) -> (i32, i32) {
    %c0_i32 = arith.constant 0 : i32
    %c0_i32_0 = arith.constant 0 : i32
    return %arg0, %c0_i32 : i32, i32
  }
}

</mosaic_0001>

<bundles_post_ra>
// kernel: tpu_custom_call.1
= control target key start
LH: loop header
LB: loop body
LE: loop exit
PB: predicated region body
PF: predicated region fallthrough
CT: control target
= control target key end

     0   :  { %16 = vsyncpa [#allocation3], 0  ;;  %s5426_s0 = inlined_call_operand.hbm [shape: f32[1024,128], index: 0, kind: input, shape index: {}]   ;;  %s5427_s1 = inlined_call_operand.vmem [shape: bf16[128,64], index: 1, kind: input, shape index: {}]   ;;  %s5428_s2 = inlined_call_operand.vmem [shape: f32[1,64], index: 2, kind: input, shape index: {}]   ;;  %s5429_s3 = inlined_call_operand.vmem [shape: bf16[64,32], index: 3, kind: input, shape index: {}]   ;;  %s5430_s4 = inlined_call_operand.vmem [shape: f32[1,32], index: 4, kind: input, shape index: {}]   ;;  %s5431_s5 = inlined_call_operand.vmem [shape: bf16[32,32], index: 5, kind: input, shape index: {}]   ;;  %s5432_s6 = inlined_call_operand.vmem [shape: f32[1,32], index: 6, kind: input, shape index: {}]   ;;  %s5433_s7 = inlined_call_operand.vmem [shape: bf16[32,64], index: 7, kind: input, shape index: {}]   ;;  %s5434_s8 = inlined_call_operand.vmem [shape: f32[1,64], index: 8, kind: input, shape index: {}]   ;;  %s5435_s9 = inlined_call_operand.vmem [shape: bf16[64,128], index: 9, kind: input, shape index: {}]   ;;  %s5436_s10 = inlined_call_operand.vmem [shape: f32[1,128], index: 10, kind: input, shape index: {}]   ;;  %s5437_s11 = inlined_call_operand.hbm [shape: f32[1024,128], index: 11, kind: output, shape index: {}]  }
   0x1   :  { %18 = vsyncpa [#allocation3 + $0x1], 0 }
   0x2   :  { %19 = vsyncpa [#allocation4], 0 }
   0x3   :  { %21 = vsyncpa [#allocation4 + $0x1], 0  ;;  %s4593_s17 = smov 0   ;;  %s4595_s18 = smov 0  }
   0x4   :  { %s4597_s19 = smov 0   ;;  %s4599_s20 = smov 0  }
   0x5 LB: > { %5440 = sst [smem:[#allocation8_spill]] %s4521_s19  ;;  %s4614_s21 = sadd.s32 4294967295, %s4525_s20   ;;  %s4525_s20 = sphi %s4599_s20, %s5454_s20   ;;  %s4521_s19 = sphi %s4597_s19, %s5451_s19   ;;  %s4517_s18 = sphi %s4595_s18, %s5453_s18   ;;  %s4513_s17 = sphi %s4593_s17, %s5452_s17  }
   0x6   : > { %s3385_s22 = sadd.s32 4294967294, %s4525_s20   ;;  %s4618_s23 = sadd.s32 1, %s4525_s20  }
   0x7   : > { %s34_s24 = sadd.s32 1, %s4521_s19  ;;  %s31_s25 = ssub.s32 %s4525_s20, %s4618_s23 }
   0x8   : > { %p41_p0 = scmp.ne.s32.totalorder %s4521_s19, %s4517_s18  ;;  %p32_p1 = scmp.eq.s32.totalorder %s31_s25, 0 }
   0x9   : > { %p42_p2 = scmp.eq.s32.totalorder %s4525_s20, 0  ;;  %p47_p3 = scmp.ne.s32.totalorder %s4517_s18, %s4513_s17 }
   0xa   : > { %p48_p4 = scmp.eq.s32.totalorder %s4614_s21, 0  ;;  %p281_p7 = scmp.eq.s32.totalorder %s4614_s21, 1 }
   0xb   : > { %s4630_s26 = scalar_select %p32_p1, %s4521_s19, %s34_s24  }
   0xc   : > { %p4632_p5 = por %p42_p2, %p41_p0  ;;  %p4636_p6 = por %p48_p4, %p47_p3 }
   0xd   : > { %5441 = sst [smem:[#allocation9_spill]] %s4630_s26  ;;  %p287_p8 = scmp.eq.s32.totalorder %s3385_s22, 1 }
   0xe   : > { %p4114_p10 = scmp.lt.s32.totalorder %s4525_s20, 2  ;;  %p4643_p11 = por %p281_p7, %p41_p0 }
   0xf   : > { %p4647_p12 = por %p287_p8, %p47_p3  ;;  %s337_s12 = sand.u32 1, %s4521_s19  }
  0x10   : > { %s5444_s29 = scalar_select %p4643_p11, 1, 0 }
  0x11   : > { %s5445_s30 = scalar_select %p4647_p12, 1, 0 }
  0x12   : > { %s3552_s13 = sshll.u32 %s4525_s20, 13  ;;  %s3388_s14 = sshll.u32 %s337_s12, 9 }
  0x13   : > { %s4656_s24 = scalar_lea.hbm %s5426_s0, %s3552_s13  ;;  %s341_s22 = scalar_lea.vmem [#allocation2], %s3388_s14 }
  0x14   : > { %s348_s25 = sshll.u32 %s341_s22, 4  ;;  %p4660_p13 = pnand %p4114_p10, %p4632_p5  ;;  %s4664_s25 = int_to_ptr.vmem [resolvable:$true] %s348_s25 }
  0x15   : > { %s4666_s19 = scalar_lea.sflag [#allocation3], %s337_s12  ;;  %s4429_s15 = scalar_lea.hbm %s4656_s24, 8192 }
  0x16   : > { %p4430_p0 = scmp.ne.s32.totalorder %s4656_s24, %s4429_s15  ;;  %p4431_p1 = pneg %p4660_p13 }
  0x17   : > { %s4434_s14 = scalar_lea.hbm %s5426_s0, 16384  ;;  %p4435_p4 = scmp.lt.u32.totalorder %s4656_s24, %s5426_s0 }
  0x18   : > { %p4432_p2 = pnand %p4431_p1, %p4430_p0  ;;  %p4436_p5 = scmp.lt.u32.totalorder %s4434_s14, %s4429_s15 }
  0x19   : > { %p4438_p8 = scmp.lt.u32.totalorder %s4429_s15, %s4656_s24 }
  0x1a   : > { %p4433_p3 = pneg %p4432_p2  ;;  %p4437_p7 = por %p4436_p5, %p4435_p4 }
  0x1c   : > { %p4439_p10 = por %p4438_p8, %p4437_p7 }
  0x1e   : > { %p4440_p9 = pnand %p4439_p10, %p4433_p3 }
  0x20   : > { %4443 = shalt.err (!%p4440_p9)
}
  0x21   : > { %s4444_s12 = scalar_lea.vmem %s4664_s25, 8192  ;;  %s4527_s13 = smov [#allocation2]  }
  0x22   : > { %p4445_p0 = scmp.ne.s32.totalorder %s4664_s25, %s4444_s12  ;;  %s4449_s27 = sshll.u32 %s4527_s13, 4  ;;  %s4450_s27 = int_to_ptr.vmem [resolvable:$false] %s4449_s27 }
  0x23   : > { %s4451_s16 = scalar_lea.vmem %s4450_s27, 16384  ;;  %p4452_p11 = scmp.lt.s32.totalorder %s4664_s25, %s4450_s27 }
  0x24   : > { %p4447_p2 = pnand %p4445_p0, %p4431_p1  ;;  %p4453_p4 = scmp.lt.s32.totalorder %s4451_s16, %s4444_s12 }
  0x26   : > { %p4448_p12 = pneg %p4447_p2  ;;  %p4454_p5 = por %p4453_p4, %p4452_p11 }
  0x28   : > { %p4455_p7 = pnand %p4454_p5, %p4448_p12 }
  0x2a   : > { %4458 = shalt.err (!%p4455_p7)
}
  0x2b   : > { %s4528_s15 = smov 128   ;;  %s4529_s14 = smov 8  }
  0x2c   : > { %4109 = dma.hbm_to_vmem [thread:$0]  (!%p4660_p13), %s4656_s24, 8192, %s4664_s25, %s4666_s19, %s4528_s15, %s4528_s15, %s4529_s14  }
  0x2d   : > { %p3391_p9 = scmp.ge.s32.totalorder %s4525_s20, 1  ;;  %p356_p1 = scmp.lt.s32.totalorder %s4525_s20, 3 }
  0x2f   : > { %p357_p3 = pnand %p3391_p9, %p356_p1 }
  0x30   : > { %s4697_s22 = sand.u32 (!%p357_p3), 1, %s4517_s18  }
  0x31   : > { %360 = sbr.rel (%p357_p3) target bundleno = 1364 (0x554), region = 64  ;;  %s3392_s12 = sshll.u32 (!%p357_p3), %s4697_s22, 9 }
  0x32   : > { %s363_s13 = scalar_lea.sflag (!%p357_p3), [#allocation3], %s4697_s22  ;;  %s4703_s27 = scalar_lea.vmem (!%p357_p3), [#allocation2], %s3392_s12 }
  0x38   : > { %4504 = dma.done.wait (%p4636_p6), %s363_s13, 8192  }
  0x39   : > { %4506 = vsyncadd (%p4636_p6), %s363_s13, 4294959104  ;;  %v4152_v0 = vld [vmem:[%s5427_s1] sm:$0xff]   ;;  %v4153_v1 = vld [vmem:[%s5427_s1 + $0x8] sm:$0xff]   ;;  %vm999_vm0 = vcmask 523264   ;;  %vm1504_vm1 = vcmask 261120   ;;  %s5264_s24 = scalar_lea.vmem [#allocation5], %s3392_s12 }
  0x3a   : > { %3734 = vmatprep.subr.bf16.mxu0 %v4152_v0  ;;  %v4154_v2 = vld [vmem:[%s5427_s1 + $0x10] sm:$0xff]   ;;  %v4155_v3 = vld [vmem:[%s5427_s1 + $0x18] sm:$0xff]   ;;  %v408_v4 = vld [vmem:[%s4703_s27] sm:$0xff]  ;;  %s3553_s16 = sshll.u32 %s4614_s21, 13  ;;  %s3312_s15 = sshll.u32 %s5264_s24, 4  ;;  %s5380_s15 = int_to_ptr.vmem [resolvable:$true] %s3312_s15 }
  0x3b   : > { %3735 = vmatpush3.bf16.msra.mxu0 %v4152_v0  ;;  %v409_v5 = vld [vmem:[%s4703_s27 + $0x8] sm:$0xff]  ;;  %v4156_v7 = vld [vmem:[%s5427_s1 + $0x20] sm:$0xff]   ;;  %v4158_v9 = vld [vmem:[%s5427_s1 + $0x30] sm:$0xff]   ;;  %s5378_s13 = scalar_lea.hbm %s5437_s11, %s3553_s16  ;;  %s3299_s19 = scalar_lea.sflag [#allocation4], %s4697_s22 }
  0x3c   : > { %3736 = vmatprep.subr.bf16.mxu0 %v4153_v1  ;;  %v472_v6 = vpack.c.bf16 %v409_v5, %v408_v4  ;;  %v4157_v8 = vld [vmem:[%s5427_s1 + $0x28] sm:$0xff]   ;;  %v4159_v10 = vld [vmem:[%s5427_s1 + $0x38] sm:$0xff]   ;;  %v4160_v11 = vld [vmem:[%s5429_s3] sm:$0xff]   ;;  %p5447_p11 = scmp.ne.s32.totalorder %s5444_s29, 0  ;;  %s4530_s21 = smov [#allocation5]  }
  0x3d   : > { %4094 = vmatprep.subr.bf16.mxu1 %v4160_v11  ;;  %v410_v12 = vld [vmem:[%s4703_s27 + $0x10] sm:$0xff]  ;;  %v411_v13 = vld [vmem:[%s4703_s27 + $0x18] sm:$0xff]  ;;  %v412_v14 = vld [vmem:[%s4703_s27 + $0x20] sm:$0xff]  ;;  %s4463_s26 = sshll.u32 %s4530_s21, 4  ;;  %s4464_s26 = int_to_ptr.vmem [resolvable:$false] %s4463_s26 }
  0x3e   : > { %3750 = vmatprep.mubr.bf16.mxu0 %v472_v6  ;;  %4098 = vmatpush3.bf16.msra.mxu1 %v4160_v11  ;;  %v413_v15 = vld [vmem:[%s4703_s27 + $0x28] sm:$0xff]  ;;  %v473_v16 = vpack.c.bf16 %v411_v13, %v410_v12  ;;  %v414_v19 = vld [vmem:[%s4703_s27 + $0x30] sm:$0xff]  ;;  %v415_v20 = vld [vmem:[%s4703_s27 + $0x38] sm:$0xff]  ;;  %s4465_s12 = scalar_lea.vmem %s4464_s26, 16384  ;;  %p4466_p8 = scmp.lt.s32.totalorder %s5380_s15, %s4464_s26 }
  0x3f   : > { %3737 = vmatpush3.bf16.msra.mxu0 %v4153_v1  ;;  %v474_v17 = vpack.c.bf16 %v413_v15, %v412_v14  ;;  %v4161_v18 = vld [vmem:[%s5429_s3 + $0x8] sm:$0xff]   ;;  %v4162_v21 = vld [vmem:[%s5429_s3 + $0x10] sm:$0xff]   ;;  %v416_v22 = vld [vmem:[%s4703_s27 + $0x40] sm:$0xff]  ;;  %v475_v25 = vpack.c.bf16 %v415_v20, %v414_v19 }
  0x40   : > { %3738 = vmatprep.subr.bf16.mxu0 %v4154_v2  ;;  %4095 = vmatprep.subr.bf16.mxu1 %v4161_v18  ;;  %v417_v23 = vld [vmem:[%s4703_s27 + $0x48] sm:$0xff]  ;;  %v4163_v24 = vld [vmem:[%s5429_s3 + $0x18] sm:$0xff]   ;;  %v418_v27 = vld [vmem:[%s4703_s27 + $0x50] sm:$0xff] }
  0x41   : > { %v476_v26 = vpack.c.bf16 %v417_v23, %v416_v22  ;;  %v419_v28 = vld [vmem:[%s4703_s27 + $0x58] sm:$0xff]  ;;  %v420_v29 = vld [vmem:[%s4703_s27 + $0x60] sm:$0xff]  ;;  %v421_v30 = vld [vmem:[%s4703_s27 + $0x68] sm:$0xff] }
  0x42   : > { %4099 = vmatpush3.bf16.msra.mxu1 %v4161_v18  ;;  %v477_v31 = vpack.c.bf16 %v419_v28, %v418_v27  ;;  %v478_v32 = vpack.c.bf16 %v421_v30, %v420_v29  ;;  %v422_v33 = vld [vmem:[%s4703_s27 + $0x70] sm:$0xff]  ;;  %v423_v34 = vld [vmem:[%s4703_s27 + $0x78] sm:$0xff]  ;;  %v424_v35 = vld [vmem:[%s4703_s27 + $0x80] sm:$0xff] }
  0x43   : > { %3739 = vmatpush3.bf16.msra.mxu0 %v4154_v2  ;;  %4096 = vmatprep.subr.bf16.mxu1 %v4162_v21  ;;  %v425_v36 = vld [vmem:[%s4703_s27 + $0x88] sm:$0xff]  ;;  %v479_v37 = vpack.c.bf16 %v423_v34, %v422_v33  ;;  %v426_v39 = vld [vmem:[%s4703_s27 + $0x90] sm:$0xff]  ;;  %v427_v40 = vld [vmem:[%s4703_s27 + $0x98] sm:$0xff] }
  0x44   : > { %3740 = vmatprep.subr.bf16.mxu0 %v4155_v3  ;;  %v480_v38 = vpack.c.bf16 %v425_v36, %v424_v35  ;;  %v428_v41 = vld [vmem:[%s4703_s27 + $0xa0] sm:$0xff]  ;;  %v429_v42 = vld [vmem:[%s4703_s27 + $0xa8] sm:$0xff]  ;;  %v481_v43 = vpack.c.bf16 %v427_v40, %v426_v39  ;;  %v430_v45 = vld [vmem:[%s4703_s27 + $0xb0] sm:$0xff] }
  0x45   : > { %v482_v44 = vpack.c.bf16 %v429_v42, %v428_v41  ;;  %v431_v46 = vld [vmem:[%s4703_s27 + $0xb8] sm:$0xff]  ;;  %v432_v47 = vld [vmem:[%s4703_s27 + $0xc0] sm:$0xff]  ;;  %v433_v48 = vld [vmem:[%s4703_s27 + $0xc8] sm:$0xff] }
  0x46   : > { %4100 = vmatpush3.bf16.msra.mxu1 %v4162_v21  ;;  %v483_v49 = vpack.c.bf16 %v431_v46, %v430_v45  ;;  %v484_v50 = vpack.c.bf16 %v433_v48, %v432_v47  ;;  %v434_v51 = vld [vmem:[%s4703_s27 + $0xd0] sm:$0xff]  ;;  %v435_v52 = vld [vmem:[%s4703_s27 + $0xd8] sm:$0xff]  ;;  %v436_v53 = vld [vmem:[%s4703_s27 + $0xe0] sm:$0xff] }
  0x47   : > { %3741 = vmatpush3.bf16.msra.mxu0 %v4155_v3  ;;  %4097 = vmatprep.subr.bf16.mxu1 %v4163_v24  ;;  %v437_v54 = vld [vmem:[%s4703_s27 + $0xe8] sm:$0xff]  ;;  %v485_v55 = vpack.c.bf16 %v435_v52, %v434_v51  ;;  %v438_v57 = vld [vmem:[%s4703_s27 + $0xf0] sm:$0xff]  ;;  %v439_v58 = vld [vmem:[%s4703_s27 + $0xf8] sm:$0xff] }
  0x48   : > { %3742 = vmatprep.subr.bf16.mxu0 %v4156_v7  ;;  %v486_v56 = vpack.c.bf16 %v437_v54, %v436_v53  ;;  %v440_v59 = vld [vmem:[%s4703_s27 + $0x100] sm:$0xff]  ;;  %v441_v60 = vld [vmem:[%s4703_s27 + $0x108] sm:$0xff]  ;;  %v487_v61 = vpack.c.bf16 %v439_v58, %v438_v57  ;;  %v442_v63 = vld [vmem:[%s4703_s27 + $0x110] sm:$0xff] }
  0x49   : > { %v488_v62 = vpack.c.bf16 %v441_v60, %v440_v59  ;;  %v443_v0 = vld [vmem:[%s4703_s27 + $0x118] sm:$0xff]  ;;  %v444_v1 = vld [vmem:[%s4703_s27 + $0x120] sm:$0xff]  ;;  %v445_v2 = vld [vmem:[%s4703_s27 + $0x128] sm:$0xff] }
  0x4a   : > { %4101 = vmatpush3.bf16.msra.mxu1 %v4163_v24  ;;  %v489_v3 = vpack.c.bf16 %v443_v0, %v442_v63  ;;  %v490_v4 = vpack.c.bf16 %v445_v2, %v444_v1  ;;  %v446_v5 = vld [vmem:[%s4703_s27 + $0x130] sm:$0xff]  ;;  %v447_v6 = vld [vmem:[%s4703_s27 + $0x138] sm:$0xff]  ;;  %v452_v13 = vld [vmem:[%s4703_s27 + $0x160] sm:$0xff] }
  0x4b   : > { %3743 = vmatpush3.bf16.msra.mxu0 %v4156_v7  ;;  %v448_v7 = vld [vmem:[%s4703_s27 + $0x140] sm:$0xff]  ;;  %v451_v12 = vld [vmem:[%s4703_s27 + $0x158] sm:$0xff]  ;;  %v453_v14 = vld [vmem:[%s4703_s27 + $0x168] sm:$0xff] }
  0x4c   : > { %3744 = vmatprep.subr.bf16.mxu0 %v4157_v8  ;;  %v456_v19 = vld [vmem:[%s4703_s27 + $0x180] sm:$0xff]  ;;  %v457_v20 = vld [vmem:[%s4703_s27 + $0x188] sm:$0xff]  ;;  %v458_v23 = vld [vmem:[%s4703_s27 + $0x190] sm:$0xff] }
  0x4d   : > { %v496_v22 = vpack.c.bf16 %v457_v20, %v456_v19  ;;  %v462_v29 = vld [vmem:[%s4703_s27 + $0x1b0] sm:$0xff]  ;;  %v463_v30 = vld [vmem:[%s4703_s27 + $0x1b8] sm:$0xff]  ;;  %v4820_v52 = vld [vmem:[%s5431_s5] sm:$0xff]  }
  0x4e   : > { %v499_v33 = vpack.c.bf16 %v463_v30, %v462_v29  ;;  %v466_v35 = vld [vmem:[%s4703_s27 + $0x1d0] sm:$0xff]  ;;  %v467_v36 = vld [vmem:[%s4703_s27 + $0x1d8] sm:$0xff]  ;;  %3886 = vmatprep.subr.bf16.mxu1 %v4820_v52 }
  0x4f   : > { %3745 = vmatpush3.bf16.msra.mxu0 %v4157_v8  ;;  %v449_v8 = vld [vmem:[%s4703_s27 + $0x148] sm:$0xff]  ;;  %v501_v39 = vpack.c.bf16 %v467_v36, %v466_v35  ;;  %v470_v41 = vld [vmem:[%s4703_s27 + $0x1f0] sm:$0xff]  ;;  %v471_v42 = vld [vmem:[%s4703_s27 + $0x1f8] sm:$0xff] }
  0x50   : > { %3746 = vmatprep.subr.bf16.mxu0 %v4158_v9 }
  0x53   : > { %3747 = vmatpush3.bf16.msra.mxu0 %v4158_v9  ;;  %v491_v9 = vpack.c.bf16 %v447_v6, %v446_v5 }
  0x54   : > { %3748 = vmatprep.subr.bf16.mxu0 %v4159_v10 }
  0x57   : > { %3749 = vmatpush3.bf16.msra.mxu0 %v4159_v10  ;;  %v492_v10 = vpack.c.bf16 %v449_v8, %v448_v7 }
  0x58   : > { %3814 = vmatprep.subr.bf16.mxu0 %v4160_v11 }
  0x5a   : > { %3751 = vmatmul.mubr.bf16.vlgmr.msra.gmra.mrb[0].mxu0 %v473_v16  ;;  %v494_v16 = vpack.c.bf16 %v453_v14, %v452_v13 }
  0x5b   : > { %3754 = vmatprep.mubr.bf16.mxu0 %v474_v17  ;;  %3815 = vmatpush3.bf16.msra.mxu0 %v4160_v11  ;;  %v450_v11 = vld [vmem:[%s4703_s27 + $0x150] sm:$0xff] }
  0x5c   : > { %3816 = vmatprep.subr.bf16.mxu0 %v4161_v18  ;;  %v493_v15 = vpack.c.bf16 %v451_v12, %v450_v11  ;;  %v454_v17 = vld [vmem:[%s4703_s27 + $0x170] sm:$0xff] }
  0x5f   : > { %3817 = vmatpush3.bf16.msra.mxu0 %v4161_v18  ;;  %v455_v18 = vld [vmem:[%s4703_s27 + $0x178] sm:$0xff] }
  0x60   : > { %3818 = vmatprep.subr.bf16.mxu0 %v4162_v21 }
  0x62   : > { %3755 = vmatmul.mubr.bf16.gmra.mrb[4].mxu0 %v475_v25  ;;  %v460_v25 = vld [vmem:[%s4703_s27 + $0x1a0] sm:$0xff] }
  0x63   : > { %3758 = vmatprep.mubr.bf16.mxu0 %v476_v26  ;;  %3819 = vmatpush3.bf16.msra.mxu0 %v4162_v21  ;;  %v495_v21 = vpack.c.bf16 %v455_v18, %v454_v17  ;;  %v461_v26 = vld [vmem:[%s4703_s27 + $0x1a8] sm:$0xff] }
  0x64   : > { %3820 = vmatprep.subr.bf16.mxu0 %v4163_v24  ;;  %v498_v28 = vpack.c.bf16 %v461_v26, %v460_v25 }
  0x67   : > { %3821 = vmatpush3.bf16.msra.mxu0 %v4163_v24  ;;  %v459_v24 = vld [vmem:[%s4703_s27 + $0x198] sm:$0xff] }
  0x68   : > { %v497_v27 = vpack.c.bf16 %v459_v24, %v458_v23 }
  0x6a   : > { %3759 = vmatmul.mubr.bf16.gmra.mrb[8].mxu0 %v477_v31  ;;  %v464_v31 = vld [vmem:[%s4703_s27 + $0x1c0] sm:$0xff] }
  0x6b   : > { %3762 = vmatprep.mubr.bf16.mxu0 %v478_v32  ;;  %v465_v32 = vld [vmem:[%s4703_s27 + $0x1c8] sm:$0xff] }
  0x6c   : > { %v500_v34 = vpack.c.bf16 %v465_v32, %v464_v31 }
  0x72   : > { %3763 = vmatmul.mubr.bf16.gmra.mrb[12].mxu0 %v479_v37  ;;  %v468_v37 = vld [vmem:[%s4703_s27 + $0x1e0] sm:$0xff] }
  0x73   : > { %3766 = vmatprep.mubr.bf16.mxu0 %v480_v38  ;;  %v469_v38 = vld [vmem:[%s4703_s27 + $0x1e8] sm:$0xff]  ;;  %s4459_s27 = scalar_lea.vmem %s5380_s15, 8192 }
  0x74   : > { %v502_v40 = vpack.c.bf16 %v469_v38, %v468_v37  ;;  %p4460_p6 = scmp.ne.s32.totalorder %s5380_s15, %s4459_s27  ;;  %p4467_p10 = scmp.lt.s32.totalorder %s4465_s12, %s4459_s27 }
  0x76   : > { %p4461_p12 = pnand %p4460_p6, %p5447_p11  ;;  %p4468_p0 = por %p4467_p10, %p4466_p8 }
  0x78   : > { %p4462_p13 = pneg %p4461_p12 }
  0x7a   : > { %3767 = vmatmul.mubr.bf16.gmra.mrb[16].mxu0 %v481_v43  ;;  %v503_v43 = vpack.c.bf16 %v471_v42, %v470_v41  ;;  %p4469_p2 = pnand %p4468_p0, %p4462_p13 }
  0x7b   : > { %3770 = vmatprep.mubr.bf16.mxu0 %v482_v44  ;;  %v4812_v44 = vld [vmem:[%s5428_s2] ss:$0 sm:$0xff] }
  0x82   : > { %3771 = vmatmul.mubr.bf16.gmra.mrb[20].mxu0 %v483_v49 }
  0x83   : > { %3774 = vmatprep.mubr.bf16.mxu0 %v484_v50 }
  0x8a   : > { %3775 = vmatmul.mubr.bf16.gmra.mrb[24].mxu0 %v485_v55 }
  0x8b   : > { %3778 = vmatprep.mubr.bf16.mxu0 %v486_v56 }
  0x92   : > { %3779 = vmatmul.mubr.bf16.gmra.mrb[28].mxu0 %v487_v61 }
  0x93   : > { %3782 = vmatprep.mubr.bf16.mxu0 %v488_v62 }
  0x9a   : > { %3783 = vmatmul.mubr.bf16.gmra.mrb[32].mxu0 %v489_v3 }
  0x9b   : > { %3786 = vmatprep.mubr.bf16.mxu0 %v490_v4 }
  0xa2   : > { %3787 = vmatmul.mubr.bf16.gmra.mrb[36].mxu0 %v491_v9 }
  0xa3   : > { %3790 = vmatprep.mubr.bf16.mxu0 %v492_v10 }
  0xaa   : > { %3791 = vmatmul.mubr.bf16.gmra.mrb[40].mxu0 %v493_v15 }
  0xab   : > { %3794 = vmatprep.mubr.bf16.mxu0 %v494_v16 }
  0xb2   : > { %3795 = vmatmul.mubr.bf16.gmra.mrb[44].mxu0 %v495_v21 }
  0xb3   : > { %3798 = vmatprep.mubr.bf16.mxu0 %v496_v22 }
  0xba   : > { %3799 = vmatmul.mubr.bf16.gmra.mrb[48].mxu0 %v497_v27 }
  0xbb   : > { %3802 = vmatprep.mubr.bf16.mxu0 %v498_v28 }
  0xc2   : > { %3803 = vmatmul.mubr.bf16.gmra.mrb[52].mxu0 %v499_v33 }
  0xc3   : > { %3806 = vmatprep.mubr.bf16.mxu0 %v500_v34 }
  0xca   : > { %3807 = vmatmul.mubr.bf16.gmra.mrb[56].mxu0 %v501_v39 }
  0xcb   : > { %3810 = vmatprep.mubr.bf16.mxu0 %v502_v40 }
  0xd2   : > { %3811 = vmatmul.mubr.bf16.gmra.mrb[60].mxu0 %v503_v43 }
 0x12d   : > { %v3752_v45 = vpop.f32.mrb[0].mxu0 }
 0x12e   : > { %v618_v46 = vadd.f32 %v3752_v45, %v4812_v44  ;;  %v609_v47 = vpop.f32.mrb[1].mxu0 }
 0x12f   : > { %v610_v48 = vadd.f32 %v4812_v44, %v609_v47  ;;  %v3753_v49 = vpop.f32.mrb[2].mxu0 }
 0x130   : > { %v621_v50 = vadd.f32 %v3753_v49, %v4812_v44  ;;  %v612_v51 = vpop.f32.mrb[3].mxu0  ;;  %v866_v54 = vmax.f32 %v618_v46, 0.0 }
 0x131   : > { %v613_v53 = vadd.f32 %v4812_v44, %v612_v51  ;;  %v864_v56 = vmax.f32 %v610_v48, 0.0 }
 0x132   : > { %v867_v55 = vmax.f32 %v621_v50, 0.0 }
 0x133   : > { %v865_v57 = vmax.f32 %v613_v53, 0.0 }
 0x134   : > { %v929_v58 = vpack.c.bf16 %v867_v55, %v866_v54 }
 0x135   : > { %v928_v59 = vpack.c.bf16 %v865_v57, %v864_v56  ;;  %v3756_v60 = vpop.f32.mrb[4].mxu0 }
 0x136   : > { %v634_v61 = vadd.f32 %v3756_v60, %v4812_v44  ;;  %v625_v62 = vpop.f32.mrb[5].mxu0 }
 0x137   : > { %v626_v63 = vadd.f32 %v4812_v44, %v625_v62  ;;  %v3757_v0 = vpop.f32.mrb[6].mxu0  ;;  %3822 = vmatprep.mubr.msk.bf16.mxu0 %vm999_vm0, %v928_v59 }
 0x138   : > { %v637_v1 = vadd.f32 %v3757_v0, %v4812_v44  ;;  %v628_v2 = vpop.f32.mrb[7].mxu0  ;;  %3823 = vmatmul.mubr.msk.bf16.vlgmr.msra.gmra.mrb[64].mxu0 %vm999_vm0, %v929_v58  ;;  %v870_v4 = vmax.f32 %v634_v61, 0.0 }
 0x139   : > { %v629_v3 = vadd.f32 %v4812_v44, %v628_v2  ;;  %v868_v6 = vmax.f32 %v626_v63, 0.0 }
 0x13a   : > { %v871_v5 = vmax.f32 %v637_v1, 0.0 }
 0x13b   : > { %v869_v7 = vmax.f32 %v629_v3, 0.0 }
 0x13c   : > { %v931_v8 = vpack.c.bf16 %v871_v5, %v870_v4 }
 0x13d   : > { %v930_v9 = vpack.c.bf16 %v869_v7, %v868_v6  ;;  %v3760_v10 = vpop.f32.mrb[8].mxu0 }
 0x13e   : > { %v650_v11 = vadd.f32 %v3760_v10, %v4812_v44  ;;  %v641_v12 = vpop.f32.mrb[9].mxu0 }
 0x13f   : > { %v642_v13 = vadd.f32 %v4812_v44, %v641_v12  ;;  %v3761_v14 = vpop.f32.mrb[10].mxu0  ;;  %3826 = vmatprep.mubr.msk.bf16.mxu0 %vm999_vm0, %v930_v9 }
 0x140   : > { %v653_v15 = vadd.f32 %v3761_v14, %v4812_v44  ;;  %v644_v16 = vpop.f32.mrb[11].mxu0  ;;  %3827 = vmatmul.mubr.msk.bf16.gmra.mrb[68].mxu0 %vm999_vm0, %v931_v8  ;;  %v874_v18 = vmax.f32 %v650_v11, 0.0 }
 0x141   : > { %v645_v17 = vadd.f32 %v4812_v44, %v644_v16  ;;  %v872_v20 = vmax.f32 %v642_v13, 0.0 }
 0x142   : > { %v875_v19 = vmax.f32 %v653_v15, 0.0 }
 0x143   : > { %v873_v21 = vmax.f32 %v645_v17, 0.0 }
 0x144   : > { %v933_v22 = vpack.c.bf16 %v875_v19, %v874_v18 }
 0x145   : > { %v932_v23 = vpack.c.bf16 %v873_v21, %v872_v20  ;;  %v3764_v24 = vpop.f32.mrb[12].mxu0 }
 0x146   : > { %v666_v25 = vadd.f32 %v3764_v24, %v4812_v44  ;;  %v657_v26 = vpop.f32.mrb[13].mxu0 }
 0x147   : > { %v658_v27 = vadd.f32 %v4812_v44, %v657_v26  ;;  %v3765_v28 = vpop.f32.mrb[14].mxu0  ;;  %3830 = vmatprep.mubr.msk.bf16.mxu0 %vm999_vm0, %v932_v23 }
 0x148   : > { %v669_v29 = vadd.f32 %v3765_v28, %v4812_v44  ;;  %v660_v30 = vpop.f32.mrb[15].mxu0  ;;  %3831 = vmatmul.mubr.msk.bf16.gmra.mrb[72].mxu0 %vm999_vm0, %v933_v22  ;;  %v878_v32 = vmax.f32 %v666_v25, 0.0 }
 0x149   : > { %v661_v31 = vadd.f32 %v4812_v44, %v660_v30  ;;  %v876_v34 = vmax.f32 %v658_v27, 0.0 }
 0x14a   : > { %v879_v33 = vmax.f32 %v669_v29, 0.0 }
 0x14b   : > { %v877_v35 = vmax.f32 %v661_v31, 0.0 }
 0x14c   : > { %v935_v36 = vpack.c.bf16 %v879_v33, %v878_v32 }
 0x14d   : > { %v934_v37 = vpack.c.bf16 %v877_v35, %v876_v34  ;;  %v3768_v38 = vpop.f32.mrb[16].mxu0  ;;  %v4165_v35 = vld [vmem:[%s5431_s5 + $0x8] sm:$0xff]  }
 0x14e   : > { %v682_v39 = vadd.f32 %v3768_v38, %v4812_v44  ;;  %v673_v40 = vpop.f32.mrb[17].mxu0 }
 0x14f   : > { %v674_v41 = vadd.f32 %v4812_v44, %v673_v40  ;;  %v3769_v42 = vpop.f32.mrb[18].mxu0  ;;  %3834 = vmatprep.mubr.msk.bf16.mxu0 %vm999_vm0, %v934_v37 }
 0x150   : > { %v685_v43 = vadd.f32 %v3769_v42, %v4812_v44  ;;  %v676_v45 = vpop.f32.mrb[19].mxu0  ;;  %3835 = vmatmul.mubr.msk.bf16.gmra.mrb[76].mxu0 %vm999_vm0, %v935_v36  ;;  %v882_v47 = vmax.f32 %v682_v39, 0.0 }
 0x151   : > { %v677_v46 = vadd.f32 %v4812_v44, %v676_v45  ;;  %v880_v49 = vmax.f32 %v674_v41, 0.0 }
 0x152   : > { %v883_v48 = vmax.f32 %v685_v43, 0.0 }
 0x153   : > { %v881_v50 = vmax.f32 %v677_v46, 0.0 }
 0x154   : > { %v937_v51 = vpack.c.bf16 %v883_v48, %v882_v47 }
 0x155   : > { %v936_v53 = vpack.c.bf16 %v881_v50, %v880_v49  ;;  %v3772_v54 = vpop.f32.mrb[20].mxu0 }
 0x156   : > { %v698_v55 = vadd.f32 %v3772_v54, %v4812_v44  ;;  %v689_v56 = vpop.f32.mrb[21].mxu0 }
 0x157   : > { %v690_v57 = vadd.f32 %v4812_v44, %v689_v56  ;;  %v3773_v58 = vpop.f32.mrb[22].mxu0  ;;  %3838 = vmatprep.mubr.msk.bf16.mxu0 %vm999_vm0, %v936_v53 }
 0x158   : > { %v701_v59 = vadd.f32 %v3773_v58, %v4812_v44  ;;  %v692_v60 = vpop.f32.mrb[23].mxu0  ;;  %3839 = vmatmul.mubr.msk.bf16.gmra.mrb[80].mxu0 %vm999_vm0, %v937_v51  ;;  %v886_v62 = vmax.f32 %v698_v55, 0.0 }
 0x159   : > { %v693_v61 = vadd.f32 %v4812_v44, %v692_v60  ;;  %v884_v0 = vmax.f32 %v690_v57, 0.0 }
 0x15a   : > { %v887_v63 = vmax.f32 %v701_v59, 0.0 }
 0x15b   : > { %v885_v1 = vmax.f32 %v693_v61, 0.0 }
 0x15c   : > { %v939_v2 = vpack.c.bf16 %v887_v63, %v886_v62 }
 0x15d   : > { %v938_v3 = vpack.c.bf16 %v885_v1, %v884_v0  ;;  %v3776_v4 = vpop.f32.mrb[24].mxu0 }
 0x15e   : > { %v714_v5 = vadd.f32 %v3776_v4, %v4812_v44  ;;  %v705_v6 = vpop.f32.mrb[25].mxu0 }
 0x15f   : > { %v706_v7 = vadd.f32 %v4812_v44, %v705_v6  ;;  %v3777_v8 = vpop.f32.mrb[26].mxu0  ;;  %3842 = vmatprep.mubr.msk.bf16.mxu0 %vm999_vm0, %v938_v3 }
 0x160   : > { %v717_v9 = vadd.f32 %v3777_v8, %v4812_v44  ;;  %v708_v10 = vpop.f32.mrb[27].mxu0  ;;  %3843 = vmatmul.mubr.msk.bf16.gmra.mrb[84].mxu0 %vm999_vm0, %v939_v2  ;;  %v890_v12 = vmax.f32 %v714_v5, 0.0 }
 0x161   : > { %v709_v11 = vadd.f32 %v4812_v44, %v708_v10  ;;  %v888_v14 = vmax.f32 %v706_v7, 0.0 }
 0x162   : > { %v891_v13 = vmax.f32 %v717_v9, 0.0 }
 0x163   : > { %v889_v15 = vmax.f32 %v709_v11, 0.0 }
 0x164   : > { %v941_v16 = vpack.c.bf16 %v891_v13, %v890_v12 }
 0x165   : > { %v940_v17 = vpack.c.bf16 %v889_v15, %v888_v14  ;;  %v3780_v18 = vpop.f32.mrb[28].mxu0 }
 0x166   : > { %v730_v19 = vadd.f32 %v3780_v18, %v4812_v44  ;;  %v721_v20 = vpop.f32.mrb[29].mxu0 }
 0x167   : > { %v722_v21 = vadd.f32 %v4812_v44, %v721_v20  ;;  %v3781_v22 = vpop.f32.mrb[30].mxu0  ;;  %3846 = vmatprep.mubr.msk.bf16.mxu0 %vm999_vm0, %v940_v17 }
 0x168   : > { %v733_v23 = vadd.f32 %v3781_v22, %v4812_v44  ;;  %v724_v24 = vpop.f32.mrb[31].mxu0  ;;  %3847 = vmatmul.mubr.msk.bf16.gmra.mrb[88].mxu0 %vm999_vm0, %v941_v16  ;;  %v894_v26 = vmax.f32 %v730_v19, 0.0 }
 0x169   : > { %v725_v25 = vadd.f32 %v4812_v44, %v724_v24  ;;  %v892_v28 = vmax.f32 %v722_v21, 0.0 }
 0x16a   : > { %v895_v27 = vmax.f32 %v733_v23, 0.0 }
 0x16b   : > { %v893_v29 = vmax.f32 %v725_v25, 0.0 }
 0x16c   : > { %v943_v30 = vpack.c.bf16 %v895_v27, %v894_v26 }
 0x16d   : > { %v3784_v31 = vpop.f32.mrb[32].mxu0  ;;  %v942_v32 = vpack.c.bf16 %v893_v29, %v892_v28 }
 0x16e   : > { %v746_v33 = vadd.f32 %v3784_v31, %v4812_v44  ;;  %v737_v34 = vpop.f32.mrb[33].mxu0 }
 0x16f   : > { %v738_v36 = vadd.f32 %v4812_v44, %v737_v34  ;;  %v3785_v37 = vpop.f32.mrb[34].mxu0  ;;  %3850 = vmatprep.mubr.msk.bf16.mxu1 %vm999_vm0, %v942_v32 }
 0x170   : > { %v749_v38 = vadd.f32 %v3785_v37, %v4812_v44  ;;  %v740_v39 = vpop.f32.mrb[35].mxu0  ;;  %3851 = vmatmul.mubr.msk.bf16.vlgmr.msra.gmra.mrb[0].mxu1 %vm999_vm0, %v943_v30  ;;  %v898_v41 = vmax.f32 %v746_v33, 0.0 }
 0x171   : > { %v741_v40 = vadd.f32 %v4812_v44, %v740_v39  ;;  %3887 = vmatpush3.bf16.msra.mxu1 %v4820_v52  ;;  %v896_v43 = vmax.f32 %v738_v36, 0.0 }
 0x172   : > { %v899_v42 = vmax.f32 %v749_v38, 0.0  ;;  %3888 = vmatprep.subr.bf16.mxu1 %v4165_v35 }
 0x173   : > { %v897_v45 = vmax.f32 %v741_v40, 0.0 }
 0x174   : > { %v945_v46 = vpack.c.bf16 %v899_v42, %v898_v41 }
 0x175   : > { %v944_v47 = vpack.c.bf16 %v897_v45, %v896_v43  ;;  %v3788_v48 = vpop.f32.mrb[36].mxu0  ;;  %3889 = vmatpush3.bf16.msra.mxu1 %v4165_v35 }
 0x176   : > { %v762_v49 = vadd.f32 %v3788_v48, %v4812_v44  ;;  %v753_v50 = vpop.f32.mrb[37].mxu0 }
 0x177   : > { %v754_v51 = vadd.f32 %v4812_v44, %v753_v50  ;;  %v3789_v53 = vpop.f32.mrb[38].mxu0  ;;  %3854 = vmatprep.mubr.msk.bf16.mxu1 %vm999_vm0, %v944_v47 }
 0x178   : > { %v765_v54 = vadd.f32 %v3789_v53, %v4812_v44  ;;  %v756_v52 = vpop.f32.mrb[39].mxu0  ;;  %3855 = vmatmul.mubr.msk.bf16.gmra.mrb[4].mxu1 %vm999_vm0, %v945_v46  ;;  %v902_v56 = vmax.f32 %v762_v49, 0.0 }
 0x179   : > { %v757_v55 = vadd.f32 %v4812_v44, %v756_v52  ;;  %v900_v58 = vmax.f32 %v754_v51, 0.0 }
 0x17a   : > { %v903_v57 = vmax.f32 %v765_v54, 0.0 }
 0x17b   : > { %v901_v59 = vmax.f32 %v757_v55, 0.0 }
 0x17c   : > { %v947_v60 = vpack.c.bf16 %v903_v57, %v902_v56 }
 0x17d   : > { %v946_v61 = vpack.c.bf16 %v901_v59, %v900_v58  ;;  %v3792_v62 = vpop.f32.mrb[40].mxu0 }
 0x17e   : > { %v778_v63 = vadd.f32 %v3792_v62, %v4812_v44  ;;  %v769_v0 = vpop.f32.mrb[41].mxu0 }
 0x17f   : > { %v770_v1 = vadd.f32 %v4812_v44, %v769_v0  ;;  %v3793_v2 = vpop.f32.mrb[42].mxu0  ;;  %3858 = vmatprep.mubr.msk.bf16.mxu1 %vm999_vm0, %v946_v61 }
 0x180   : > { %v781_v3 = vadd.f32 %v3793_v2, %v4812_v44  ;;  %v772_v4 = vpop.f32.mrb[43].mxu0  ;;  %3859 = vmatmul.mubr.msk.bf16.gmra.mrb[8].mxu1 %vm999_vm0, %v947_v60  ;;  %v906_v6 = vmax.f32 %v778_v63, 0.0 }
 0x181   : > { %v773_v5 = vadd.f32 %v4812_v44, %v772_v4  ;;  %v904_v8 = vmax.f32 %v770_v1, 0.0 }
 0x182   : > { %v907_v7 = vmax.f32 %v781_v3, 0.0 }
 0x183   : > { %v905_v9 = vmax.f32 %v773_v5, 0.0 }
 0x184   : > { %v949_v10 = vpack.c.bf16 %v907_v7, %v906_v6 }
 0x185   : > { %v948_v11 = vpack.c.bf16 %v905_v9, %v904_v8  ;;  %v3796_v12 = vpop.f32.mrb[44].mxu0 }
 0x186   : > { %v794_v13 = vadd.f32 %v3796_v12, %v4812_v44  ;;  %v785_v14 = vpop.f32.mrb[45].mxu0 }
 0x187   : > { %v786_v15 = vadd.f32 %v4812_v44, %v785_v14  ;;  %v3797_v16 = vpop.f32.mrb[46].mxu0  ;;  %3862 = vmatprep.mubr.msk.bf16.mxu1 %vm999_vm0, %v948_v11 }
 0x188   : > { %v797_v17 = vadd.f32 %v3797_v16, %v4812_v44  ;;  %v788_v18 = vpop.f32.mrb[47].mxu0  ;;  %3863 = vmatmul.mubr.msk.bf16.gmra.mrb[12].mxu1 %vm999_vm0, %v949_v10  ;;  %v910_v20 = vmax.f32 %v794_v13, 0.0 }
 0x189   : > { %v789_v19 = vadd.f32 %v4812_v44, %v788_v18  ;;  %v908_v22 = vmax.f32 %v786_v15, 0.0 }
 0x18a   : > { %v911_v21 = vmax.f32 %v797_v17, 0.0 }
 0x18b   : > { %v909_v23 = vmax.f32 %v789_v19, 0.0  ;;  %v4923_v19 = vld [vmem:[%s5430_s4] ss:$0 sm:$0xff] }
 0x18c   : > { %v951_v24 = vpack.c.bf16 %v911_v21, %v910_v20 }
 0x18d   : > { %v950_v25 = vpack.c.bf16 %v909_v23, %v908_v22  ;;  %v3800_v26 = vpop.f32.mrb[48].mxu0 }
 0x18e   : > { %v810_v27 = vadd.f32 %v3800_v26, %v4812_v44  ;;  %v801_v28 = vpop.f32.mrb[49].mxu0  ;;  %v4166_v26 = vld [vmem:[%s5433_s7] sm:$0xff]  }
 0x18f   : > { %v802_v29 = vadd.f32 %v4812_v44, %v801_v28  ;;  %v3801_v30 = vpop.f32.mrb[50].mxu0  ;;  %3866 = vmatprep.mubr.msk.bf16.mxu1 %vm999_vm0, %v950_v25  ;;  %3954 = vmatprep.subr.bf16.mxu0 %v4166_v26 }
 0x190   : > { %v813_v31 = vadd.f32 %v3801_v30, %v4812_v44  ;;  %v804_v32 = vpop.f32.mrb[51].mxu0  ;;  %3867 = vmatmul.mubr.msk.bf16.gmra.mrb[16].mxu1 %vm999_vm0, %v951_v24  ;;  %v914_v34 = vmax.f32 %v810_v27, 0.0  ;;  %v4167_v27 = vld [vmem:[%s5433_s7 + $0x8] sm:$0xff]   ;;  %3955 = vmatpush3.bf16.msra.mxu0 %v4166_v26 }
 0x191   : > { %v805_v33 = vadd.f32 %v4812_v44, %v804_v32  ;;  %v912_v36 = vmax.f32 %v802_v29, 0.0  ;;  %3956 = vmatprep.subr.bf16.mxu0 %v4167_v27 }
 0x192   : > { %v915_v35 = vmax.f32 %v813_v31, 0.0 }
 0x193   : > { %v913_v37 = vmax.f32 %v805_v33, 0.0 }
 0x194   : > { %v953_v38 = vpack.c.bf16 %v915_v35, %v914_v34  ;;  %3957 = vmatpush3.bf16.msra.mxu0 %v4167_v27 }
 0x195   : > { %v952_v39 = vpack.c.bf16 %v913_v37, %v912_v36  ;;  %v3804_v40 = vpop.f32.mrb[52].mxu0 }
 0x196   : > { %v826_v41 = vadd.f32 %v3804_v40, %v4812_v44  ;;  %v817_v42 = vpop.f32.mrb[53].mxu0 }
 0x197   : > { %v818_v43 = vadd.f32 %v4812_v44, %v817_v42  ;;  %v3805_v45 = vpop.f32.mrb[54].mxu0  ;;  %3870 = vmatprep.mubr.msk.bf16.mxu1 %vm999_vm0, %v952_v39 }
 0x198   : > { %v829_v46 = vadd.f32 %v3805_v45, %v4812_v44  ;;  %v820_v47 = vpop.f32.mrb[55].mxu0  ;;  %3871 = vmatmul.mubr.msk.bf16.gmra.mrb[20].mxu1 %vm999_vm0, %v953_v38  ;;  %v918_v49 = vmax.f32 %v826_v41, 0.0 }
 0x199   : > { %v821_v48 = vadd.f32 %v4812_v44, %v820_v47  ;;  %v916_v51 = vmax.f32 %v818_v43, 0.0 }
 0x19a   : > { %v919_v50 = vmax.f32 %v829_v46, 0.0 }
 0x19b   : > { %v917_v53 = vmax.f32 %v821_v48, 0.0 }
 0x19c   : > { %v955_v54 = vpack.c.bf16 %v919_v50, %v918_v49 }
 0x19d   : > { %v954_v52 = vpack.c.bf16 %v917_v53, %v916_v51  ;;  %v3808_v55 = vpop.f32.mrb[56].mxu0 }
 0x19e   : > { %v842_v56 = vadd.f32 %v3808_v55, %v4812_v44  ;;  %v833_v57 = vpop.f32.mrb[57].mxu0 }
 0x19f   : > { %v834_v58 = vadd.f32 %v4812_v44, %v833_v57  ;;  %v3809_v59 = vpop.f32.mrb[58].mxu0  ;;  %3874 = vmatprep.mubr.msk.bf16.mxu1 %vm999_vm0, %v954_v52 }
 0x1a0   : > { %v845_v60 = vadd.f32 %v3809_v59, %v4812_v44  ;;  %v836_v61 = vpop.f32.mrb[59].mxu0  ;;  %3875 = vmatmul.mubr.msk.bf16.gmra.mrb[24].mxu1 %vm999_vm0, %v955_v54  ;;  %v922_v63 = vmax.f32 %v842_v56, 0.0 }
 0x1a1   : > { %v837_v62 = vadd.f32 %v4812_v44, %v836_v61  ;;  %v920_v1 = vmax.f32 %v834_v58, 0.0 }
 0x1a2   : > { %v923_v0 = vmax.f32 %v845_v60, 0.0 }
 0x1a3   : > { %v921_v2 = vmax.f32 %v837_v62, 0.0 }
 0x1a4   : > { %v957_v3 = vpack.c.bf16 %v923_v0, %v922_v63 }
 0x1a5   : > { %v956_v4 = vpack.c.bf16 %v921_v2, %v920_v1  ;;  %v3812_v5 = vpop.f32.mrb[60].mxu0 }
 0x1a6   : > { %v858_v6 = vadd.f32 %v3812_v5, %v4812_v44  ;;  %v849_v7 = vpop.f32.mrb[61].mxu0 }
 0x1a7   : > { %v850_v8 = vadd.f32 %v4812_v44, %v849_v7  ;;  %v3813_v9 = vpop.f32.mrb[62].mxu0  ;;  %3878 = vmatprep.mubr.msk.bf16.mxu1 %vm999_vm0, %v956_v4 }
 0x1a8   : > { %v861_v10 = vadd.f32 %v3813_v9, %v4812_v44  ;;  %v852_v11 = vpop.f32.mrb[63].mxu0  ;;  %3879 = vmatmul.mubr.msk.bf16.gmra.mrb[28].mxu1 %vm999_vm0, %v957_v3  ;;  %v926_v13 = vmax.f32 %v858_v6, 0.0 }
 0x1a9   : > { %v853_v12 = vadd.f32 %v4812_v44, %v852_v11  ;;  %v924_v15 = vmax.f32 %v850_v8, 0.0 }
 0x1aa   : > { %v927_v14 = vmax.f32 %v861_v10, 0.0 }
 0x1ab   : > { %v925_v16 = vmax.f32 %v853_v12, 0.0 }
 0x1ac   : > { %v959_v17 = vpack.c.bf16 %v927_v14, %v926_v13 }
 0x1ad   : > { %v958_v18 = vpack.c.bf16 %v925_v16, %v924_v15 }
 0x1af   : > { %3882 = vmatprep.mubr.msk.bf16.mxu1 %vm999_vm0, %v958_v18 }
 0x1b0   : > { %3883 = vmatmul.mubr.msk.bf16.gmra.mrb[32].mxu1 %vm999_vm0, %v959_v17 }
 0x20b   : > { %v3824_v20 = vpop.f32.mrb[64].mxu0 }
 0x20c   : > { %v1139_v21 = vadd.f32 %v3824_v20, %v4923_v19  ;;  %v1130_v22 = vpop.f32.mrb[65].mxu0 }
 0x20d   : > { %v1131_v44 = vadd.f32 %v4923_v19, %v1130_v22  ;;  %v3825_v23 = vpop.f32.mrb[66].mxu0 }
 0x20e   : > { %v1142_v24 = vadd.f32 %v3825_v23, %v4923_v19  ;;  %v1133_v25 = vpop.f32.mrb[67].mxu0  ;;  %v1387_v29 = vmax.f32 %v1139_v21, 0.0 }
 0x20f   : > { %v1134_v28 = vadd.f32 %v4923_v19, %v1133_v25  ;;  %v1385_v31 = vmax.f32 %v1131_v44, 0.0 }
 0x210   : > { %v1388_v30 = vmax.f32 %v1142_v24, 0.0 }
 0x211   : > { %v1386_v32 = vmax.f32 %v1134_v28, 0.0 }
 0x212   : > { %v1450_v33 = vpack.c.bf16 %v1388_v30, %v1387_v29 }
 0x213   : > { %v1449_v34 = vpack.c.bf16 %v1386_v32, %v1385_v31  ;;  %v3828_v35 = vpop.f32.mrb[68].mxu0 }
 0x214   : > { %v1155_v36 = vadd.f32 %v3828_v35, %v4923_v19  ;;  %v1146_v37 = vpop.f32.mrb[69].mxu0 }
 0x215   : > { %v1147_v38 = vadd.f32 %v4923_v19, %v1146_v37  ;;  %v3829_v39 = vpop.f32.mrb[70].mxu0  ;;  %3890 = vmatprep.mubr.msk.bf16.mxu1 %vm1504_vm1, %v1449_v34 }
 0x216   : > { %v1158_v40 = vadd.f32 %v3829_v39, %v4923_v19  ;;  %v1149_v41 = vpop.f32.mrb[71].mxu0  ;;  %3891 = vmatmul.mubr.msk.bf16.vlgmr.msra.gmra.mrb[36].mxu1 %vm1504_vm1, %v1450_v33  ;;  %v1391_v43 = vmax.f32 %v1155_v36, 0.0 }
 0x217   : > { %v1150_v42 = vadd.f32 %v4923_v19, %v1149_v41  ;;  %v1389_v46 = vmax.f32 %v1147_v38, 0.0 }
 0x218   : > { %v1392_v45 = vmax.f32 %v1158_v40, 0.0 }
 0x219   : > { %v1390_v47 = vmax.f32 %v1150_v42, 0.0 }
 0x21a   : > { %v1452_v48 = vpack.c.bf16 %v1392_v45, %v1391_v43 }
 0x21b   : > { %v1451_v49 = vpack.c.bf16 %v1390_v47, %v1389_v46  ;;  %v3832_v50 = vpop.f32.mrb[72].mxu0 }
 0x21c   : > { %v1171_v51 = vadd.f32 %v3832_v50, %v4923_v19  ;;  %v1162_v53 = vpop.f32.mrb[73].mxu0 }
 0x21d   : > { %v1163_v54 = vadd.f32 %v4923_v19, %v1162_v53  ;;  %v3833_v52 = vpop.f32.mrb[74].mxu0  ;;  %3894 = vmatprep.mubr.msk.bf16.mxu1 %vm1504_vm1, %v1451_v49 }
 0x21e   : > { %v1174_v55 = vadd.f32 %v3833_v52, %v4923_v19  ;;  %v1165_v56 = vpop.f32.mrb[75].mxu0  ;;  %3895 = vmatmul.mubr.msk.bf16.gmra.mrb[40].mxu1 %vm1504_vm1, %v1452_v48  ;;  %v1395_v58 = vmax.f32 %v1171_v51, 0.0 }
 0x21f   : > { %v1166_v57 = vadd.f32 %v4923_v19, %v1165_v56  ;;  %v1393_v60 = vmax.f32 %v1163_v54, 0.0 }
 0x220   : > { %v1396_v59 = vmax.f32 %v1174_v55, 0.0 }
 0x221   : > { %v1394_v61 = vmax.f32 %v1166_v57, 0.0 }
 0x222   : > { %v1454_v62 = vpack.c.bf16 %v1396_v59, %v1395_v58 }
 0x223   : > { %v1453_v63 = vpack.c.bf16 %v1394_v61, %v1393_v60  ;;  %v3836_v0 = vpop.f32.mrb[76].mxu0 }
 0x224   : > { %v1187_v1 = vadd.f32 %v3836_v0, %v4923_v19  ;;  %v1178_v2 = vpop.f32.mrb[77].mxu0 }
 0x225   : > { %v1179_v3 = vadd.f32 %v4923_v19, %v1178_v2  ;;  %v3837_v4 = vpop.f32.mrb[78].mxu0  ;;  %3898 = vmatprep.mubr.msk.bf16.mxu1 %vm1504_vm1, %v1453_v63 }
 0x226   : > { %v1190_v5 = vadd.f32 %v3837_v4, %v4923_v19  ;;  %v1181_v6 = vpop.f32.mrb[79].mxu0  ;;  %3899 = vmatmul.mubr.msk.bf16.gmra.mrb[44].mxu1 %vm1504_vm1, %v1454_v62  ;;  %v1399_v8 = vmax.f32 %v1187_v1, 0.0 }
 0x227   : > { %v1182_v7 = vadd.f32 %v4923_v19, %v1181_v6  ;;  %v1397_v10 = vmax.f32 %v1179_v3, 0.0 }
 0x228   : > { %v1400_v9 = vmax.f32 %v1190_v5, 0.0 }
 0x229   : > { %v1398_v11 = vmax.f32 %v1182_v7, 0.0 }
 0x22a   : > { %v1456_v12 = vpack.c.bf16 %v1400_v9, %v1399_v8 }
 0x22b   : > { %v1455_v13 = vpack.c.bf16 %v1398_v11, %v1397_v10  ;;  %v3840_v14 = vpop.f32.mrb[80].mxu0 }
 0x22c   : > { %v1203_v15 = vadd.f32 %v3840_v14, %v4923_v19  ;;  %v1194_v16 = vpop.f32.mrb[81].mxu0 }
 0x22d   : > { %v1195_v17 = vadd.f32 %v4923_v19, %v1194_v16  ;;  %v3841_v18 = vpop.f32.mrb[82].mxu0  ;;  %3902 = vmatprep.mubr.msk.bf16.mxu1 %vm1504_vm1, %v1455_v13 }
 0x22e   : > { %v1206_v20 = vadd.f32 %v3841_v18, %v4923_v19  ;;  %v1197_v21 = vpop.f32.mrb[83].mxu0  ;;  %3903 = vmatmul.mubr.msk.bf16.gmra.mrb[48].mxu1 %vm1504_vm1, %v1456_v12  ;;  %v1403_v44 = vmax.f32 %v1203_v15, 0.0 }
 0x22f   : > { %v1198_v22 = vadd.f32 %v4923_v19, %v1197_v21  ;;  %v1401_v24 = vmax.f32 %v1195_v17, 0.0 }
 0x230   : > { %v1404_v23 = vmax.f32 %v1206_v20, 0.0 }
 0x231   : > { %v1402_v25 = vmax.f32 %v1198_v22, 0.0 }
 0x232   : > { %v1458_v26 = vpack.c.bf16 %v1404_v23, %v1403_v44 }
 0x233   : > { %v1457_v27 = vpack.c.bf16 %v1402_v25, %v1401_v24  ;;  %v3844_v28 = vpop.f32.mrb[84].mxu0 }
 0x234   : > { %v1219_v29 = vadd.f32 %v3844_v28, %v4923_v19  ;;  %v1210_v30 = vpop.f32.mrb[85].mxu0 }
 0x235   : > { %v1211_v31 = vadd.f32 %v4923_v19, %v1210_v30  ;;  %v3845_v32 = vpop.f32.mrb[86].mxu0  ;;  %3906 = vmatprep.mubr.msk.bf16.mxu1 %vm1504_vm1, %v1457_v27 }
 0x236   : > { %v1222_v33 = vadd.f32 %v3845_v32, %v4923_v19  ;;  %v1213_v34 = vpop.f32.mrb[87].mxu0  ;;  %3907 = vmatmul.mubr.msk.bf16.gmra.mrb[52].mxu1 %vm1504_vm1, %v1458_v26  ;;  %v1407_v36 = vmax.f32 %v1219_v29, 0.0 }
 0x237   : > { %v1214_v35 = vadd.f32 %v4923_v19, %v1213_v34  ;;  %v1405_v38 = vmax.f32 %v1211_v31, 0.0 }
 0x238   : > { %v1408_v37 = vmax.f32 %v1222_v33, 0.0 }
 0x239   : > { %v1406_v39 = vmax.f32 %v1214_v35, 0.0 }
 0x23a   : > { %v1460_v40 = vpack.c.bf16 %v1408_v37, %v1407_v36 }
 0x23b   : > { %v1459_v41 = vpack.c.bf16 %v1406_v39, %v1405_v38  ;;  %v3848_v42 = vpop.f32.mrb[88].mxu0 }
 0x23c   : > { %v1235_v43 = vadd.f32 %v3848_v42, %v4923_v19  ;;  %v1226_v45 = vpop.f32.mrb[89].mxu0 }
 0x23d   : > { %v1227_v46 = vadd.f32 %v4923_v19, %v1226_v45  ;;  %v3849_v47 = vpop.f32.mrb[90].mxu0  ;;  %3910 = vmatprep.mubr.msk.bf16.mxu1 %vm1504_vm1, %v1459_v41 }
 0x23e   : > { %v1238_v48 = vadd.f32 %v3849_v47, %v4923_v19  ;;  %v1229_v49 = vpop.f32.mrb[91].mxu0  ;;  %3911 = vmatmul.mubr.msk.bf16.gmra.mrb[56].mxu1 %vm1504_vm1, %v1460_v40  ;;  %v1411_v51 = vmax.f32 %v1235_v43, 0.0 }
 0x23f   : > { %v1230_v50 = vadd.f32 %v4923_v19, %v1229_v49  ;;  %v1409_v54 = vmax.f32 %v1227_v46, 0.0 }
 0x240   : > { %v1412_v53 = vmax.f32 %v1238_v48, 0.0 }
 0x241   : > { %v1410_v52 = vmax.f32 %v1230_v50, 0.0 }
 0x242   : > { %v1462_v55 = vpack.c.bf16 %v1412_v53, %v1411_v51 }
 0x243   : > { %v1461_v56 = vpack.c.bf16 %v1410_v52, %v1409_v54  ;;  %v3852_v57 = vpop.f32.mrb[0].mxu1 }
 0x244   : > { %v1251_v58 = vadd.f32 %v3852_v57, %v4923_v19  ;;  %v1242_v59 = vpop.f32.mrb[1].mxu1 }
 0x245   : > { %v1243_v60 = vadd.f32 %v4923_v19, %v1242_v59  ;;  %v3853_v61 = vpop.f32.mrb[2].mxu1  ;;  %3914 = vmatprep.mubr.msk.bf16.mxu1 %vm1504_vm1, %v1461_v56 }
 0x246   : > { %v1254_v62 = vadd.f32 %v3853_v61, %v4923_v19  ;;  %v1245_v63 = vpop.f32.mrb[3].mxu1  ;;  %3915 = vmatmul.mubr.msk.bf16.gmra.mrb[60].mxu1 %vm1504_vm1, %v1462_v55  ;;  %v1415_v1 = vmax.f32 %v1251_v58, 0.0 }
 0x247   : > { %v1246_v0 = vadd.f32 %v4923_v19, %v1245_v63  ;;  %v1413_v3 = vmax.f32 %v1243_v60, 0.0 }
 0x248   : > { %v1416_v2 = vmax.f32 %v1254_v62, 0.0 }
 0x249   : > { %v1414_v4 = vmax.f32 %v1246_v0, 0.0 }
 0x24a   : > { %v1464_v5 = vpack.c.bf16 %v1416_v2, %v1415_v1 }
 0x24b   : > { %v1463_v6 = vpack.c.bf16 %v1414_v4, %v1413_v3  ;;  %v3856_v7 = vpop.f32.mrb[4].mxu1 }
 0x24c   : > { %v1267_v8 = vadd.f32 %v3856_v7, %v4923_v19  ;;  %v1258_v9 = vpop.f32.mrb[5].mxu1 }
 0x24d   : > { %v1259_v10 = vadd.f32 %v4923_v19, %v1258_v9  ;;  %v3857_v11 = vpop.f32.mrb[6].mxu1  ;;  %3918 = vmatprep.mubr.msk.bf16.mxu1 %vm1504_vm1, %v1463_v6 }
 0x24e   : > { %v1270_v12 = vadd.f32 %v3857_v11, %v4923_v19  ;;  %v1261_v13 = vpop.f32.mrb[7].mxu1  ;;  %3919 = vmatmul.mubr.msk.bf16.gmra.mrb[64].mxu1 %vm1504_vm1, %v1464_v5  ;;  %v1419_v15 = vmax.f32 %v1267_v8, 0.0 }
 0x24f   : > { %v1262_v14 = vadd.f32 %v4923_v19, %v1261_v13  ;;  %v1417_v17 = vmax.f32 %v1259_v10, 0.0 }
 0x250   : > { %v1420_v16 = vmax.f32 %v1270_v12, 0.0 }
 0x251   : > { %v1418_v18 = vmax.f32 %v1262_v14, 0.0 }
 0x252   : > { %v1466_v20 = vpack.c.bf16 %v1420_v16, %v1419_v15 }
 0x253   : > { %v1465_v21 = vpack.c.bf16 %v1418_v18, %v1417_v17  ;;  %v3860_v22 = vpop.f32.mrb[8].mxu1 }
 0x254   : > { %v1283_v44 = vadd.f32 %v3860_v22, %v4923_v19  ;;  %v1274_v23 = vpop.f32.mrb[9].mxu1 }
 0x255   : > { %v1275_v24 = vadd.f32 %v4923_v19, %v1274_v23  ;;  %v3861_v25 = vpop.f32.mrb[10].mxu1  ;;  %3922 = vmatprep.mubr.msk.bf16.mxu1 %vm1504_vm1, %v1465_v21 }
 0x256   : > { %v1286_v26 = vadd.f32 %v3861_v25, %v4923_v19  ;;  %v1277_v27 = vpop.f32.mrb[11].mxu1  ;;  %3923 = vmatmul.mubr.msk.bf16.gmra.mrb[68].mxu1 %vm1504_vm1, %v1466_v20  ;;  %v1423_v29 = vmax.f32 %v1283_v44, 0.0 }
 0x257   : > { %v1278_v28 = vadd.f32 %v4923_v19, %v1277_v27  ;;  %v1421_v31 = vmax.f32 %v1275_v24, 0.0 }
 0x258   : > { %v1424_v30 = vmax.f32 %v1286_v26, 0.0 }
 0x259   : > { %v1422_v32 = vmax.f32 %v1278_v28, 0.0 }
 0x25a   : > { %v1468_v33 = vpack.c.bf16 %v1424_v30, %v1423_v29 }
 0x25b   : > { %v1467_v34 = vpack.c.bf16 %v1422_v32, %v1421_v31  ;;  %v3864_v35 = vpop.f32.mrb[12].mxu1 }
 0x25c   : > { %v1299_v36 = vadd.f32 %v3864_v35, %v4923_v19  ;;  %v1290_v37 = vpop.f32.mrb[13].mxu1 }
 0x25d   : > { %v1291_v38 = vadd.f32 %v4923_v19, %v1290_v37  ;;  %v3865_v39 = vpop.f32.mrb[14].mxu1  ;;  %3926 = vmatprep.mubr.msk.bf16.mxu1 %vm1504_vm1, %v1467_v34 }
 0x25e   : > { %v1302_v40 = vadd.f32 %v3865_v39, %v4923_v19  ;;  %v1293_v41 = vpop.f32.mrb[15].mxu1  ;;  %3927 = vmatmul.mubr.msk.bf16.gmra.mrb[72].mxu1 %vm1504_vm1, %v1468_v33  ;;  %v1427_v43 = vmax.f32 %v1299_v36, 0.0 }
 0x25f   : > { %v1294_v42 = vadd.f32 %v4923_v19, %v1293_v41  ;;  %v1425_v46 = vmax.f32 %v1291_v38, 0.0 }
 0x260   : > { %v1428_v45 = vmax.f32 %v1302_v40, 0.0 }
 0x261   : > { %v1426_v47 = vmax.f32 %v1294_v42, 0.0 }
 0x262   : > { %v1470_v48 = vpack.c.bf16 %v1428_v45, %v1427_v43 }
 0x263   : > { %v1469_v49 = vpack.c.bf16 %v1426_v47, %v1425_v46  ;;  %v3868_v50 = vpop.f32.mrb[16].mxu1 }
 0x264   : > { %v1315_v51 = vadd.f32 %v3868_v50, %v4923_v19  ;;  %v1306_v53 = vpop.f32.mrb[17].mxu1 }
 0x265   : > { %v1307_v54 = vadd.f32 %v4923_v19, %v1306_v53  ;;  %v3869_v52 = vpop.f32.mrb[18].mxu1  ;;  %3930 = vmatprep.mubr.msk.bf16.mxu1 %vm1504_vm1, %v1469_v49 }
 0x266   : > { %v1318_v55 = vadd.f32 %v3869_v52, %v4923_v19  ;;  %v1309_v56 = vpop.f32.mrb[19].mxu1  ;;  %3931 = vmatmul.mubr.msk.bf16.gmra.mrb[76].mxu1 %vm1504_vm1, %v1470_v48  ;;  %v1431_v58 = vmax.f32 %v1315_v51, 0.0 }
 0x267   : > { %v1310_v57 = vadd.f32 %v4923_v19, %v1309_v56  ;;  %v1429_v60 = vmax.f32 %v1307_v54, 0.0 }
 0x268   : > { %v1432_v59 = vmax.f32 %v1318_v55, 0.0 }
 0x269   : > { %v1430_v61 = vmax.f32 %v1310_v57, 0.0  ;;  %v4168_v57 = vld [vmem:[%s5435_s9] sm:$0xff]  }
 0x26a   : > { %v1472_v62 = vpack.c.bf16 %v1432_v59, %v1431_v58  ;;  %4022 = vmatprep.subr.bf16.mxu1 %v4168_v57 }
 0x26b   : > { %v1471_v63 = vpack.c.bf16 %v1430_v61, %v1429_v60  ;;  %v3872_v0 = vpop.f32.mrb[20].mxu1  ;;  %4023 = vmatpush3.bf16.msra.mxu1 %v4168_v57 }
 0x26c   : > { %v1331_v1 = vadd.f32 %v3872_v0, %v4923_v19  ;;  %v1322_v2 = vpop.f32.mrb[21].mxu1 }
 0x26d   : > { %v1323_v3 = vadd.f32 %v4923_v19, %v1322_v2  ;;  %v3873_v4 = vpop.f32.mrb[22].mxu1  ;;  %3934 = vmatprep.mubr.msk.bf16.mxu1 %vm1504_vm1, %v1471_v63  ;;  %v4170_v2 = vld [vmem:[%s5435_s9 + $0x10] sm:$0xff]  }
 0x26e   : > { %v1334_v5 = vadd.f32 %v3873_v4, %v4923_v19  ;;  %v1325_v6 = vpop.f32.mrb[23].mxu1  ;;  %3935 = vmatmul.mubr.msk.bf16.gmra.mrb[80].mxu1 %vm1504_vm1, %v1472_v62  ;;  %v1435_v8 = vmax.f32 %v1331_v1, 0.0  ;;  %v4169_v1 = vld [vmem:[%s5435_s9 + $0x8] sm:$0xff]  }
 0x26f   : > { %v1326_v7 = vadd.f32 %v4923_v19, %v1325_v6  ;;  %v1433_v10 = vmax.f32 %v1323_v3, 0.0  ;;  %4024 = vmatprep.subr.bf16.mxu1 %v4169_v1 }
 0x270   : > { %v1436_v9 = vmax.f32 %v1334_v5, 0.0  ;;  %4025 = vmatpush3.bf16.msra.mxu1 %v4169_v1 }
 0x271   : > { %v1434_v11 = vmax.f32 %v1326_v7, 0.0  ;;  %4026 = vmatprep.subr.bf16.mxu1 %v4170_v2 }
 0x272   : > { %v1474_v12 = vpack.c.bf16 %v1436_v9, %v1435_v8  ;;  %v4171_v9 = vld [vmem:[%s5435_s9 + $0x18] sm:$0xff]  }
 0x273   : > { %v1473_v13 = vpack.c.bf16 %v1434_v11, %v1433_v10  ;;  %v3876_v14 = vpop.f32.mrb[24].mxu1 }
 0x274   : > { %v1347_v15 = vadd.f32 %v3876_v14, %v4923_v19  ;;  %v1338_v16 = vpop.f32.mrb[25].mxu1  ;;  %4027 = vmatpush3.bf16.msra.mxu1 %v4170_v2 }
 0x275   : > { %v1339_v17 = vadd.f32 %v4923_v19, %v1338_v16  ;;  %v3877_v18 = vpop.f32.mrb[26].mxu1  ;;  %3938 = vmatprep.mubr.msk.bf16.mxu1 %vm1504_vm1, %v1473_v13  ;;  %4028 = vmatprep.subr.bf16.mxu1 %v4171_v9 }
 0x276   : > { %v1350_v20 = vadd.f32 %v3877_v18, %v4923_v19  ;;  %v1341_v21 = vpop.f32.mrb[27].mxu1  ;;  %3939 = vmatmul.mubr.msk.bf16.gmra.mrb[84].mxu1 %vm1504_vm1, %v1474_v12  ;;  %v1439_v44 = vmax.f32 %v1347_v15, 0.0 }
 0x277   : > { %v1342_v22 = vadd.f32 %v4923_v19, %v1341_v21  ;;  %v1437_v24 = vmax.f32 %v1339_v17, 0.0 }
 0x278   : > { %v1440_v23 = vmax.f32 %v1350_v20, 0.0  ;;  %4029 = vmatpush3.bf16.msra.mxu1 %v4171_v9 }
 0x279   : > { %v1438_v25 = vmax.f32 %v1342_v22, 0.0 }
 0x27a   : > { %v1476_v26 = vpack.c.bf16 %v1440_v23, %v1439_v44 }
 0x27b   : > { %v1475_v27 = vpack.c.bf16 %v1438_v25, %v1437_v24  ;;  %v3880_v28 = vpop.f32.mrb[28].mxu1 }
 0x27c   : > { %v1363_v29 = vadd.f32 %v3880_v28, %v4923_v19  ;;  %v1354_v30 = vpop.f32.mrb[29].mxu1 }
 0x27d   : > { %v1355_v31 = vadd.f32 %v4923_v19, %v1354_v30  ;;  %v3881_v32 = vpop.f32.mrb[30].mxu1  ;;  %3942 = vmatprep.mubr.msk.bf16.mxu1 %vm1504_vm1, %v1475_v27 }
 0x27e   : > { %v1366_v33 = vadd.f32 %v3881_v32, %v4923_v19  ;;  %v1357_v34 = vpop.f32.mrb[31].mxu1  ;;  %3943 = vmatmul.mubr.msk.bf16.gmra.mrb[88].mxu1 %vm1504_vm1, %v1476_v26  ;;  %v1443_v36 = vmax.f32 %v1363_v29, 0.0 }
 0x27f   : > { %v1358_v35 = vadd.f32 %v4923_v19, %v1357_v34  ;;  %v1441_v38 = vmax.f32 %v1355_v31, 0.0 }
 0x280   : > { %v1444_v37 = vmax.f32 %v1366_v33, 0.0 }
 0x281   : > { %v1442_v39 = vmax.f32 %v1358_v35, 0.0 }
 0x282   : > { %v1478_v40 = vpack.c.bf16 %v1444_v37, %v1443_v36 }
 0x283   : > { %v1477_v41 = vpack.c.bf16 %v1442_v39, %v1441_v38  ;;  %v3884_v42 = vpop.f32.mrb[32].mxu1 }
 0x284   : > { %v1379_v43 = vadd.f32 %v3884_v42, %v4923_v19  ;;  %v1370_v45 = vpop.f32.mrb[33].mxu1 }
 0x285   : > { %v1371_v46 = vadd.f32 %v4923_v19, %v1370_v45  ;;  %v3885_v47 = vpop.f32.mrb[34].mxu1  ;;  %3946 = vmatprep.mubr.msk.bf16.mxu1 %vm1504_vm1, %v1477_v41 }
 0x286   : > { %v1382_v48 = vadd.f32 %v3885_v47, %v4923_v19  ;;  %v1373_v49 = vpop.f32.mrb[35].mxu1  ;;  %3947 = vmatmul.mubr.msk.bf16.gmra.mrb[92].mxu1 %vm1504_vm1, %v1478_v40  ;;  %v1447_v51 = vmax.f32 %v1379_v43, 0.0 }
 0x287   : > { %v1374_v50 = vadd.f32 %v4923_v19, %v1373_v49  ;;  %v1445_v54 = vmax.f32 %v1371_v46, 0.0  ;;  %v5033_v19 = vld [vmem:[%s5432_s6] ss:$0 sm:$0xff] }
 0x288   : > { %v1448_v53 = vmax.f32 %v1382_v48, 0.0 }
 0x289   : > { %v1446_v52 = vmax.f32 %v1374_v50, 0.0 }
 0x28a   : > { %v1480_v55 = vpack.c.bf16 %v1448_v53, %v1447_v51 }
 0x28b   : > { %v1479_v56 = vpack.c.bf16 %v1446_v52, %v1445_v54 }
 0x28d   : > { %3950 = vmatprep.mubr.msk.bf16.mxu1 %vm1504_vm1, %v1479_v56 }
 0x28e   : > { %3951 = vmatmul.mubr.msk.bf16.gmra.mrb[96].mxu1 %vm1504_vm1, %v1480_v55 }
 0x2e9   : > { %v3892_v58 = vpop.f32.mrb[36].mxu1 }
 0x2ea   : > { %v1644_v59 = vadd.f32 %v3892_v58, %v5033_v19  ;;  %v1635_v60 = vpop.f32.mrb[37].mxu1 }
 0x2eb   : > { %v1636_v61 = vadd.f32 %v5033_v19, %v1635_v60  ;;  %v3893_v62 = vpop.f32.mrb[38].mxu1 }
 0x2ec   : > { %v1647_v63 = vadd.f32 %v3893_v62, %v5033_v19  ;;  %v1638_v0 = vpop.f32.mrb[39].mxu1  ;;  %v1892_v4 = vmax.f32 %v1644_v59, 0.0 }
 0x2ed   : > { %v1639_v3 = vadd.f32 %v5033_v19, %v1638_v0  ;;  %v1890_v6 = vmax.f32 %v1636_v61, 0.0 }
 0x2ee   : > { %v1893_v5 = vmax.f32 %v1647_v63, 0.0 }
 0x2ef   : > { %v1891_v7 = vmax.f32 %v1639_v3, 0.0 }
 0x2f0   : > { %v1955_v8 = vpack.c.bf16 %v1893_v5, %v1892_v4 }
 0x2f1   : > { %v1954_v10 = vpack.c.bf16 %v1891_v7, %v1890_v6  ;;  %v3896_v11 = vpop.f32.mrb[40].mxu1 }
 0x2f2   : > { %v1660_v12 = vadd.f32 %v3896_v11, %v5033_v19  ;;  %v1651_v13 = vpop.f32.mrb[41].mxu1 }
 0x2f3   : > { %v1652_v14 = vadd.f32 %v5033_v19, %v1651_v13  ;;  %v3897_v15 = vpop.f32.mrb[42].mxu1  ;;  %3958 = vmatprep.mubr.msk.bf16.mxu0 %vm1504_vm1, %v1954_v10 }
 0x2f4   : > { %v1663_v16 = vadd.f32 %v3897_v15, %v5033_v19  ;;  %v1654_v17 = vpop.f32.mrb[43].mxu1  ;;  %3959 = vmatmul.mubr.msk.bf16.vlgmr.msra.gmra.mrb[92].mxu0 %vm1504_vm1, %v1955_v8  ;;  %v1896_v20 = vmax.f32 %v1660_v12, 0.0 }
 0x2f5   : > { %v1655_v18 = vadd.f32 %v5033_v19, %v1654_v17  ;;  %v1894_v22 = vmax.f32 %v1652_v14, 0.0 }
 0x2f6   : > { %v1897_v21 = vmax.f32 %v1663_v16, 0.0 }
 0x2f7   : > { %v1895_v44 = vmax.f32 %v1655_v18, 0.0 }
 0x2f8   : > { %v1957_v23 = vpack.c.bf16 %v1897_v21, %v1896_v20 }
 0x2f9   : > { %v1956_v24 = vpack.c.bf16 %v1895_v44, %v1894_v22  ;;  %v3900_v25 = vpop.f32.mrb[44].mxu1 }
 0x2fa   : > { %v1676_v26 = vadd.f32 %v3900_v25, %v5033_v19  ;;  %v1667_v27 = vpop.f32.mrb[45].mxu1 }
 0x2fb   : > { %v1668_v28 = vadd.f32 %v5033_v19, %v1667_v27  ;;  %v3901_v29 = vpop.f32.mrb[46].mxu1  ;;  %3962 = vmatprep.mubr.msk.bf16.mxu0 %vm1504_vm1, %v1956_v24 }
 0x2fc   : > { %v1679_v30 = vadd.f32 %v3901_v29, %v5033_v19  ;;  %v1670_v31 = vpop.f32.mrb[47].mxu1  ;;  %3963 = vmatmul.mubr.msk.bf16.gmra.mrb[96].mxu0 %vm1504_vm1, %v1957_v23  ;;  %v1900_v33 = vmax.f32 %v1676_v26, 0.0 }
 0x2fd   : > { %v1671_v32 = vadd.f32 %v5033_v19, %v1670_v31  ;;  %v1898_v35 = vmax.f32 %v1668_v28, 0.0 }
 0x2fe   : > { %v1901_v34 = vmax.f32 %v1679_v30, 0.0 }
 0x2ff   : > { %v1899_v36 = vmax.f32 %v1671_v32, 0.0 }
 0x300   : > { %v1959_v37 = vpack.c.bf16 %v1901_v34, %v1900_v33 }
 0x301   : > { %v1958_v38 = vpack.c.bf16 %v1899_v36, %v1898_v35  ;;  %v3904_v39 = vpop.f32.mrb[48].mxu1 }
 0x302   : > { %v1692_v40 = vadd.f32 %v3904_v39, %v5033_v19  ;;  %v1683_v41 = vpop.f32.mrb[49].mxu1 }
 0x303   : > { %v1684_v42 = vadd.f32 %v5033_v19, %v1683_v41  ;;  %v3905_v43 = vpop.f32.mrb[50].mxu1  ;;  %3966 = vmatprep.mubr.msk.bf16.mxu0 %vm1504_vm1, %v1958_v38 }
 0x304   : > { %v1695_v45 = vadd.f32 %v3905_v43, %v5033_v19  ;;  %v1686_v46 = vpop.f32.mrb[51].mxu1  ;;  %3967 = vmatmul.mubr.msk.bf16.gmra.mrb[100].mxu0 %vm1504_vm1, %v1959_v37  ;;  %v1904_v48 = vmax.f32 %v1692_v40, 0.0 }
 0x305   : > { %v1687_v47 = vadd.f32 %v5033_v19, %v1686_v46  ;;  %v1902_v50 = vmax.f32 %v1684_v42, 0.0 }
 0x306   : > { %v1905_v49 = vmax.f32 %v1695_v45, 0.0 }
 0x307   : > { %v1903_v51 = vmax.f32 %v1687_v47, 0.0 }
 0x308   : > { %v1961_v53 = vpack.c.bf16 %v1905_v49, %v1904_v48 }
 0x309   : > { %v1960_v54 = vpack.c.bf16 %v1903_v51, %v1902_v50  ;;  %v3908_v52 = vpop.f32.mrb[52].mxu1 }
 0x30a   : > { %v1708_v55 = vadd.f32 %v3908_v52, %v5033_v19  ;;  %v1699_v56 = vpop.f32.mrb[53].mxu1 }
 0x30b   : > { %v1700_v57 = vadd.f32 %v5033_v19, %v1699_v56  ;;  %v3909_v58 = vpop.f32.mrb[54].mxu1  ;;  %3970 = vmatprep.mubr.msk.bf16.mxu0 %vm1504_vm1, %v1960_v54 }
 0x30c   : > { %v1711_v59 = vadd.f32 %v3909_v58, %v5033_v19  ;;  %v1702_v60 = vpop.f32.mrb[55].mxu1  ;;  %3971 = vmatmul.mubr.msk.bf16.gmra.mrb[104].mxu0 %vm1504_vm1, %v1961_v53  ;;  %v1908_v62 = vmax.f32 %v1708_v55, 0.0 }
 0x30d   : > { %v1703_v61 = vadd.f32 %v5033_v19, %v1702_v60  ;;  %v1906_v0 = vmax.f32 %v1700_v57, 0.0 }
 0x30e   : > { %v1909_v63 = vmax.f32 %v1711_v59, 0.0 }
 0x30f   : > { %v1907_v1 = vmax.f32 %v1703_v61, 0.0 }
 0x310   : > { %v1963_v2 = vpack.c.bf16 %v1909_v63, %v1908_v62 }
 0x311   : > { %v1962_v3 = vpack.c.bf16 %v1907_v1, %v1906_v0  ;;  %v3912_v4 = vpop.f32.mrb[56].mxu1 }
 0x312   : > { %v1724_v5 = vadd.f32 %v3912_v4, %v5033_v19  ;;  %v1715_v6 = vpop.f32.mrb[57].mxu1 }
 0x313   : > { %v1716_v7 = vadd.f32 %v5033_v19, %v1715_v6  ;;  %v3913_v8 = vpop.f32.mrb[58].mxu1  ;;  %3974 = vmatprep.mubr.msk.bf16.mxu0 %vm1504_vm1, %v1962_v3 }
 0x314   : > { %v1727_v9 = vadd.f32 %v3913_v8, %v5033_v19  ;;  %v1718_v10 = vpop.f32.mrb[59].mxu1  ;;  %3975 = vmatmul.mubr.msk.bf16.gmra.mrb[108].mxu0 %vm1504_vm1, %v1963_v2  ;;  %v1912_v12 = vmax.f32 %v1724_v5, 0.0 }
 0x315   : > { %v1719_v11 = vadd.f32 %v5033_v19, %v1718_v10  ;;  %v1910_v14 = vmax.f32 %v1716_v7, 0.0 }
 0x316   : > { %v1913_v13 = vmax.f32 %v1727_v9, 0.0 }
 0x317   : > { %v1911_v15 = vmax.f32 %v1719_v11, 0.0 }
 0x318   : > { %v1965_v16 = vpack.c.bf16 %v1913_v13, %v1912_v12 }
 0x319   : > { %v1964_v17 = vpack.c.bf16 %v1911_v15, %v1910_v14  ;;  %v3916_v18 = vpop.f32.mrb[60].mxu1 }
 0x31a   : > { %v1740_v20 = vadd.f32 %v3916_v18, %v5033_v19  ;;  %v1731_v21 = vpop.f32.mrb[61].mxu1 }
 0x31b   : > { %v1732_v22 = vadd.f32 %v5033_v19, %v1731_v21  ;;  %v3917_v44 = vpop.f32.mrb[62].mxu1  ;;  %3978 = vmatprep.mubr.msk.bf16.mxu0 %vm1504_vm1, %v1964_v17 }
 0x31c   : > { %v1743_v23 = vadd.f32 %v3917_v44, %v5033_v19  ;;  %v1734_v24 = vpop.f32.mrb[63].mxu1  ;;  %3979 = vmatmul.mubr.msk.bf16.gmra.mrb[112].mxu0 %vm1504_vm1, %v1965_v16  ;;  %v1916_v26 = vmax.f32 %v1740_v20, 0.0 }
 0x31d   : > { %v1735_v25 = vadd.f32 %v5033_v19, %v1734_v24  ;;  %v1914_v28 = vmax.f32 %v1732_v22, 0.0 }
 0x31e   : > { %v1917_v27 = vmax.f32 %v1743_v23, 0.0 }
 0x31f   : > { %v1915_v29 = vmax.f32 %v1735_v25, 0.0 }
 0x320   : > { %v1967_v30 = vpack.c.bf16 %v1917_v27, %v1916_v26 }
 0x321   : > { %v1966_v31 = vpack.c.bf16 %v1915_v29, %v1914_v28  ;;  %v3920_v32 = vpop.f32.mrb[64].mxu1 }
 0x322   : > { %v1756_v33 = vadd.f32 %v3920_v32, %v5033_v19  ;;  %v1747_v34 = vpop.f32.mrb[65].mxu1 }
 0x323   : > { %v1748_v35 = vadd.f32 %v5033_v19, %v1747_v34  ;;  %v3921_v36 = vpop.f32.mrb[66].mxu1  ;;  %3982 = vmatprep.mubr.msk.bf16.mxu0 %vm1504_vm1, %v1966_v31 }
 0x324   : > { %v1759_v37 = vadd.f32 %v3921_v36, %v5033_v19  ;;  %v1750_v38 = vpop.f32.mrb[67].mxu1  ;;  %3983 = vmatmul.mubr.msk.bf16.gmra.mrb[116].mxu0 %vm1504_vm1, %v1967_v30  ;;  %v1920_v40 = vmax.f32 %v1756_v33, 0.0 }
 0x325   : > { %v1751_v39 = vadd.f32 %v5033_v19, %v1750_v38  ;;  %v1918_v42 = vmax.f32 %v1748_v35, 0.0 }
 0x326   : > { %v1921_v41 = vmax.f32 %v1759_v37, 0.0 }
 0x327   : > { %v1919_v43 = vmax.f32 %v1751_v39, 0.0 }
 0x328   : > { %v1969_v45 = vpack.c.bf16 %v1921_v41, %v1920_v40 }
 0x329   : > { %v1968_v46 = vpack.c.bf16 %v1919_v43, %v1918_v42  ;;  %v3924_v47 = vpop.f32.mrb[68].mxu1 }
 0x32a   : > { %v1772_v48 = vadd.f32 %v3924_v47, %v5033_v19  ;;  %v1763_v49 = vpop.f32.mrb[69].mxu1 }
 0x32b   : > { %v1764_v50 = vadd.f32 %v5033_v19, %v1763_v49  ;;  %v3925_v51 = vpop.f32.mrb[70].mxu1  ;;  %3986 = vmatprep.mubr.msk.bf16.mxu0 %vm1504_vm1, %v1968_v46 }
 0x32c   : > { %v1775_v53 = vadd.f32 %v3925_v51, %v5033_v19  ;;  %v1766_v54 = vpop.f32.mrb[71].mxu1  ;;  %3987 = vmatmul.mubr.msk.bf16.gmra.mrb[120].mxu0 %vm1504_vm1, %v1969_v45  ;;  %v1924_v55 = vmax.f32 %v1772_v48, 0.0 }
 0x32d   : > { %v1767_v52 = vadd.f32 %v5033_v19, %v1766_v54  ;;  %v1922_v57 = vmax.f32 %v1764_v50, 0.0 }
 0x32e   : > { %v1925_v56 = vmax.f32 %v1775_v53, 0.0 }
 0x32f   : > { %v1923_v58 = vmax.f32 %v1767_v52, 0.0 }
 0x330   : > { %v1971_v59 = vpack.c.bf16 %v1925_v56, %v1924_v55 }
 0x331   : > { %v1970_v60 = vpack.c.bf16 %v1923_v58, %v1922_v57  ;;  %v3928_v61 = vpop.f32.mrb[72].mxu1 }
 0x332   : > { %v1788_v62 = vadd.f32 %v3928_v61, %v5033_v19  ;;  %v1779_v63 = vpop.f32.mrb[73].mxu1 }
 0x333   : > { %v1780_v0 = vadd.f32 %v5033_v19, %v1779_v63  ;;  %v3929_v1 = vpop.f32.mrb[74].mxu1  ;;  %3990 = vmatprep.mubr.msk.bf16.mxu0 %vm1504_vm1, %v1970_v60 }
 0x334   : > { %v1791_v2 = vadd.f32 %v3929_v1, %v5033_v19  ;;  %v1782_v3 = vpop.f32.mrb[75].mxu1  ;;  %3991 = vmatmul.mubr.msk.bf16.gmra.mrb[124].mxu0 %vm1504_vm1, %v1971_v59  ;;  %v1928_v5 = vmax.f32 %v1788_v62, 0.0 }
 0x335   : > { %v1783_v4 = vadd.f32 %v5033_v19, %v1782_v3  ;;  %v1926_v7 = vmax.f32 %v1780_v0, 0.0 }
 0x336   : > { %v1929_v6 = vmax.f32 %v1791_v2, 0.0 }
 0x337   : > { %v1927_v8 = vmax.f32 %v1783_v4, 0.0 }
 0x338   : > { %v1973_v9 = vpack.c.bf16 %v1929_v6, %v1928_v5 }
 0x339   : > { %v1972_v10 = vpack.c.bf16 %v1927_v8, %v1926_v7  ;;  %v3932_v11 = vpop.f32.mrb[76].mxu1 }
 0x33a   : > { %v1804_v12 = vadd.f32 %v3932_v11, %v5033_v19  ;;  %v1795_v13 = vpop.f32.mrb[77].mxu1 }
 0x33b   : > { %v1796_v14 = vadd.f32 %v5033_v19, %v1795_v13  ;;  %v3933_v15 = vpop.f32.mrb[78].mxu1  ;;  %3994 = vmatprep.mubr.msk.bf16.mxu0 %vm1504_vm1, %v1972_v10 }
 0x33c   : > { %v1807_v16 = vadd.f32 %v3933_v15, %v5033_v19  ;;  %v1798_v17 = vpop.f32.mrb[79].mxu1  ;;  %3995 = vmatmul.mubr.msk.bf16.gmra.mrb[128].mxu0 %vm1504_vm1, %v1973_v9  ;;  %v1932_v20 = vmax.f32 %v1804_v12, 0.0 }
 0x33d   : > { %v1799_v18 = vadd.f32 %v5033_v19, %v1798_v17  ;;  %v1930_v22 = vmax.f32 %v1796_v14, 0.0 }
 0x33e   : > { %v1933_v21 = vmax.f32 %v1807_v16, 0.0 }
 0x33f   : > { %v1931_v44 = vmax.f32 %v1799_v18, 0.0 }
 0x340   : > { %v1975_v23 = vpack.c.bf16 %v1933_v21, %v1932_v20 }
 0x341   : > { %v1974_v24 = vpack.c.bf16 %v1931_v44, %v1930_v22  ;;  %v3936_v25 = vpop.f32.mrb[80].mxu1 }
 0x342   : > { %v1820_v26 = vadd.f32 %v3936_v25, %v5033_v19  ;;  %v1811_v27 = vpop.f32.mrb[81].mxu1 }
 0x343   : > { %v1812_v28 = vadd.f32 %v5033_v19, %v1811_v27  ;;  %v3937_v29 = vpop.f32.mrb[82].mxu1  ;;  %3998 = vmatprep.mubr.msk.bf16.mxu0 %vm1504_vm1, %v1974_v24 }
 0x344   : > { %v1823_v30 = vadd.f32 %v3937_v29, %v5033_v19  ;;  %v1814_v31 = vpop.f32.mrb[83].mxu1  ;;  %3999 = vmatmul.mubr.msk.bf16.gmra.mrb[132].mxu0 %vm1504_vm1, %v1975_v23  ;;  %v1936_v33 = vmax.f32 %v1820_v26, 0.0 }
 0x345   : > { %v1815_v32 = vadd.f32 %v5033_v19, %v1814_v31  ;;  %v1934_v35 = vmax.f32 %v1812_v28, 0.0 }
 0x346   : > { %v1937_v34 = vmax.f32 %v1823_v30, 0.0 }
 0x347   : > { %v1935_v36 = vmax.f32 %v1815_v32, 0.0  ;;  %v5143_v32 = vld [vmem:[%s5434_s8] ss:$0 sm:$0xff] }
 0x348   : > { %v1977_v37 = vpack.c.bf16 %v1937_v34, %v1936_v33 }
 0x349   : > { %v1976_v38 = vpack.c.bf16 %v1935_v36, %v1934_v35  ;;  %v3940_v39 = vpop.f32.mrb[84].mxu1 }
 0x34a   : > { %v1836_v40 = vadd.f32 %v3940_v39, %v5033_v19  ;;  %v1827_v41 = vpop.f32.mrb[85].mxu1 }
 0x34b   : > { %v1828_v42 = vadd.f32 %v5033_v19, %v1827_v41  ;;  %v3941_v43 = vpop.f32.mrb[86].mxu1  ;;  %4002 = vmatprep.mubr.msk.bf16.mxu0 %vm1504_vm1, %v1976_v38 }
 0x34c   : > { %v1839_v45 = vadd.f32 %v3941_v43, %v5033_v19  ;;  %v1830_v46 = vpop.f32.mrb[87].mxu1  ;;  %4003 = vmatmul.mubr.msk.bf16.gmra.mrb[136].mxu0 %vm1504_vm1, %v1977_v37  ;;  %v1940_v48 = vmax.f32 %v1836_v40, 0.0 }
 0x34d   : > { %v1831_v47 = vadd.f32 %v5033_v19, %v1830_v46  ;;  %v1938_v50 = vmax.f32 %v1828_v42, 0.0 }
 0x34e   : > { %v1941_v49 = vmax.f32 %v1839_v45, 0.0 }
 0x34f   : > { %v1939_v51 = vmax.f32 %v1831_v47, 0.0 }
 0x350   : > { %v1979_v53 = vpack.c.bf16 %v1941_v49, %v1940_v48 }
 0x351   : > { %v1978_v54 = vpack.c.bf16 %v1939_v51, %v1938_v50  ;;  %v3944_v52 = vpop.f32.mrb[88].mxu1 }
 0x352   : > { %v1852_v55 = vadd.f32 %v3944_v52, %v5033_v19  ;;  %v1843_v56 = vpop.f32.mrb[89].mxu1 }
 0x353   : > { %v1844_v57 = vadd.f32 %v5033_v19, %v1843_v56  ;;  %v3945_v58 = vpop.f32.mrb[90].mxu1  ;;  %4006 = vmatprep.mubr.msk.bf16.mxu0 %vm1504_vm1, %v1978_v54 }
 0x354   : > { %v1855_v59 = vadd.f32 %v3945_v58, %v5033_v19  ;;  %v1846_v60 = vpop.f32.mrb[91].mxu1  ;;  %4007 = vmatmul.mubr.msk.bf16.gmra.mrb[140].mxu0 %vm1504_vm1, %v1979_v53  ;;  %v1944_v62 = vmax.f32 %v1852_v55, 0.0 }
 0x355   : > { %v1847_v61 = vadd.f32 %v5033_v19, %v1846_v60  ;;  %v1942_v0 = vmax.f32 %v1844_v57, 0.0 }
 0x356   : > { %v1945_v63 = vmax.f32 %v1855_v59, 0.0 }
 0x357   : > { %v1943_v1 = vmax.f32 %v1847_v61, 0.0 }
 0x358   : > { %v1981_v2 = vpack.c.bf16 %v1945_v63, %v1944_v62 }
 0x359   : > { %v1980_v3 = vpack.c.bf16 %v1943_v1, %v1942_v0  ;;  %v3948_v4 = vpop.f32.mrb[92].mxu1 }
 0x35a   : > { %v1868_v5 = vadd.f32 %v3948_v4, %v5033_v19  ;;  %v1859_v6 = vpop.f32.mrb[93].mxu1 }
 0x35b   : > { %v1860_v7 = vadd.f32 %v5033_v19, %v1859_v6  ;;  %v3949_v8 = vpop.f32.mrb[94].mxu1  ;;  %4010 = vmatprep.mubr.msk.bf16.mxu0 %vm1504_vm1, %v1980_v3 }
 0x35c   : > { %v1871_v9 = vadd.f32 %v3949_v8, %v5033_v19  ;;  %v1862_v10 = vpop.f32.mrb[95].mxu1  ;;  %4011 = vmatmul.mubr.msk.bf16.gmra.mrb[144].mxu0 %vm1504_vm1, %v1981_v2  ;;  %v1948_v12 = vmax.f32 %v1868_v5, 0.0 }
 0x35d   : > { %v1863_v11 = vadd.f32 %v5033_v19, %v1862_v10  ;;  %v1946_v14 = vmax.f32 %v1860_v7, 0.0 }
 0x35e   : > { %v1949_v13 = vmax.f32 %v1871_v9, 0.0 }
 0x35f   : > { %v1947_v15 = vmax.f32 %v1863_v11, 0.0 }
 0x360   : > { %v1983_v16 = vpack.c.bf16 %v1949_v13, %v1948_v12 }
 0x361   : > { %v1982_v17 = vpack.c.bf16 %v1947_v15, %v1946_v14  ;;  %v3952_v18 = vpop.f32.mrb[96].mxu1 }
 0x362   : > { %v1884_v20 = vadd.f32 %v3952_v18, %v5033_v19  ;;  %v1875_v21 = vpop.f32.mrb[97].mxu1 }
 0x363   : > { %v1876_v22 = vadd.f32 %v5033_v19, %v1875_v21  ;;  %v3953_v44 = vpop.f32.mrb[98].mxu1  ;;  %4014 = vmatprep.mubr.msk.bf16.mxu0 %vm1504_vm1, %v1982_v17 }
 0x364   : > { %v1887_v23 = vadd.f32 %v3953_v44, %v5033_v19  ;;  %v1878_v24 = vpop.f32.mrb[99].mxu1  ;;  %4015 = vmatmul.mubr.msk.bf16.gmra.mrb[148].mxu0 %vm1504_vm1, %v1983_v16  ;;  %v1952_v26 = vmax.f32 %v1884_v20, 0.0 }
 0x365   : > { %v1879_v25 = vadd.f32 %v5033_v19, %v1878_v24  ;;  %v1950_v28 = vmax.f32 %v1876_v22, 0.0 }
 0x366   : > { %v1953_v27 = vmax.f32 %v1887_v23, 0.0 }
 0x367   : > { %v1951_v29 = vmax.f32 %v1879_v25, 0.0 }
 0x368   : > { %v1985_v30 = vpack.c.bf16 %v1953_v27, %v1952_v26 }
 0x369   : > { %v1984_v31 = vpack.c.bf16 %v1951_v29, %v1950_v28 }
 0x36b   : > { %4018 = vmatprep.mubr.msk.bf16.mxu0 %vm1504_vm1, %v1984_v31 }
 0x36c   : > { %4019 = vmatmul.mubr.msk.bf16.gmra.mrb[152].mxu0 %vm1504_vm1, %v1985_v30 }
 0x3c7   : > { %v3960_v33 = vpop.f32.mrb[92].mxu0 }
 0x3c8   : > { %v2148_v34 = vadd.f32 %v3960_v33, %v5143_v32  ;;  %v2139_v35 = vpop.f32.mrb[93].mxu0 }
 0x3c9   : > { %v2140_v19 = vadd.f32 %v5143_v32, %v2139_v35  ;;  %v3961_v36 = vpop.f32.mrb[94].mxu0 }
 0x3ca   : > { %v2151_v37 = vadd.f32 %v3961_v36, %v5143_v32  ;;  %v2142_v38 = vpop.f32.mrb[95].mxu0  ;;  %v2396_v40 = vmax.f32 %v2148_v34, 0.0 }
 0x3cb   : > { %v2143_v39 = vadd.f32 %v5143_v32, %v2142_v38  ;;  %v2394_v42 = vmax.f32 %v2140_v19, 0.0 }
 0x3cc   : > { %v2397_v41 = vmax.f32 %v2151_v37, 0.0 }
 0x3cd   : > { %v2395_v43 = vmax.f32 %v2143_v39, 0.0 }
 0x3ce   : > { %v2459_v45 = vpack.c.bf16 %v2397_v41, %v2396_v40 }
 0x3cf   : > { %v2458_v46 = vpack.c.bf16 %v2395_v43, %v2394_v42  ;;  %v3964_v47 = vpop.f32.mrb[96].mxu0 }
 0x3d0   : > { %v2164_v48 = vadd.f32 %v3964_v47, %v5143_v32  ;;  %v2155_v49 = vpop.f32.mrb[97].mxu0 }
 0x3d1   : > { %v2156_v50 = vadd.f32 %v5143_v32, %v2155_v49  ;;  %v3965_v51 = vpop.f32.mrb[98].mxu0  ;;  %4030 = vmatprep.mubr.msk.bf16.mxu1 %vm999_vm0, %v2458_v46 }
 0x3d2   : > { %v2167_v53 = vadd.f32 %v3965_v51, %v5143_v32  ;;  %v2158_v54 = vpop.f32.mrb[99].mxu0  ;;  %4031 = vmatmul.mubr.msk.bf16.vlgmr.msra.gmra.mrb[100].mxu1 %vm999_vm0, %v2459_v45  ;;  %v2400_v55 = vmax.f32 %v2164_v48, 0.0 }
 0x3d3   : > { %v2159_v52 = vadd.f32 %v5143_v32, %v2158_v54  ;;  %v2398_v57 = vmax.f32 %v2156_v50, 0.0 }
 0x3d4   : > { %v2401_v56 = vmax.f32 %v2167_v53, 0.0 }
 0x3d5   : > { %v2399_v58 = vmax.f32 %v2159_v52, 0.0 }
 0x3d6   : > { %v2461_v59 = vpack.c.bf16 %v2401_v56, %v2400_v55 }
 0x3d7   : > { %v2460_v60 = vpack.c.bf16 %v2399_v58, %v2398_v57  ;;  %v3968_v61 = vpop.f32.mrb[100].mxu0 }
 0x3d8   : > { %v2180_v62 = vadd.f32 %v3968_v61, %v5143_v32  ;;  %v2171_v63 = vpop.f32.mrb[101].mxu0 }
 0x3d9   : > { %v2172_v0 = vadd.f32 %v5143_v32, %v2171_v63  ;;  %v3969_v1 = vpop.f32.mrb[102].mxu0  ;;  %4034 = vmatprep.mubr.msk.bf16.mxu1 %vm999_vm0, %v2460_v60 }
 0x3da   : > { %v2183_v2 = vadd.f32 %v3969_v1, %v5143_v32  ;;  %v2174_v3 = vpop.f32.mrb[103].mxu0  ;;  %4035 = vmatmul.mubr.msk.bf16.gmra.mrb[104].mxu1 %vm999_vm0, %v2461_v59  ;;  %v2404_v5 = vmax.f32 %v2180_v62, 0.0 }
 0x3db   : > { %v2175_v4 = vadd.f32 %v5143_v32, %v2174_v3  ;;  %v2402_v7 = vmax.f32 %v2172_v0, 0.0 }
 0x3dc   : > { %v2405_v6 = vmax.f32 %v2183_v2, 0.0 }
 0x3dd   : > { %v2403_v8 = vmax.f32 %v2175_v4, 0.0 }
 0x3de   : > { %v2463_v9 = vpack.c.bf16 %v2405_v6, %v2404_v5 }
 0x3df   : > { %v2462_v10 = vpack.c.bf16 %v2403_v8, %v2402_v7  ;;  %v3972_v11 = vpop.f32.mrb[104].mxu0 }
 0x3e0   : > { %v2196_v12 = vadd.f32 %v3972_v11, %v5143_v32  ;;  %v2187_v13 = vpop.f32.mrb[105].mxu0 }
 0x3e1   : > { %v2188_v14 = vadd.f32 %v5143_v32, %v2187_v13  ;;  %v3973_v15 = vpop.f32.mrb[106].mxu0  ;;  %4038 = vmatprep.mubr.msk.bf16.mxu1 %vm999_vm0, %v2462_v10 }
 0x3e2   : > { %v2199_v16 = vadd.f32 %v3973_v15, %v5143_v32  ;;  %v2190_v17 = vpop.f32.mrb[107].mxu0  ;;  %4039 = vmatmul.mubr.msk.bf16.gmra.mrb[108].mxu1 %vm999_vm0, %v2463_v9  ;;  %v2408_v20 = vmax.f32 %v2196_v12, 0.0 }
 0x3e3   : > { %v2191_v18 = vadd.f32 %v5143_v32, %v2190_v17  ;;  %v2406_v22 = vmax.f32 %v2188_v14, 0.0 }
 0x3e4   : > { %v2409_v21 = vmax.f32 %v2199_v16, 0.0 }
 0x3e5   : > { %v2407_v44 = vmax.f32 %v2191_v18, 0.0 }
 0x3e6   : > { %v2465_v23 = vpack.c.bf16 %v2409_v21, %v2408_v20 }
 0x3e7   : > { %v2464_v24 = vpack.c.bf16 %v2407_v44, %v2406_v22  ;;  %v3976_v25 = vpop.f32.mrb[108].mxu0 }
 0x3e8   : > { %v2212_v26 = vadd.f32 %v3976_v25, %v5143_v32  ;;  %v2203_v27 = vpop.f32.mrb[109].mxu0 }
 0x3e9   : > { %v2204_v28 = vadd.f32 %v5143_v32, %v2203_v27  ;;  %v3977_v29 = vpop.f32.mrb[110].mxu0  ;;  %4042 = vmatprep.mubr.msk.bf16.mxu1 %vm999_vm0, %v2464_v24 }
 0x3ea   : > { %v2215_v30 = vadd.f32 %v3977_v29, %v5143_v32  ;;  %v2206_v31 = vpop.f32.mrb[111].mxu0  ;;  %4043 = vmatmul.mubr.msk.bf16.gmra.mrb[112].mxu1 %vm999_vm0, %v2465_v23  ;;  %v2412_v34 = vmax.f32 %v2212_v26, 0.0 }
 0x3eb   : > { %v2207_v33 = vadd.f32 %v5143_v32, %v2206_v31  ;;  %v2410_v19 = vmax.f32 %v2204_v28, 0.0 }
 0x3ec   : > { %v2413_v35 = vmax.f32 %v2215_v30, 0.0 }
 0x3ed   : > { %v2411_v36 = vmax.f32 %v2207_v33, 0.0 }
 0x3ee   : > { %v2467_v37 = vpack.c.bf16 %v2413_v35, %v2412_v34 }
 0x3ef   : > { %v2466_v38 = vpack.c.bf16 %v2411_v36, %v2410_v19  ;;  %v3980_v39 = vpop.f32.mrb[112].mxu0 }
 0x3f0   : > { %v2228_v40 = vadd.f32 %v3980_v39, %v5143_v32  ;;  %v2219_v41 = vpop.f32.mrb[113].mxu0 }
 0x3f1   : > { %v2220_v42 = vadd.f32 %v5143_v32, %v2219_v41  ;;  %v3981_v43 = vpop.f32.mrb[114].mxu0  ;;  %4046 = vmatprep.mubr.msk.bf16.mxu1 %vm999_vm0, %v2466_v38 }
 0x3f2   : > { %v2231_v45 = vadd.f32 %v3981_v43, %v5143_v32  ;;  %v2222_v46 = vpop.f32.mrb[115].mxu0  ;;  %4047 = vmatmul.mubr.msk.bf16.gmra.mrb[116].mxu1 %vm999_vm0, %v2467_v37  ;;  %v2416_v48 = vmax.f32 %v2228_v40, 0.0 }
 0x3f3   : > { %v2223_v47 = vadd.f32 %v5143_v32, %v2222_v46  ;;  %v2414_v50 = vmax.f32 %v2220_v42, 0.0 }
 0x3f4   : > { %v2417_v49 = vmax.f32 %v2231_v45, 0.0 }
 0x3f5   : > { %v2415_v51 = vmax.f32 %v2223_v47, 0.0 }
 0x3f6   : > { %v2469_v53 = vpack.c.bf16 %v2417_v49, %v2416_v48 }
 0x3f7   : > { %v2468_v54 = vpack.c.bf16 %v2415_v51, %v2414_v50  ;;  %v3984_v52 = vpop.f32.mrb[116].mxu0 }
 0x3f8   : > { %v2244_v55 = vadd.f32 %v3984_v52, %v5143_v32  ;;  %v2235_v56 = vpop.f32.mrb[117].mxu0 }
 0x3f9   : > { %v2236_v57 = vadd.f32 %v5143_v32, %v2235_v56  ;;  %v3985_v58 = vpop.f32.mrb[118].mxu0  ;;  %4050 = vmatprep.mubr.msk.bf16.mxu1 %vm999_vm0, %v2468_v54 }
 0x3fa   : > { %v2247_v59 = vadd.f32 %v3985_v58, %v5143_v32  ;;  %v2238_v60 = vpop.f32.mrb[119].mxu0  ;;  %4051 = vmatmul.mubr.msk.bf16.gmra.mrb[120].mxu1 %vm999_vm0, %v2469_v53  ;;  %v2420_v62 = vmax.f32 %v2244_v55, 0.0 }
 0x3fb   : > { %v2239_v61 = vadd.f32 %v5143_v32, %v2238_v60  ;;  %v2418_v0 = vmax.f32 %v2236_v57, 0.0 }
 0x3fc   : > { %v2421_v63 = vmax.f32 %v2247_v59, 0.0 }
 0x3fd   : > { %v2419_v1 = vmax.f32 %v2239_v61, 0.0 }
 0x3fe   : > { %v2471_v2 = vpack.c.bf16 %v2421_v63, %v2420_v62 }
 0x3ff   : > { %v2470_v3 = vpack.c.bf16 %v2419_v1, %v2418_v0  ;;  %v3988_v4 = vpop.f32.mrb[120].mxu0 }
 0x400   : > { %v2260_v5 = vadd.f32 %v3988_v4, %v5143_v32  ;;  %v2251_v6 = vpop.f32.mrb[121].mxu0 }
 0x401   : > { %v2252_v7 = vadd.f32 %v5143_v32, %v2251_v6  ;;  %v3989_v8 = vpop.f32.mrb[122].mxu0  ;;  %4054 = vmatprep.mubr.msk.bf16.mxu1 %vm999_vm0, %v2470_v3 }
 0x402   : > { %v2263_v9 = vadd.f32 %v3989_v8, %v5143_v32  ;;  %v2254_v10 = vpop.f32.mrb[123].mxu0  ;;  %4055 = vmatmul.mubr.msk.bf16.gmra.mrb[124].mxu1 %vm999_vm0, %v2471_v2  ;;  %v2424_v12 = vmax.f32 %v2260_v5, 0.0 }
 0x403   : > { %v2255_v11 = vadd.f32 %v5143_v32, %v2254_v10  ;;  %v2422_v14 = vmax.f32 %v2252_v7, 0.0 }
 0x404   : > { %v2425_v13 = vmax.f32 %v2263_v9, 0.0 }
 0x405   : > { %v2423_v15 = vmax.f32 %v2255_v11, 0.0 }
 0x406   : > { %v2473_v16 = vpack.c.bf16 %v2425_v13, %v2424_v12 }
 0x407   : > { %v2472_v17 = vpack.c.bf16 %v2423_v15, %v2422_v14  ;;  %v3992_v18 = vpop.f32.mrb[124].mxu0 }
 0x408   : > { %v2276_v20 = vadd.f32 %v3992_v18, %v5143_v32  ;;  %v2267_v21 = vpop.f32.mrb[125].mxu0 }
 0x409   : > { %v2268_v22 = vadd.f32 %v5143_v32, %v2267_v21  ;;  %v3993_v44 = vpop.f32.mrb[126].mxu0  ;;  %4058 = vmatprep.mubr.msk.bf16.mxu1 %vm999_vm0, %v2472_v17 }
 0x40a   : > { %v2279_v23 = vadd.f32 %v3993_v44, %v5143_v32  ;;  %v2270_v24 = vpop.f32.mrb[127].mxu0  ;;  %4059 = vmatmul.mubr.msk.bf16.gmra.mrb[128].mxu1 %vm999_vm0, %v2473_v16  ;;  %v2428_v26 = vmax.f32 %v2276_v20, 0.0 }
 0x40b   : > { %v2271_v25 = vadd.f32 %v5143_v32, %v2270_v24  ;;  %v2426_v28 = vmax.f32 %v2268_v22, 0.0 }
 0x40c   : > { %v2429_v27 = vmax.f32 %v2279_v23, 0.0 }
 0x40d   : > { %v2427_v29 = vmax.f32 %v2271_v25, 0.0 }
 0x40e   : > { %v2475_v30 = vpack.c.bf16 %v2429_v27, %v2428_v26 }
 0x40f   : > { %v2474_v31 = vpack.c.bf16 %v2427_v29, %v2426_v28  ;;  %v3996_v33 = vpop.f32.mrb[128].mxu0 }
 0x410   : > { %v2292_v34 = vadd.f32 %v3996_v33, %v5143_v32  ;;  %v2283_v35 = vpop.f32.mrb[129].mxu0 }
 0x411   : > { %v2284_v19 = vadd.f32 %v5143_v32, %v2283_v35  ;;  %v3997_v36 = vpop.f32.mrb[130].mxu0  ;;  %4062 = vmatprep.mubr.msk.bf16.mxu1 %vm999_vm0, %v2474_v31 }
 0x412   : > { %v2295_v37 = vadd.f32 %v3997_v36, %v5143_v32  ;;  %v2286_v38 = vpop.f32.mrb[131].mxu0  ;;  %4063 = vmatmul.mubr.msk.bf16.gmra.mrb[132].mxu1 %vm999_vm0, %v2475_v30  ;;  %v2432_v40 = vmax.f32 %v2292_v34, 0.0 }
 0x413   : > { %v2287_v39 = vadd.f32 %v5143_v32, %v2286_v38  ;;  %v2430_v42 = vmax.f32 %v2284_v19, 0.0 }
 0x414   : > { %v2433_v41 = vmax.f32 %v2295_v37, 0.0 }
 0x415   : > { %v2431_v43 = vmax.f32 %v2287_v39, 0.0 }
 0x416   : > { %v2477_v45 = vpack.c.bf16 %v2433_v41, %v2432_v40 }
 0x417   : > { %v2476_v46 = vpack.c.bf16 %v2431_v43, %v2430_v42  ;;  %v4000_v47 = vpop.f32.mrb[132].mxu0 }
 0x418   : > { %v2308_v48 = vadd.f32 %v4000_v47, %v5143_v32  ;;  %v2299_v49 = vpop.f32.mrb[133].mxu0 }
 0x419   : > { %v2300_v50 = vadd.f32 %v5143_v32, %v2299_v49  ;;  %v4001_v51 = vpop.f32.mrb[134].mxu0  ;;  %4066 = vmatprep.mubr.msk.bf16.mxu1 %vm999_vm0, %v2476_v46 }
 0x41a   : > { %v2311_v53 = vadd.f32 %v4001_v51, %v5143_v32  ;;  %v2302_v54 = vpop.f32.mrb[135].mxu0  ;;  %4067 = vmatmul.mubr.msk.bf16.gmra.mrb[136].mxu1 %vm999_vm0, %v2477_v45  ;;  %v2436_v55 = vmax.f32 %v2308_v48, 0.0 }
 0x41b   : > { %v2303_v52 = vadd.f32 %v5143_v32, %v2302_v54  ;;  %v2434_v57 = vmax.f32 %v2300_v50, 0.0 }
 0x41c   : > { %v2437_v56 = vmax.f32 %v2311_v53, 0.0 }
 0x41d   : > { %v2435_v58 = vmax.f32 %v2303_v52, 0.0 }
 0x41e   : > { %v2479_v59 = vpack.c.bf16 %v2437_v56, %v2436_v55 }
 0x41f   : > { %v2478_v60 = vpack.c.bf16 %v2435_v58, %v2434_v57  ;;  %v4004_v61 = vpop.f32.mrb[136].mxu0 }
 0x420   : > { %v2324_v62 = vadd.f32 %v4004_v61, %v5143_v32  ;;  %v2315_v63 = vpop.f32.mrb[137].mxu0 }
 0x421   : > { %v2316_v0 = vadd.f32 %v5143_v32, %v2315_v63  ;;  %v4005_v1 = vpop.f32.mrb[138].mxu0  ;;  %4070 = vmatprep.mubr.msk.bf16.mxu1 %vm999_vm0, %v2478_v60 }
 0x422   : > { %v2327_v2 = vadd.f32 %v4005_v1, %v5143_v32  ;;  %v2318_v3 = vpop.f32.mrb[139].mxu0  ;;  %4071 = vmatmul.mubr.msk.bf16.gmra.mrb[140].mxu1 %vm999_vm0, %v2479_v59  ;;  %v2440_v5 = vmax.f32 %v2324_v62, 0.0 }
 0x423   : > { %v2319_v4 = vadd.f32 %v5143_v32, %v2318_v3  ;;  %v2438_v7 = vmax.f32 %v2316_v0, 0.0 }
 0x424   : > { %v2441_v6 = vmax.f32 %v2327_v2, 0.0 }
 0x425   : > { %v2439_v8 = vmax.f32 %v2319_v4, 0.0  ;;  %v5244_v4 = vld [vmem:[%s5436_s10] ss:$0 sm:$0xff] }
 0x426   : > { %v2481_v9 = vpack.c.bf16 %v2441_v6, %v2440_v5 }
 0x427   : > { %v2480_v10 = vpack.c.bf16 %v2439_v8, %v2438_v7  ;;  %v4008_v11 = vpop.f32.mrb[140].mxu0 }
 0x428   : > { %v2340_v12 = vadd.f32 %v4008_v11, %v5143_v32  ;;  %v2331_v13 = vpop.f32.mrb[141].mxu0 }
 0x429   : > { %v2332_v14 = vadd.f32 %v5143_v32, %v2331_v13  ;;  %v4009_v15 = vpop.f32.mrb[142].mxu0  ;;  %4074 = vmatprep.mubr.msk.bf16.mxu1 %vm999_vm0, %v2480_v10 }
 0x42a   : > { %v2343_v16 = vadd.f32 %v4009_v15, %v5143_v32  ;;  %v2334_v17 = vpop.f32.mrb[143].mxu0  ;;  %4075 = vmatmul.mubr.msk.bf16.gmra.mrb[144].mxu1 %vm999_vm0, %v2481_v9  ;;  %v2444_v20 = vmax.f32 %v2340_v12, 0.0 }
 0x42b   : > { %v2335_v18 = vadd.f32 %v5143_v32, %v2334_v17  ;;  %v2442_v22 = vmax.f32 %v2332_v14, 0.0 }
 0x42c   : > { %v2445_v21 = vmax.f32 %v2343_v16, 0.0 }
 0x42d   : > { %v2443_v44 = vmax.f32 %v2335_v18, 0.0 }
 0x42e   : > { %v2483_v23 = vpack.c.bf16 %v2445_v21, %v2444_v20 }
 0x42f   : > { %v2482_v24 = vpack.c.bf16 %v2443_v44, %v2442_v22  ;;  %v4012_v25 = vpop.f32.mrb[144].mxu0 }
 0x430   : > { %v2356_v26 = vadd.f32 %v4012_v25, %v5143_v32  ;;  %v2347_v27 = vpop.f32.mrb[145].mxu0 }
 0x431   : > { %v2348_v28 = vadd.f32 %v5143_v32, %v2347_v27  ;;  %v4013_v29 = vpop.f32.mrb[146].mxu0  ;;  %4078 = vmatprep.mubr.msk.bf16.mxu1 %vm999_vm0, %v2482_v24 }
 0x432   : > { %v2359_v30 = vadd.f32 %v4013_v29, %v5143_v32  ;;  %v2350_v31 = vpop.f32.mrb[147].mxu0  ;;  %4079 = vmatmul.mubr.msk.bf16.gmra.mrb[148].mxu1 %vm999_vm0, %v2483_v23  ;;  %v2448_v34 = vmax.f32 %v2356_v26, 0.0 }
 0x433   : > { %v2351_v33 = vadd.f32 %v5143_v32, %v2350_v31  ;;  %v2446_v19 = vmax.f32 %v2348_v28, 0.0 }
 0x434   : > { %v2449_v35 = vmax.f32 %v2359_v30, 0.0 }
 0x435   : > { %v2447_v36 = vmax.f32 %v2351_v33, 0.0 }
 0x436   : > { %v2485_v37 = vpack.c.bf16 %v2449_v35, %v2448_v34 }
 0x437   : > { %v2484_v38 = vpack.c.bf16 %v2447_v36, %v2446_v19  ;;  %v4016_v39 = vpop.f32.mrb[148].mxu0 }
 0x438   : > { %v2372_v40 = vadd.f32 %v4016_v39, %v5143_v32  ;;  %v2363_v41 = vpop.f32.mrb[149].mxu0 }
 0x439   : > { %v2364_v42 = vadd.f32 %v5143_v32, %v2363_v41  ;;  %v4017_v43 = vpop.f32.mrb[150].mxu0  ;;  %4082 = vmatprep.mubr.msk.bf16.mxu1 %vm999_vm0, %v2484_v38 }
 0x43a   : > { %v2375_v45 = vadd.f32 %v4017_v43, %v5143_v32  ;;  %v2366_v46 = vpop.f32.mrb[151].mxu0  ;;  %4083 = vmatmul.mubr.msk.bf16.gmra.mrb[152].mxu1 %vm999_vm0, %v2485_v37  ;;  %v2452_v48 = vmax.f32 %v2372_v40, 0.0 }
 0x43b   : > { %v2367_v47 = vadd.f32 %v5143_v32, %v2366_v46  ;;  %v2450_v50 = vmax.f32 %v2364_v42, 0.0 }
 0x43c   : > { %v2453_v49 = vmax.f32 %v2375_v45, 0.0 }
 0x43d   : > { %v2451_v51 = vmax.f32 %v2367_v47, 0.0 }
 0x43e   : > { %v2487_v53 = vpack.c.bf16 %v2453_v49, %v2452_v48 }
 0x43f   : > { %v2486_v54 = vpack.c.bf16 %v2451_v51, %v2450_v50  ;;  %v4020_v52 = vpop.f32.mrb[152].mxu0 }
 0x440   : > { %v2388_v55 = vadd.f32 %v4020_v52, %v5143_v32  ;;  %v2379_v56 = vpop.f32.mrb[153].mxu0 }
 0x441   : > { %v2380_v57 = vadd.f32 %v5143_v32, %v2379_v56  ;;  %v4021_v58 = vpop.f32.mrb[154].mxu0  ;;  %4086 = vmatprep.mubr.msk.bf16.mxu1 %vm999_vm0, %v2486_v54 }
 0x442   : > { %v2391_v59 = vadd.f32 %v4021_v58, %v5143_v32  ;;  %v2382_v60 = vpop.f32.mrb[155].mxu0  ;;  %4087 = vmatmul.mubr.msk.bf16.gmra.mrb[156].mxu1 %vm999_vm0, %v2487_v53  ;;  %v2456_v62 = vmax.f32 %v2388_v55, 0.0 }
 0x443   : > { %v2383_v61 = vadd.f32 %v5143_v32, %v2382_v60  ;;  %v2454_v0 = vmax.f32 %v2380_v57, 0.0 }
 0x444   : > { %v2457_v63 = vmax.f32 %v2391_v59, 0.0 }
 0x445   : > { %v2455_v1 = vmax.f32 %v2383_v61, 0.0 }
 0x446   : > { %v2489_v2 = vpack.c.bf16 %v2457_v63, %v2456_v62 }
 0x447   : > { %v2488_v3 = vpack.c.bf16 %v2455_v1, %v2454_v0 }
 0x449   : > { %4090 = vmatprep.mubr.msk.bf16.mxu1 %vm999_vm0, %v2488_v3 }
 0x44a   : > { %4091 = vmatmul.mubr.msk.bf16.gmra.mrb[160].mxu1 %vm999_vm0, %v2489_v2 }
 0x4a5   : > { %v4032_v5 = vpop.f32.mrb[100].mxu1 }
 0x4a6   : > { %v2668_v6 = vadd.f32 %v4032_v5, %v5244_v4  ;;  %v2659_v7 = vpop.f32.mrb[101].mxu1 }
 0x4a7   : > { %v2660_v32 = vadd.f32 %v5244_v4, %v2659_v7  ;;  %v4033_v8 = vpop.f32.mrb[102].mxu1 }
 0x4a8   : > { %v2916_v9 = vsub.f32 0.0, %v2668_v6  ;;  %v2671_v10 = vadd.f32 %v4033_v8, %v5244_v4  ;;  %v2662_v11 = vpop.f32.mrb[103].mxu1 }
 0x4a9   : > { %v2914_v12 = vsub.f32 0.0, %v2660_v32  ;;  %v2663_v13 = vadd.f32 %v5244_v4, %v2662_v11 }
 0x4aa   : > { %v2982_v14 = vmul.f32 1.442695, %v2916_v9  ;;  %v2917_v15 = vsub.f32 0.0, %v2671_v10 }
 0x4ab   : > { %v2978_v16 = vmul.f32 1.442695, %v2914_v12  ;;  %v2915_v17 = vsub.f32 0.0, %v2663_v13 }
 0x4ac   : > { %4172 = vpow2.f32 %v2982_v14  ;;  %v2984_v18 = vmul.f32 1.442695, %v2917_v15 }
 0x4ad   : > { %4174 = vpow2.f32 %v2978_v16  ;;  %v2980_v20 = vmul.f32 1.442695, %v2915_v17  ;;  %v4036_v21 = vpop.f32.mrb[104].mxu1 }
 0x4ae   : > { %4176 = vpow2.f32 %v2984_v18  ;;  %v2684_v22 = vadd.f32 %v4036_v21, %v5244_v4  ;;  %v2675_v44 = vpop.f32.mrb[105].mxu1 }
 0x4af   : > { %4178 = vpow2.f32 %v2980_v20  ;;  %v2676_v23 = vadd.f32 %v5244_v4, %v2675_v44  ;;  %v4037_v24 = vpop.f32.mrb[106].mxu1 }
 0x4b0   : > { %v2920_v25 = vsub.f32 0.0, %v2684_v22  ;;  %v2687_v26 = vadd.f32 %v4037_v24, %v5244_v4  ;;  %v2678_v27 = vpop.f32.mrb[107].mxu1 }
 0x4b1   : > { %v2918_v28 = vsub.f32 0.0, %v2676_v23  ;;  %v2679_v29 = vadd.f32 %v5244_v4, %v2678_v27 }
 0x4b2   : > { %v2990_v30 = vmul.f32 1.442695, %v2920_v25  ;;  %v2921_v31 = vsub.f32 0.0, %v2687_v26 }
 0x4b3   : > { %v2986_v33 = vmul.f32 1.442695, %v2918_v28  ;;  %v2919_v34 = vsub.f32 0.0, %v2679_v29 }
 0x4b4   : > { %4180 = vpow2.f32 %v2990_v30  ;;  %v2992_v35 = vmul.f32 1.442695, %v2921_v31 }
 0x4b5   : > { %4182 = vpow2.f32 %v2986_v33  ;;  %v2988_v19 = vmul.f32 1.442695, %v2919_v34  ;;  %v4040_v36 = vpop.f32.mrb[108].mxu1 }
 0x4b6   : > { %v4173_v37 = vpop.eup %4172  ;;  %4184 = vpow2.f32 %v2992_v35  ;;  %v2700_v38 = vadd.f32 %v4040_v36, %v5244_v4  ;;  %v2691_v39 = vpop.f32.mrb[109].mxu1 }
 0x4b7   : > { %v4175_v40 = vpop.eup %4174  ;;  %v3108_v41 = vadd.f32 1.0, %v4173_v37  ;;  %4186 = vpow2.f32 %v2988_v19  ;;  %v2692_v42 = vadd.f32 %v5244_v4, %v2691_v39  ;;  %v4041_v43 = vpop.f32.mrb[110].mxu1 }
 0x4b8   : > { %v4177_v45 = vpop.eup %4176  ;;  %v3106_v46 = vadd.f32 1.0, %v4175_v40  ;;  %v2924_v47 = vsub.f32 0.0, %v2700_v38  ;;  %v2703_v48 = vadd.f32 %v4041_v43, %v5244_v4  ;;  %v2694_v49 = vpop.f32.mrb[111].mxu1 }
 0x4b9   : > { %v4179_v50 = vpop.eup %4178  ;;  %4188 = vrcp.f32 %v3108_v41  ;;  %v3109_v51 = vadd.f32 1.0, %v4177_v45  ;;  %v2922_v53 = vsub.f32 0.0, %v2692_v42  ;;  %v2695_v54 = vadd.f32 %v5244_v4, %v2694_v49 }
 0x4ba   : > { %4190 = vrcp.f32 %v3106_v46  ;;  %v3107_v52 = vadd.f32 1.0, %v4179_v50  ;;  %v2998_v55 = vmul.f32 1.442695, %v2924_v47  ;;  %v2925_v56 = vsub.f32 0.0, %v2703_v48 }
 0x4bb   : > { %4192 = vrcp.f32 %v3109_v51  ;;  %v2994_v57 = vmul.f32 1.442695, %v2922_v53  ;;  %v2923_v58 = vsub.f32 0.0, %v2695_v54 }
 0x4bc   : > { %4194 = vrcp.f32 %v3107_v52  ;;  %v3000_v59 = vmul.f32 1.442695, %v2925_v56 }
 0x4bd   : > { %4196 = vpow2.f32 %v2998_v55  ;;  %v2996_v60 = vmul.f32 1.442695, %v2923_v58  ;;  %v4044_v61 = vpop.f32.mrb[112].mxu1 }
 0x4be   : > { %v4181_v62 = vpop.eup %4180  ;;  %4198 = vpow2.f32 %v2994_v57  ;;  %v2716_v63 = vadd.f32 %v4044_v61, %v5244_v4  ;;  %v2707_v0 = vpop.f32.mrb[113].mxu1 }
 0x4bf   : > { %v4183_v1 = vpop.eup %4182  ;;  %v3112_v2 = vadd.f32 1.0, %v4181_v62  ;;  %4200 = vpow2.f32 %v3000_v59  ;;  %v2708_v3 = vadd.f32 %v5244_v4, %v2707_v0  ;;  %v4045_v5 = vpop.f32.mrb[114].mxu1 }
 0x4c0   : > { %v4185_v6 = vpop.eup %4184  ;;  %v3110_v7 = vadd.f32 1.0, %v4183_v1  ;;  %4202 = vpow2.f32 %v2996_v60  ;;  %v2928_v32 = vsub.f32 0.0, %v2716_v63  ;;  %v2719_v8 = vadd.f32 %v4045_v5, %v5244_v4  ;;  %v2710_v9 = vpop.f32.mrb[115].mxu1 }
 0x4c1   : > { %v4187_v10 = vpop.eup %4186  ;;  %4204 = vrcp.f32 %v3112_v2  ;;  %v3113_v11 = vadd.f32 1.0, %v4185_v6  ;;  %v2926_v12 = vsub.f32 0.0, %v2708_v3  ;;  %v2711_v13 = vadd.f32 %v5244_v4, %v2710_v9 }
 0x4c2   : > { %4206 = vrcp.f32 %v3110_v7  ;;  %v3111_v14 = vadd.f32 1.0, %v4187_v10  ;;  %v3006_v15 = vmul.f32 1.442695, %v2928_v32  ;;  %v2929_v16 = vsub.f32 0.0, %v2719_v8 }
 0x4c3   : > { %v4189_v17 = vpop.eup %4188  ;;  %4208 = vrcp.f32 %v3113_v11  ;;  %v3002_v18 = vmul.f32 1.442695, %v2926_v12  ;;  %v2927_v20 = vsub.f32 0.0, %v2711_v13 }
 0x4c4   : > { %v4191_v21 = vpop.eup %4190  ;;  %3236 = vst [vmem:[%s5264_s24 + $0x10] sm:$0xff] %v4189_v17  ;;  %4210 = vrcp.f32 %v3111_v14  ;;  %v3008_v22 = vmul.f32 1.442695, %v2929_v16 }
 0x4c5   : > { %v4193_v44 = vpop.eup %4192  ;;  %3234 = vst [vmem:[%s5264_s24] sm:$0xff] %v4191_v21  ;;  %4212 = vpow2.f32 %v3006_v15  ;;  %v3004_v23 = vmul.f32 1.442695, %v2927_v20  ;;  %v4048_v24 = vpop.f32.mrb[116].mxu1 }
 0x4c6   : > { %v4195_v25 = vpop.eup %4194  ;;  %3237 = vst [vmem:[%s5264_s24 + $0x18] sm:$0xff] %v4193_v44  ;;  %4214 = vpow2.f32 %v3002_v18  ;;  %v2732_v26 = vadd.f32 %v4048_v24, %v5244_v4  ;;  %v2723_v27 = vpop.f32.mrb[117].mxu1 }
 0x4c7   : > { %v4197_v28 = vpop.eup %4196  ;;  %3235 = vst [vmem:[%s5264_s24 + $0x8] sm:$0xff] %v4195_v25  ;;  %4216 = vpow2.f32 %v3008_v22  ;;  %v2724_v29 = vadd.f32 %v5244_v4, %v2723_v27  ;;  %v4049_v30 = vpop.f32.mrb[118].mxu1 }
 0x4c8   : > { %v4199_v31 = vpop.eup %4198  ;;  %v3116_v33 = vadd.f32 1.0, %v4197_v28  ;;  %4218 = vpow2.f32 %v3004_v23  ;;  %v2932_v34 = vsub.f32 0.0, %v2732_v26  ;;  %v2735_v35 = vadd.f32 %v4049_v30, %v5244_v4  ;;  %v2726_v19 = vpop.f32.mrb[119].mxu1 }
 0x4c9   : > { %v4201_v36 = vpop.eup %4200  ;;  %v3114_v37 = vadd.f32 1.0, %v4199_v31  ;;  %v2930_v38 = vsub.f32 0.0, %v2724_v29  ;;  %v2727_v39 = vadd.f32 %v5244_v4, %v2726_v19 }
 0x4ca   : > { %v4203_v40 = vpop.eup %4202  ;;  %4220 = vrcp.f32 %v3116_v33  ;;  %v3117_v41 = vadd.f32 1.0, %v4201_v36  ;;  %v3014_v42 = vmul.f32 1.442695, %v2932_v34  ;;  %v2933_v43 = vsub.f32 0.0, %v2735_v35 }
 0x4cb   : > { %v4205_v45 = vpop.eup %4204  ;;  %4222 = vrcp.f32 %v3114_v37  ;;  %v3115_v46 = vadd.f32 1.0, %v4203_v40  ;;  %v3010_v47 = vmul.f32 1.442695, %v2930_v38  ;;  %v2931_v48 = vsub.f32 0.0, %v2727_v39 }
 0x4cc   : > { %v4207_v49 = vpop.eup %4206  ;;  %3240 = vst [vmem:[%s5264_s24 + $0x30] sm:$0xff] %v4205_v45  ;;  %4224 = vrcp.f32 %v3117_v41  ;;  %v3016_v50 = vmul.f32 1.442695, %v2933_v43 }
 0x4cd   : > { %v4209_v51 = vpop.eup %4208  ;;  %3238 = vst [vmem:[%s5264_s24 + $0x20] sm:$0xff] %v4207_v49  ;;  %4226 = vrcp.f32 %v3115_v46  ;;  %v3012_v53 = vmul.f32 1.442695, %v2931_v48  ;;  %v4052_v54 = vpop.f32.mrb[120].mxu1 }
 0x4ce   : > { %v4211_v52 = vpop.eup %4210  ;;  %3241 = vst [vmem:[%s5264_s24 + $0x38] sm:$0xff] %v4209_v51  ;;  %4228 = vpow2.f32 %v3014_v42  ;;  %v2748_v55 = vadd.f32 %v4052_v54, %v5244_v4  ;;  %v2739_v56 = vpop.f32.mrb[121].mxu1 }
 0x4cf   : > { %v4213_v57 = vpop.eup %4212  ;;  %3239 = vst [vmem:[%s5264_s24 + $0x28] sm:$0xff] %v4211_v52  ;;  %4230 = vpow2.f32 %v3010_v47  ;;  %v2740_v58 = vadd.f32 %v5244_v4, %v2739_v56  ;;  %v4053_v59 = vpop.f32.mrb[122].mxu1 }
 0x4d0   : > { %v4215_v60 = vpop.eup %4214  ;;  %v3120_v61 = vadd.f32 1.0, %v4213_v57  ;;  %4232 = vpow2.f32 %v3016_v50  ;;  %v2936_v62 = vsub.f32 0.0, %v2748_v55  ;;  %v2751_v63 = vadd.f32 %v4053_v59, %v5244_v4  ;;  %v2742_v0 = vpop.f32.mrb[123].mxu1 }
 0x4d1   : > { %v4217_v1 = vpop.eup %4216  ;;  %v3118_v2 = vadd.f32 1.0, %v4215_v60  ;;  %4234 = vpow2.f32 %v3012_v53  ;;  %v2934_v3 = vsub.f32 0.0, %v2740_v58  ;;  %v2743_v5 = vadd.f32 %v5244_v4, %v2742_v0 }
 0x4d2   : > { %v4219_v6 = vpop.eup %4218  ;;  %4236 = vrcp.f32 %v3120_v61  ;;  %v3121_v7 = vadd.f32 1.0, %v4217_v1  ;;  %v3022_v32 = vmul.f32 1.442695, %v2936_v62  ;;  %v2937_v8 = vsub.f32 0.0, %v2751_v63 }
 0x4d3   : > { %4238 = vrcp.f32 %v3118_v2  ;;  %v3119_v9 = vadd.f32 1.0, %v4219_v6  ;;  %v3018_v10 = vmul.f32 1.442695, %v2934_v3  ;;  %v2935_v11 = vsub.f32 0.0, %v2743_v5 }
 0x4d4   : > { %v4221_v12 = vpop.eup %4220  ;;  %4240 = vrcp.f32 %v3121_v7  ;;  %v3024_v13 = vmul.f32 1.442695, %v2937_v8 }
 0x4d5   : > { %v4223_v14 = vpop.eup %4222  ;;  %3244 = vst [vmem:[%s5264_s24 + $0x50] sm:$0xff] %v4221_v12  ;;  %4242 = vrcp.f32 %v3119_v9  ;;  %v3020_v15 = vmul.f32 1.442695, %v2935_v11  ;;  %v4056_v16 = vpop.f32.mrb[124].mxu1 }
 0x4d6   : > { %v4225_v17 = vpop.eup %4224  ;;  %3242 = vst [vmem:[%s5264_s24 + $0x40] sm:$0xff] %v4223_v14  ;;  %4244 = vpow2.f32 %v3022_v32  ;;  %v2764_v18 = vadd.f32 %v4056_v16, %v5244_v4  ;;  %v2755_v20 = vpop.f32.mrb[125].mxu1 }
 0x4d7   : > { %v4227_v21 = vpop.eup %4226  ;;  %3245 = vst [vmem:[%s5264_s24 + $0x58] sm:$0xff] %v4225_v17  ;;  %4246 = vpow2.f32 %v3018_v10  ;;  %v2756_v22 = vadd.f32 %v5244_v4, %v2755_v20  ;;  %v4057_v44 = vpop.f32.mrb[126].mxu1 }
 0x4d8   : > { %v4229_v23 = vpop.eup %4228  ;;  %3243 = vst [vmem:[%s5264_s24 + $0x48] sm:$0xff] %v4227_v21  ;;  %4248 = vpow2.f32 %v3024_v13  ;;  %v2940_v24 = vsub.f32 0.0, %v2764_v18  ;;  %v2767_v25 = vadd.f32 %v4057_v44, %v5244_v4  ;;  %v2758_v26 = vpop.f32.mrb[127].mxu1 }
 0x4d9   : > { %v4231_v27 = vpop.eup %4230  ;;  %v3124_v28 = vadd.f32 1.0, %v4229_v23  ;;  %4250 = vpow2.f32 %v3020_v15  ;;  %v2938_v29 = vsub.f32 0.0, %v2756_v22  ;;  %v2759_v30 = vadd.f32 %v5244_v4, %v2758_v26 }
 0x4da   : > { %v4233_v31 = vpop.eup %4232  ;;  %v3122_v33 = vadd.f32 1.0, %v4231_v27  ;;  %v2941_v34 = vsub.f32 0.0, %v2767_v25  ;;  %v3030_v36 = vmul.f32 1.442695, %v2940_v24 }
 0x4db   : > { %v4235_v35 = vpop.eup %4234  ;;  %4252 = vrcp.f32 %v3124_v28  ;;  %v3125_v19 = vadd.f32 1.0, %v4233_v31  ;;  %v2939_v37 = vsub.f32 0.0, %v2759_v30  ;;  %v3026_v40 = vmul.f32 1.442695, %v2938_v29 }
 0x4dc   : > { %v4237_v38 = vpop.eup %4236  ;;  %4254 = vrcp.f32 %v3122_v33  ;;  %v3123_v39 = vadd.f32 1.0, %v4235_v35  ;;  %v3032_v42 = vmul.f32 1.442695, %v2941_v34 }
 0x4dd   : > { %v4239_v41 = vpop.eup %4238  ;;  %3248 = vst [vmem:[%s5264_s24 + $0x70] sm:$0xff] %v4237_v38  ;;  %4256 = vrcp.f32 %v3125_v19  ;;  %v4060_v43 = vpop.f32.mrb[128].mxu1  ;;  %v3028_v46 = vmul.f32 1.442695, %v2939_v37 }
 0x4de   : > { %v4241_v45 = vpop.eup %4240  ;;  %3246 = vst [vmem:[%s5264_s24 + $0x60] sm:$0xff] %v4239_v41  ;;  %4258 = vrcp.f32 %v3123_v39  ;;  %v2780_v47 = vadd.f32 %v4060_v43, %v5244_v4  ;;  %v2771_v48 = vpop.f32.mrb[129].mxu1 }
 0x4df   : > { %v4243_v49 = vpop.eup %4242  ;;  %3249 = vst [vmem:[%s5264_s24 + $0x78] sm:$0xff] %v4241_v45  ;;  %4260 = vpow2.f32 %v3030_v36  ;;  %v2772_v50 = vadd.f32 %v5244_v4, %v2771_v48  ;;  %v4061_v51 = vpop.f32.mrb[130].mxu1 }
 0x4e0   : > { %v4245_v53 = vpop.eup %4244  ;;  %3247 = vst [vmem:[%s5264_s24 + $0x68] sm:$0xff] %v4243_v49  ;;  %4262 = vpow2.f32 %v3026_v40  ;;  %v2944_v54 = vsub.f32 0.0, %v2780_v47  ;;  %v2783_v52 = vadd.f32 %v4061_v51, %v5244_v4  ;;  %v2774_v55 = vpop.f32.mrb[131].mxu1 }
 0x4e1   : > { %v4247_v56 = vpop.eup %4246  ;;  %v3128_v57 = vadd.f32 1.0, %v4245_v53  ;;  %4264 = vpow2.f32 %v3032_v42  ;;  %v2942_v58 = vsub.f32 0.0, %v2772_v50  ;;  %v2775_v59 = vadd.f32 %v5244_v4, %v2774_v55 }
 0x4e2   : > { %v4249_v60 = vpop.eup %4248  ;;  %v3126_v61 = vadd.f32 1.0, %v4247_v56  ;;  %4266 = vpow2.f32 %v3028_v46  ;;  %v2945_v62 = vsub.f32 0.0, %v2783_v52  ;;  %v3038_v1 = vmul.f32 1.442695, %v2944_v54 }
 0x4e3   : > { %v4251_v63 = vpop.eup %4250  ;;  %4268 = vrcp.f32 %v3128_v57  ;;  %v3129_v0 = vadd.f32 1.0, %v4249_v60  ;;  %v2943_v2 = vsub.f32 0.0, %v2775_v59  ;;  %v3034_v5 = vmul.f32 1.442695, %v2942_v58 }
 0x4e4   : > { %4270 = vrcp.f32 %v3126_v61  ;;  %v3127_v3 = vadd.f32 1.0, %v4251_v63  ;;  %v3040_v7 = vmul.f32 1.442695, %v2945_v62 }
 0x4e5   : > { %v4253_v6 = vpop.eup %4252  ;;  %4272 = vrcp.f32 %v3129_v0  ;;  %v4064_v32 = vpop.f32.mrb[132].mxu1  ;;  %v3036_v9 = vmul.f32 1.442695, %v2943_v2 }
 0x4e6   : > { %v4255_v8 = vpop.eup %4254  ;;  %3252 = vst [vmem:[%s5264_s24 + $0x90] sm:$0xff] %v4253_v6  ;;  %4274 = vrcp.f32 %v3127_v3  ;;  %v2796_v10 = vadd.f32 %v4064_v32, %v5244_v4  ;;  %v2787_v11 = vpop.f32.mrb[133].mxu1 }
 0x4e7   : > { %v4257_v12 = vpop.eup %4256  ;;  %3250 = vst [vmem:[%s5264_s24 + $0x80] sm:$0xff] %v4255_v8  ;;  %4276 = vpow2.f32 %v3038_v1  ;;  %v2788_v13 = vadd.f32 %v5244_v4, %v2787_v11  ;;  %v4065_v14 = vpop.f32.mrb[134].mxu1 }
 0x4e8   : > { %v4259_v15 = vpop.eup %4258  ;;  %3253 = vst [vmem:[%s5264_s24 + $0x98] sm:$0xff] %v4257_v12  ;;  %4278 = vpow2.f32 %v3034_v5  ;;  %v2948_v16 = vsub.f32 0.0, %v2796_v10  ;;  %v2799_v17 = vadd.f32 %v4065_v14, %v5244_v4  ;;  %v2790_v18 = vpop.f32.mrb[135].mxu1 }
 0x4e9   : > { %v4261_v20 = vpop.eup %4260  ;;  %3251 = vst [vmem:[%s5264_s24 + $0x88] sm:$0xff] %v4259_v15  ;;  %4280 = vpow2.f32 %v3040_v7  ;;  %v2946_v21 = vsub.f32 0.0, %v2788_v13  ;;  %v2791_v22 = vadd.f32 %v5244_v4, %v2790_v18 }
 0x4ea   : > { %v4263_v44 = vpop.eup %4262  ;;  %v3132_v23 = vadd.f32 1.0, %v4261_v20  ;;  %4282 = vpow2.f32 %v3036_v9  ;;  %v2949_v24 = vsub.f32 0.0, %v2799_v17  ;;  %v3046_v30 = vmul.f32 1.442695, %v2948_v16 }
 0x4eb   : > { %v4265_v25 = vpop.eup %4264  ;;  %v3130_v26 = vadd.f32 1.0, %v4263_v44  ;;  %v2947_v27 = vsub.f32 0.0, %v2791_v22  ;;  %v3042_v34 = vmul.f32 1.442695, %v2946_v21 }
 0x4ec   : > { %v4267_v28 = vpop.eup %4266  ;;  %4284 = vrcp.f32 %v3132_v23  ;;  %v3133_v29 = vadd.f32 1.0, %v4265_v25  ;;  %v3048_v36 = vmul.f32 1.442695, %v2949_v24 }
 0x4ed   : > { %v4269_v31 = vpop.eup %4268  ;;  %4286 = vrcp.f32 %v3130_v26  ;;  %v3131_v33 = vadd.f32 1.0, %v4267_v28  ;;  %v4068_v35 = vpop.f32.mrb[136].mxu1  ;;  %v3044_v40 = vmul.f32 1.442695, %v2947_v27 }
 0x4ee   : > { %v4271_v19 = vpop.eup %4270  ;;  %3256 = vst [vmem:[%s5264_s24 + $0xb0] sm:$0xff] %v4269_v31  ;;  %4288 = vrcp.f32 %v3133_v29  ;;  %v2812_v37 = vadd.f32 %v4068_v35, %v5244_v4  ;;  %v2803_v38 = vpop.f32.mrb[137].mxu1 }
 0x4ef   : > { %v4273_v39 = vpop.eup %4272  ;;  %3254 = vst [vmem:[%s5264_s24 + $0xa0] sm:$0xff] %v4271_v19  ;;  %4290 = vrcp.f32 %v3131_v33  ;;  %v2804_v41 = vadd.f32 %v5244_v4, %v2803_v38  ;;  %v4069_v42 = vpop.f32.mrb[138].mxu1 }
 0x4f0   : > { %v4275_v43 = vpop.eup %4274  ;;  %3257 = vst [vmem:[%s5264_s24 + $0xb8] sm:$0xff] %v4273_v39  ;;  %4292 = vpow2.f32 %v3046_v30  ;;  %v2952_v45 = vsub.f32 0.0, %v2812_v37  ;;  %v2815_v46 = vadd.f32 %v4069_v42, %v5244_v4  ;;  %v2806_v47 = vpop.f32.mrb[139].mxu1 }
 0x4f1   : > { %v4277_v48 = vpop.eup %4276  ;;  %3255 = vst [vmem:[%s5264_s24 + $0xa8] sm:$0xff] %v4275_v43  ;;  %4294 = vpow2.f32 %v3042_v34  ;;  %v2950_v49 = vsub.f32 0.0, %v2804_v41  ;;  %v2807_v50 = vadd.f32 %v5244_v4, %v2806_v47 }
 0x4f2   : > { %v4279_v51 = vpop.eup %4278  ;;  %v3136_v53 = vadd.f32 1.0, %v4277_v48  ;;  %4296 = vpow2.f32 %v3048_v36  ;;  %v2953_v54 = vsub.f32 0.0, %v2815_v46  ;;  %v3054_v59 = vmul.f32 1.442695, %v2952_v45 }
 0x4f3   : > { %v4281_v52 = vpop.eup %4280  ;;  %v3134_v55 = vadd.f32 1.0, %v4279_v51  ;;  %4298 = vpow2.f32 %v3044_v40  ;;  %v2951_v56 = vsub.f32 0.0, %v2807_v50  ;;  %v3050_v61 = vmul.f32 1.442695, %v2950_v49 }
 0x4f4   : > { %v4283_v57 = vpop.eup %4282  ;;  %4300 = vrcp.f32 %v3136_v53  ;;  %v3137_v58 = vadd.f32 1.0, %v4281_v52  ;;  %v3056_v0 = vmul.f32 1.442695, %v2953_v54 }
 0x4f5   : > { %4302 = vrcp.f32 %v3134_v55  ;;  %v3135_v60 = vadd.f32 1.0, %v4283_v57  ;;  %v4072_v62 = vpop.f32.mrb[140].mxu1  ;;  %v3052_v5 = vmul.f32 1.442695, %v2951_v56 }
 0x4f6   : > { %v4285_v63 = vpop.eup %4284  ;;  %4304 = vrcp.f32 %v3137_v58  ;;  %v2828_v1 = vadd.f32 %v4072_v62, %v5244_v4  ;;  %v2819_v2 = vpop.f32.mrb[141].mxu1 }
 0x4f7   : > { %v4287_v3 = vpop.eup %4286  ;;  %3260 = vst [vmem:[%s5264_s24 + $0xd0] sm:$0xff] %v4285_v63  ;;  %4306 = vrcp.f32 %v3135_v60  ;;  %v2820_v6 = vadd.f32 %v5244_v4, %v2819_v2  ;;  %v4073_v7 = vpop.f32.mrb[142].mxu1 }
 0x4f8   : > { %v4289_v32 = vpop.eup %4288  ;;  %3258 = vst [vmem:[%s5264_s24 + $0xc0] sm:$0xff] %v4287_v3  ;;  %4308 = vpow2.f32 %v3054_v59  ;;  %v2956_v8 = vsub.f32 0.0, %v2828_v1  ;;  %v2831_v9 = vadd.f32 %v4073_v7, %v5244_v4  ;;  %v2822_v10 = vpop.f32.mrb[143].mxu1 }
 0x4f9   : > { %v4291_v11 = vpop.eup %4290  ;;  %3261 = vst [vmem:[%s5264_s24 + $0xd8] sm:$0xff] %v4289_v32  ;;  %4310 = vpow2.f32 %v3050_v61  ;;  %v2954_v12 = vsub.f32 0.0, %v2820_v6  ;;  %v2823_v13 = vadd.f32 %v5244_v4, %v2822_v10 }
 0x4fa   : > { %v4293_v14 = vpop.eup %4292  ;;  %3259 = vst [vmem:[%s5264_s24 + $0xc8] sm:$0xff] %v4291_v11  ;;  %4312 = vpow2.f32 %v3056_v0  ;;  %v3062_v15 = vmul.f32 1.442695, %v2956_v8  ;;  %v2957_v16 = vsub.f32 0.0, %v2831_v9 }
 0x4fb   : > { %v4295_v17 = vpop.eup %4294  ;;  %v3140_v18 = vadd.f32 1.0, %v4293_v14  ;;  %4314 = vpow2.f32 %v3052_v5  ;;  %v2955_v20 = vsub.f32 0.0, %v2823_v13  ;;  %v3058_v24 = vmul.f32 1.442695, %v2954_v12 }
 0x4fc   : > { %v4297_v21 = vpop.eup %4296  ;;  %v3138_v22 = vadd.f32 1.0, %v4295_v17  ;;  %4316 = vpow2.f32 %v3062_v15  ;;  %v3064_v28 = vmul.f32 1.442695, %v2957_v16 }
 0x4fd   : > { %v4299_v44 = vpop.eup %4298  ;;  %4318 = vrcp.f32 %v3140_v18  ;;  %v3141_v23 = vadd.f32 1.0, %v4297_v21  ;;  %v4076_v25 = vpop.f32.mrb[144].mxu1  ;;  %v3060_v33 = vmul.f32 1.442695, %v2955_v20 }
 0x4fe   : > { %v4301_v26 = vpop.eup %4300  ;;  %4320 = vrcp.f32 %v3138_v22  ;;  %v3139_v27 = vadd.f32 1.0, %v4299_v44  ;;  %v2844_v29 = vadd.f32 %v4076_v25, %v5244_v4  ;;  %v2835_v30 = vpop.f32.mrb[145].mxu1 }
 0x4ff   : > { %v4303_v31 = vpop.eup %4302  ;;  %3264 = vst [vmem:[%s5264_s24 + $0xf0] sm:$0xff] %v4301_v26  ;;  %4322 = vrcp.f32 %v3141_v23  ;;  %v2836_v34 = vadd.f32 %v5244_v4, %v2835_v30  ;;  %v4077_v35 = vpop.f32.mrb[146].mxu1 }
 0x500   : > { %v4305_v19 = vpop.eup %4304  ;;  %3262 = vst [vmem:[%s5264_s24 + $0xe0] sm:$0xff] %v4303_v31  ;;  %4324 = vrcp.f32 %v3139_v27  ;;  %v2960_v36 = vsub.f32 0.0, %v2844_v29  ;;  %v2847_v37 = vadd.f32 %v4077_v35, %v5244_v4  ;;  %v2838_v38 = vpop.f32.mrb[147].mxu1 }
 0x501   : > { %v4307_v39 = vpop.eup %4306  ;;  %3265 = vst [vmem:[%s5264_s24 + $0xf8] sm:$0xff] %v4305_v19  ;;  %4326 = vpow2.f32 %v3058_v24  ;;  %v2839_v40 = vadd.f32 %v5244_v4, %v2838_v38  ;;  %v2958_v43 = vsub.f32 0.0, %v2836_v34 }
 0x502   : > { %v4309_v41 = vpop.eup %4308  ;;  %3263 = vst [vmem:[%s5264_s24 + $0xe8] sm:$0xff] %v4307_v39  ;;  %4328 = vpow2.f32 %v3064_v28  ;;  %v3070_v42 = vmul.f32 1.442695, %v2960_v36  ;;  %v2961_v47 = vsub.f32 0.0, %v2847_v37 }
 0x503   : > { %v4311_v45 = vpop.eup %4310  ;;  %v3144_v46 = vadd.f32 1.0, %v4309_v41  ;;  %4330 = vpow2.f32 %v3060_v33  ;;  %v2959_v50 = vsub.f32 0.0, %v2839_v40  ;;  %v3066_v56 = vmul.f32 1.442695, %v2958_v43 }
 0x504   : > { %v4313_v48 = vpop.eup %4312  ;;  %v3142_v49 = vadd.f32 1.0, %v4311_v45  ;;  %4332 = vpow2.f32 %v3070_v42  ;;  %v3072_v61 = vmul.f32 1.442695, %v2961_v47 }
 0x505   : > { %v4315_v51 = vpop.eup %4314  ;;  %4334 = vrcp.f32 %v3144_v46  ;;  %v3145_v53 = vadd.f32 1.0, %v4313_v48  ;;  %v4080_v54 = vpop.f32.mrb[148].mxu1  ;;  %v3068_v1 = vmul.f32 1.442695, %v2959_v50 }
 0x506   : > { %v4317_v52 = vpop.eup %4316  ;;  %4336 = vrcp.f32 %v3142_v49  ;;  %v3143_v55 = vadd.f32 1.0, %v4315_v51  ;;  %v2860_v57 = vadd.f32 %v4080_v54, %v5244_v4  ;;  %v2851_v58 = vpop.f32.mrb[149].mxu1 }
 0x507   : > { %v4319_v59 = vpop.eup %4318  ;;  %4338 = vrcp.f32 %v3145_v53  ;;  %v3148_v60 = vadd.f32 1.0, %v4317_v52  ;;  %v2852_v62 = vadd.f32 %v5244_v4, %v2851_v58  ;;  %v4081_v63 = vpop.f32.mrb[150].mxu1 }
 0x508   : > { %v4321_v0 = vpop.eup %4320  ;;  %3268 = vst [vmem:[%s5264_s24 + $0x110] sm:$0xff] %v4319_v59  ;;  %4340 = vrcp.f32 %v3143_v55  ;;  %v2964_v2 = vsub.f32 0.0, %v2860_v57  ;;  %v2863_v3 = vadd.f32 %v4081_v63, %v5244_v4  ;;  %v2854_v5 = vpop.f32.mrb[151].mxu1 }
 0x509   : > { %v4323_v6 = vpop.eup %4322  ;;  %3266 = vst [vmem:[%s5264_s24 + $0x100] sm:$0xff] %v4321_v0  ;;  %4342 = vrcp.f32 %v3148_v60  ;;  %v2855_v7 = vadd.f32 %v5244_v4, %v2854_v5  ;;  %v2962_v9 = vsub.f32 0.0, %v2852_v62  ;;  %v4428_v60 = vld [vmem:[%s5436_s10] ss:$0 sm:$0xff] }
 0x50a   : > { %v4325_v32 = vpop.eup %4324  ;;  %3269 = vst [vmem:[%s5264_s24 + $0x118] sm:$0xff] %v4323_v6  ;;  %4344 = vpow2.f32 %v3066_v56  ;;  %v3078_v8 = vmul.f32 1.442695, %v2964_v2  ;;  %v2965_v11 = vsub.f32 0.0, %v2863_v3 }
 0x50b   : > { %v4327_v10 = vpop.eup %4326  ;;  %3267 = vst [vmem:[%s5264_s24 + $0x108] sm:$0xff] %v4325_v32  ;;  %4346 = vpow2.f32 %v3072_v61  ;;  %v2963_v14 = vsub.f32 0.0, %v2855_v7  ;;  %v3074_v21 = vmul.f32 1.442695, %v2962_v9 }
 0x50c   : > { %v4329_v12 = vpop.eup %4328  ;;  %v3146_v13 = vadd.f32 1.0, %v4327_v10  ;;  %4348 = vpow2.f32 %v3068_v1  ;;  %v3080_v25 = vmul.f32 1.442695, %v2965_v11 }
 0x50d   : > { %v4331_v15 = vpop.eup %4330  ;;  %v3149_v16 = vadd.f32 1.0, %v4329_v12  ;;  %4350 = vpow2.f32 %v3078_v8  ;;  %v4084_v17 = vpop.f32.mrb[152].mxu1  ;;  %v3076_v29 = vmul.f32 1.442695, %v2963_v14 }
 0x50e   : > { %v4333_v18 = vpop.eup %4332  ;;  %4352 = vrcp.f32 %v3146_v13  ;;  %v3147_v20 = vadd.f32 1.0, %v4331_v15  ;;  %v2876_v22 = vadd.f32 %v4084_v17, %v5244_v4  ;;  %v2867_v44 = vpop.f32.mrb[153].mxu1 }
 0x50f   : > { %v4335_v23 = vpop.eup %4334  ;;  %4354 = vrcp.f32 %v3149_v16  ;;  %v3152_v24 = vadd.f32 1.0, %v4333_v18  ;;  %v2868_v26 = vadd.f32 %v5244_v4, %v2867_v44  ;;  %v4085_v27 = vpop.f32.mrb[154].mxu1 }
 0x510   : > { %v4337_v28 = vpop.eup %4336  ;;  %3272 = vst [vmem:[%s5264_s24 + $0x130] sm:$0xff] %v4335_v23  ;;  %4356 = vrcp.f32 %v3147_v20  ;;  %v2968_v30 = vsub.f32 0.0, %v2876_v22  ;;  %v2879_v31 = vadd.f32 %v4085_v27, %v5244_v4  ;;  %v2870_v33 = vpop.f32.mrb[155].mxu1 }
 0x511   : > { %v4339_v34 = vpop.eup %4338  ;;  %3270 = vst [vmem:[%s5264_s24 + $0x120] sm:$0xff] %v4337_v28  ;;  %4358 = vrcp.f32 %v3152_v24  ;;  %v2966_v35 = vsub.f32 0.0, %v2868_v26  ;;  %v2871_v19 = vadd.f32 %v5244_v4, %v2870_v33 }
 0x512   : > { %v4341_v36 = vpop.eup %4340  ;;  %3273 = vst [vmem:[%s5264_s24 + $0x138] sm:$0xff] %v4339_v34  ;;  %4360 = vpow2.f32 %v3074_v21  ;;  %v3086_v37 = vmul.f32 1.442695, %v2968_v30  ;;  %v2969_v38 = vsub.f32 0.0, %v2879_v31 }
 0x513   : > { %v4343_v39 = vpop.eup %4342  ;;  %3271 = vst [vmem:[%s5264_s24 + $0x128] sm:$0xff] %v4341_v36  ;;  %4362 = vpow2.f32 %v3080_v25  ;;  %v3082_v40 = vmul.f32 1.442695, %v2966_v35  ;;  %v2967_v41 = vsub.f32 0.0, %v2871_v19 }
 0x514   : > { %v4345_v42 = vpop.eup %4344  ;;  %3276 = vst [vmem:[%s5264_s24 + $0x150] sm:$0xff] %v4343_v39  ;;  %4364 = vpow2.f32 %v3076_v29  ;;  %v3088_v49 = vmul.f32 1.442695, %v2969_v38 }
 0x515   : > { %v4347_v43 = vpop.eup %4346  ;;  %v3150_v45 = vadd.f32 1.0, %v4345_v42  ;;  %4366 = vpow2.f32 %v3086_v37  ;;  %v4088_v46 = vpop.f32.mrb[156].mxu1  ;;  %v3084_v52 = vmul.f32 1.442695, %v2967_v41 }
 0x516   : > { %v4349_v47 = vpop.eup %4348  ;;  %v3153_v48 = vadd.f32 1.0, %v4347_v43  ;;  %4368 = vpow2.f32 %v3082_v40  ;;  %v2892_v50 = vadd.f32 %v4088_v46, %v5244_v4  ;;  %v2883_v51 = vpop.f32.mrb[157].mxu1 }
 0x517   : > { %v4351_v53 = vpop.eup %4350  ;;  %4370 = vrcp.f32 %v3150_v45  ;;  %v3151_v54 = vadd.f32 1.0, %v4349_v47  ;;  %v2884_v55 = vadd.f32 %v5244_v4, %v2883_v51  ;;  %v4089_v56 = vpop.f32.mrb[158].mxu1 }
 0x518   : > { %v4353_v57 = vpop.eup %4352  ;;  %4372 = vrcp.f32 %v3153_v48  ;;  %v3156_v58 = vadd.f32 1.0, %v4351_v53  ;;  %v2972_v59 = vsub.f32 0.0, %v2892_v50  ;;  %v2895_v61 = vadd.f32 %v4428_v60, %v4089_v56  ;;  %v2886_v62 = vpop.f32.mrb[159].mxu1 }
 0x519   : > { %v4355_v63 = vpop.eup %4354  ;;  %3274 = vst [vmem:[%s5264_s24 + $0x140] sm:$0xff] %v4353_v57  ;;  %4374 = vrcp.f32 %v3151_v54  ;;  %v2970_v0 = vsub.f32 0.0, %v2884_v55  ;;  %v2887_v1 = vadd.f32 %v4428_v60, %v2886_v62 }
 0x51a   : > { %v4357_v2 = vpop.eup %4356  ;;  %3277 = vst [vmem:[%s5264_s24 + $0x158] sm:$0xff] %v4355_v63  ;;  %4376 = vrcp.f32 %v3156_v58  ;;  %v3094_v4 = vmul.f32 1.442695, %v2972_v59  ;;  %v2973_v3 = vsub.f32 0.0, %v2895_v61 }
 0x51b   : > { %v4359_v5 = vpop.eup %4358  ;;  %3275 = vst [vmem:[%s5264_s24 + $0x148] sm:$0xff] %v4357_v2  ;;  %4378 = vpow2.f32 %v3088_v49  ;;  %v3090_v6 = vmul.f32 1.442695, %v2970_v0  ;;  %v2971_v7 = vsub.f32 0.0, %v2887_v1 }
 0x51c   : > { %v4361_v32 = vpop.eup %4360  ;;  %3280 = vst [vmem:[%s5264_s24 + $0x170] sm:$0xff] %v4359_v5  ;;  %4380 = vpow2.f32 %v3084_v52  ;;  %v3096_v13 = vmul.f32 1.442695, %v2973_v3 }
 0x51d   : > { %v4363_v8 = vpop.eup %4362  ;;  %v3154_v9 = vadd.f32 1.0, %v4361_v32  ;;  %4382 = vpow2.f32 %v3094_v4  ;;  %v4092_v10 = vpop.f32.mrb[160].mxu1  ;;  %v3092_v18 = vmul.f32 1.442695, %v2971_v7 }
 0x51e   : > { %v4365_v11 = vpop.eup %4364  ;;  %v3157_v12 = vadd.f32 1.0, %v4363_v8  ;;  %4384 = vpow2.f32 %v3090_v6  ;;  %v2908_v14 = vadd.f32 %v4428_v60, %v4092_v10  ;;  %v2899_v15 = vpop.f32.mrb[161].mxu1 }
 0x51f   : > { %v4367_v16 = vpop.eup %4366  ;;  %4386 = vrcp.f32 %v3154_v9  ;;  %v3155_v17 = vadd.f32 1.0, %v4365_v11  ;;  %v2900_v20 = vadd.f32 %v4428_v60, %v2899_v15  ;;  %v4093_v21 = vpop.f32.mrb[162].mxu1 }
 0x520   : > { %v4369_v22 = vpop.eup %4368  ;;  %4388 = vrcp.f32 %v3157_v12  ;;  %v3160_v44 = vadd.f32 1.0, %v4367_v16  ;;  %v2976_v23 = vsub.f32 0.0, %v2908_v14  ;;  %v2911_v24 = vadd.f32 %v4428_v60, %v4093_v21  ;;  %v2902_v25 = vpop.f32.mrb[163].mxu1 }
 0x521   : > { %v4371_v26 = vpop.eup %4370  ;;  %4390 = vrcp.f32 %v3155_v17  ;;  %v3158_v27 = vadd.f32 1.0, %v4369_v22  ;;  %v2974_v28 = vsub.f32 0.0, %v2900_v20  ;;  %v2903_v29 = vadd.f32 %v4428_v60, %v2902_v25 }
 0x522   : > { %v4373_v30 = vpop.eup %4372  ;;  %3278 = vst [vmem:[%s5264_s24 + $0x160] sm:$0xff] %v4371_v26  ;;  %4392 = vrcp.f32 %v3160_v44  ;;  %v3102_v31 = vmul.f32 1.442695, %v2976_v23  ;;  %v2977_v19 = vsub.f32 0.0, %v2911_v24 }
 0x523   : > { %v4375_v33 = vpop.eup %4374  ;;  %3281 = vst [vmem:[%s5264_s24 + $0x178] sm:$0xff] %v4373_v30  ;;  %4394 = vrcp.f32 %v3158_v27  ;;  %v3098_v34 = vmul.f32 1.442695, %v2974_v28  ;;  %v2975_v37 = vsub.f32 0.0, %v2903_v29 }
 0x524   : > { %v4377_v35 = vpop.eup %4376  ;;  %3279 = vst [vmem:[%s5264_s24 + $0x168] sm:$0xff] %v4375_v33  ;;  %4396 = vpow2.f32 %v3096_v13  ;;  %v3104_v45 = vmul.f32 1.442695, %v2977_v19 }
 0x525   : > { %v4379_v36 = vpop.eup %4378  ;;  %3284 = vst [vmem:[%s5264_s24 + $0x190] sm:$0xff] %v4377_v35  ;;  %4398 = vpow2.f32 %v3092_v18  ;;  %v3100_v48 = vmul.f32 1.442695, %v2975_v37 }
 0x526   : > { %v4381_v38 = vpop.eup %4380  ;;  %v3161_v39 = vadd.f32 1.0, %v4379_v36  ;;  %4400 = vpow2.f32 %v3102_v31 }
 0x527   : > { %v4383_v40 = vpop.eup %4382  ;;  %v3159_v41 = vadd.f32 1.0, %v4381_v38  ;;  %4402 = vpow2.f32 %v3098_v34 }
 0x528   : > { %v4385_v42 = vpop.eup %4384  ;;  %4404 = vrcp.f32 %v3161_v39  ;;  %v3164_v43 = vadd.f32 1.0, %v4383_v40 }
 0x529   : > { %v4387_v46 = vpop.eup %4386  ;;  %4406 = vrcp.f32 %v3159_v41  ;;  %v3162_v47 = vadd.f32 1.0, %v4385_v42 }
 0x52a   : > { %v4389_v49 = vpop.eup %4388  ;;  %3282 = vst [vmem:[%s5264_s24 + $0x180] sm:$0xff] %v4387_v46  ;;  %4408 = vrcp.f32 %v3164_v43 }
 0x52b   : > { %v4391_v50 = vpop.eup %4390  ;;  %3285 = vst [vmem:[%s5264_s24 + $0x198] sm:$0xff] %v4389_v49  ;;  %4410 = vrcp.f32 %v3162_v47 }
 0x52c   : > { %v4393_v51 = vpop.eup %4392  ;;  %3283 = vst [vmem:[%s5264_s24 + $0x188] sm:$0xff] %v4391_v50  ;;  %4412 = vpow2.f32 %v3104_v45 }
 0x52d   : > { %v4395_v53 = vpop.eup %4394  ;;  %3288 = vst [vmem:[%s5264_s24 + $0x1b0] sm:$0xff] %v4393_v51  ;;  %4414 = vpow2.f32 %v3100_v48 }
 0x52e   : > { %v4397_v54 = vpop.eup %4396  ;;  %3286 = vst [vmem:[%s5264_s24 + $0x1a0] sm:$0xff] %v4395_v53 }
 0x52f   : > { %v4399_v52 = vpop.eup %4398  ;;  %v3165_v55 = vadd.f32 1.0, %v4397_v54 }
 0x530   : > { %v4401_v56 = vpop.eup %4400  ;;  %v3163_v57 = vadd.f32 1.0, %v4399_v52 }
 0x531   : > { %v4403_v58 = vpop.eup %4402  ;;  %4416 = vrcp.f32 %v3165_v55  ;;  %v3168_v59 = vadd.f32 1.0, %v4401_v56 }
 0x532   : > { %v4405_v60 = vpop.eup %4404  ;;  %4418 = vrcp.f32 %v3163_v57  ;;  %v3166_v61 = vadd.f32 1.0, %v4403_v58 }
 0x533   : > { %v4407_v62 = vpop.eup %4406  ;;  %3289 = vst [vmem:[%s5264_s24 + $0x1b8] sm:$0xff] %v4405_v60  ;;  %4420 = vrcp.f32 %v3168_v59 }
 0x534   : > { %v4409_v63 = vpop.eup %4408  ;;  %3287 = vst [vmem:[%s5264_s24 + $0x1a8] sm:$0xff] %v4407_v62  ;;  %4422 = vrcp.f32 %v3166_v61 }
 0x535   : > { %v4411_v0 = vpop.eup %4410  ;;  %3292 = vst [vmem:[%s5264_s24 + $0x1d0] sm:$0xff] %v4409_v63 }
 0x536   : > { %v4413_v1 = vpop.eup %4412  ;;  %3290 = vst [vmem:[%s5264_s24 + $0x1c0] sm:$0xff] %v4411_v0 }
 0x537   : > { %v4415_v2 = vpop.eup %4414  ;;  %v3169_v4 = vadd.f32 1.0, %v4413_v1 }
 0x538   : > { %v3167_v3 = vadd.f32 1.0, %v4415_v2 }
 0x539   : > { %4424 = vrcp.f32 %v3169_v4 }
 0x53a   : > { %4426 = vrcp.f32 %v3167_v3 }
 0x53b   : > { %v4417_v5 = vpop.eup %4416 }
 0x53c   : > { %v4419_v6 = vpop.eup %4418  ;;  %3293 = vst [vmem:[%s5264_s24 + $0x1d8] sm:$0xff] %v4417_v5 }
 0x53d   : > { %v4421_v7 = vpop.eup %4420  ;;  %3291 = vst [vmem:[%s5264_s24 + $0x1c8] sm:$0xff] %v4419_v6 }
 0x53e   : > { %v4423_v32 = vpop.eup %4422  ;;  %3296 = vst [vmem:[%s5264_s24 + $0x1f0] sm:$0xff] %v4421_v7 }
 0x53f   : > { %3294 = vst [vmem:[%s5264_s24 + $0x1e0] sm:$0xff] %v4423_v32 }
 0x543   : > { %v4425_v8 = vpop.eup %4424 }
 0x544   : > { %v4427_v9 = vpop.eup %4426  ;;  %3297 = vst [vmem:[%s5264_s24 + $0x1f8] sm:$0xff] %v4425_v8 }
 0x545   : > { %3295 = vst [vmem:[%s5264_s24 + $0x1e8] sm:$0xff] %v4427_v9 }
 0x546   : > { %4472 = shalt.err (!%p4469_p2)
}
 0x547   : > { %s4473_s24 = scalar_lea.hbm %s5378_s13, 8192  ;;  %s4477_s28 = scalar_lea.hbm %s5437_s11, 16384 }
 0x548   : > { %p4474_p4 = scmp.ne.s32.totalorder %s5378_s13, %s4473_s24  ;;  %p4478_p9 = scmp.lt.u32.totalorder %s5378_s13, %s5437_s11 }
 0x549   : > { %p4479_p1 = scmp.lt.u32.totalorder %s4477_s28, %s4473_s24  ;;  %p4481_p6 = scmp.lt.u32.totalorder %s4473_s24, %s5378_s13 }
 0x54a   : > { %p4475_p5 = pnand %p4474_p4, %p5447_p11 }
 0x54b   : > { %p4480_p3 = por %p4479_p1, %p4478_p9 }
 0x54c   : > { %p4476_p7 = pneg %p4475_p5 }
 0x54d   : > { %p4482_p12 = por %p4481_p6, %p4480_p3 }
 0x54f   : > { %p4483_p13 = pnand %p4482_p12, %p4476_p7 }
 0x551   : > { %4486 = shalt.err (!%p4483_p13)
}
 0x552   : > { %s4531_s27 = smov 128   ;;  %s4532_s26 = smov 8  }
 0x553   : > { %4104 = dma.vmem_to_hbm [thread:$0]  (%p5447_p11), %s5380_s15, 8192, %s5378_s13, %s3299_s19, %s4531_s27, %s4531_s27, %s4532_s26  }
 0x554 PF: > { %s3327_s12 = sand.u32 1, %s4513_s17   ;;  %p5448_p8 = scmp.ne.s32.totalorder %s5445_s30, 0 }
 0x555   : > { %p5449_p10 = scmp.ge.s32.totalorder %s4525_s20, 2  ;;  %s3328_s24 = scalar_lea.sflag [#allocation4], %s3327_s12 }
 0x557   : > { %p4111_p0 = pnand %p5449_p10, %p5448_p8 }
 0x559   : > { %4508 = dma.done.wait (!%p4111_p0), %s3328_s24, 8192  }
 0x55a   : > { %4510 = vsyncadd (!%p4111_p0), %s3328_s24, 4294959104  ;;  %s5450_s25 = sld [smem:[#allocation8_spill]]  ;;  %s5451_s19 = sld [smem:[#allocation9_spill]] }
 0x55b   : > { %p24_p2 = scmp.ge.s32.totalorder %s4618_s23, 4   ;;  %s5452_s17 = smov %s4517_s18 }
 0x55c   : > { %s5454_s20 = smov %s4618_s23 }
 0x55d   :  { %26 = sbr.rel (!%p24_p2) target bundleno = 5 (0x5), region = 109 }
 0x560   : > { %s5453_s18 = smov %s5450_s25 }
 0x564   :  { %3333 = vsyncpa [#allocation3], 1 }
 0x565   :  { %3335 = vsyncpa [#allocation3 + $0x1], 1 }
 0x566   :  { %3336 = vsyncpa [#allocation4], 1 }
 0x567   :  { %3338 = vsyncpa [#allocation4 + $0x1], 1 }

</bundles_post_ra>
